<compile_context>
chip_gen: v7x
topology: tpu7x:2x2x1
jax: 0.10.0
libtpu: 0.0.40
codegen_flags: <defaults>
</compile_context>

<pallas_src>
import functools

import numpy as np
import jax
import jax.numpy as jnp
from jax.experimental import pallas as pl
from jax.experimental.pallas import tpu as pltpu


# ------------------------------ Pallas kernel --------------------------------
def _dqn_fused_kernel(x_ref, w1_ref, b1_ref, w2_ref, b2_ref,
                      wf1_ref, bf1_ref, wf2_ref, bf2_ref, o_ref,
                      y2_ref, acc_ref, *, batch, h_per_step):
    """Fully fused DQN forward, pipelined over fc1 h-chunks (B = padded batch).

    Layouts:
      x_ref  : (20*B, 60)          bf16, row = h*B + b, col = w*3  + cin
      w1_ref : (3, 60, 288)        bf16, [dh, w_in*3  + ci, w_out*16 + co]
      w2_ref : (3, 288, 512)       bf16, [dh, w_in*16 + ci, w_out*32 + co]
      wf1_ref: (h_per_step,512,256)bf16, streamed block of [h, w*32 + c, n]
      wf2_ref: (256, 4)            bf16 ; biases f32 rows ; o_ref (B, 4) f32
      y2_ref : VMEM scratch (16*B, 512) bf16 (conv2 output, persists)
      acc_ref: VMEM scratch (B, 256) f32     (fc1 accumulator, persists)
    """
    f32, bf16 = jnp.float32, jnp.bfloat16
    step = pl.program_id(0)

    # --- step 0 only: conv1 -> ReLU -> conv2 -> ReLU into persistent scratch.
    #     Runs while the next wf1 block streams in behind it.
    @pl.when(step == 0)
    def _():
        # conv1: rows (h*B + b), (18*B, 288). Valid 3x3 conv as 3 row-shifted
        # matmuls against the width-Toeplitz weight. Accumulator initialized
        # from the first dot (no zero-fill).
        a1 = jnp.dot(x_ref[0:18 * batch, :], w1_ref[0],
                     preferred_element_type=f32)
        a1 = a1 + jnp.dot(x_ref[batch:19 * batch, :], w1_ref[1],
                          preferred_element_type=f32)
        a1 = a1 + jnp.dot(x_ref[2 * batch:20 * batch, :], w1_ref[2],
                          preferred_element_type=f32)
        y1 = jnp.maximum(a1 + b1_ref[...], 0.0).astype(bf16)     # (18*B, 288)

        # conv2: (16*B, 512)
        a2 = jnp.dot(y1[0:16 * batch, :], w2_ref[0],
                     preferred_element_type=f32)
        a2 = a2 + jnp.dot(y1[batch:17 * batch, :], w2_ref[1],
                          preferred_element_type=f32)
        a2 = a2 + jnp.dot(y1[2 * batch:18 * batch, :], w2_ref[2],
                          preferred_element_type=f32)
        y2_ref[...] = jnp.maximum(a2 + b2_ref[...], 0.0).astype(y2_ref.dtype)

    # --- every step: fc1 partial for this step's streamed wf1 block.
    #     Each h-chunk is a K=512 matmul with batch kept on the sublane axis.
    partial = None
    for j in range(h_per_step):
        start = pl.multiple_of((step * h_per_step + j) * batch, 16)
        lhs = y2_ref[pl.ds(start, batch), :]                      # (B, 512) bf16
        d = jnp.dot(lhs, wf1_ref[j], preferred_element_type=f32)  # (B, 256) f32
        partial = d if partial is None else partial + d

    @pl.when(step == 0)
    def _():
        acc_ref[...] = partial            # init from first block (no zero-fill)

    @pl.when(step != 0)
    def _():
        acc_ref[...] = acc_ref[...] + partial

    # --- last step: fc1 bias+ReLU, fc2 epilogue, single (B, 4) HBM store.
    @pl.when(step == pl.num_programs(0) - 1)
    def _():
        hidden = jnp.maximum(acc_ref[...] + bf1_ref[...], 0.0).astype(bf16)
        out = jnp.dot(hidden, wf2_ref[...],
                      preferred_element_type=f32) + bf2_ref[...]
        o_ref[...] = out.astype(o_ref.dtype)


# ------------------------------ wrapper ---------------------------------------
def _vmem_limit_bytes(batch_pad, h_per_step):
    """Honest scoped-VMEM request derived from the real buffer sizes."""
    resident = (3 * 60 * 288 + 3 * 288 * 512 + 256 * 4) * 2 \
               + (288 + 512 + 256 + 4) * 4                       # weights+biases
    streamed = h_per_step * 512 * 256 * 2                         # one wf1 block
    x_in = 20 * batch_pad * 60 * 2
    scratch = 16 * batch_pad * 512 * 2 + batch_pad * 256 * 4
    live = 18 * batch_pad * 288 * 4 + 16 * batch_pad * 512 * 4    # conv temps
    out = batch_pad * 4 * 4
    need = 2 * (resident + streamed + x_in + out) + scratch + live
    # 2x headroom for layout padding / compiler temporaries; clamp to a range
    # every generation (v7x: 64 MiB physical per core) can grant.
    return int(min(max(2 * need, 16 * 1024 * 1024), 48 * 1024 * 1024))


def dqn_forward(kparams, x_nchw):
    """Fused forward. x is NCHW (B, 3, 20, 20), like the torch module."""
    B, C, H, W = x_nchw.shape
    assert (C, H, W) == (3, 20, 20), x_nchw.shape

    # Pad batch to a multiple of 16 so every shifted conv slice / fc1 chunk is
    # sublane-tile aligned (bf16 tile = 16 rows).  Padded rows are discarded.
    B_pad = max(16, -(-B // 16) * 16)
    if B_pad != B:
        x_nchw = jnp.pad(x_nchw, ((0, B_pad - B), (0, 0), (0, 0), (0, 0)))

    # NCHW -> rows (h, b), cols (w, c): tiny relayout fused into the jit; the
    # big activations never need a transpose because fc1's weight is
    # pre-permuted offline.  Pass bf16 (halves input bytes).
    x2d = jnp.transpose(x_nchw, (2, 0, 3, 1)).reshape(H * B_pad, W * C)
    x2d = x2d.astype(jnp.bfloat16)

    h_per_step = 4                      # 4 grid steps x 1 MiB wf1 blocks
    n_steps = 16 // h_per_step

    kernel = functools.partial(_dqn_fused_kernel,
                               batch=B_pad, h_per_step=h_per_step)

    grid_spec = pltpu.PrefetchScalarGridSpec(
        num_scalar_prefetch=0,
        grid=(n_steps,),
        in_specs=[
            pl.BlockSpec((H * B_pad, W * C), lambda i: (0, 0)),        # x  (resident)
            pl.BlockSpec((3, 60, 288), lambda i: (0, 0, 0)),           # w1 (resident)
            pl.BlockSpec((1, 288), lambda i: (0, 0)),                  # b1
            pl.BlockSpec((3, 288, 512), lambda i: (0, 0, 0)),          # w2 (resident)
            pl.BlockSpec((1, 512), lambda i: (0, 0)),                  # b2
            pl.BlockSpec((h_per_step, 512, 256), lambda i: (i, 0, 0)), # wf1 (streamed)
            pl.BlockSpec((1, 256), lambda i: (0, 0)),                  # bf1
            pl.BlockSpec((256, 4), lambda i: (0, 0)),                  # wf2
            pl.BlockSpec((1, 4), lambda i: (0, 0)),                    # bf2
        ],
        out_specs=pl.BlockSpec((B_pad, 4), lambda i: (0, 0)),
        scratch_shapes=[
            pltpu.VMEM((16 * B_pad, 512), jnp.bfloat16),   # conv2 output (persists)
            pltpu.VMEM((B_pad, 256), jnp.float32),         # fc1 accumulator
        ],
    )

    flops = (3 * 2 * 18 * B_pad * 60 * 288        # conv1
             + 3 * 2 * 16 * B_pad * 288 * 512     # conv2
             + 2 * B_pad * 16 * 512 * 256         # fc1
             + 2 * B_pad * 256 * 4)               # fc2
    bytes_accessed = (x2d.size * 2
                      + kparams["w1"].size * 2 + kparams["w2"].size * 2
                      + kparams["wf1"].size * 2 + kparams["wf2"].size * 2
                      + (288 + 512 + 256 + 4) * 4
                      + B_pad * 4 * 4)

    out = pl.pallas_call(
        kernel,
        out_shape=jax.ShapeDtypeStruct((B_pad, 4), jnp.float32),
        grid_spec=grid_spec,
        compiler_params=pltpu.CompilerParams(
            dimension_semantics=("arbitrary",),
            vmem_limit_bytes=_vmem_limit_bytes(B_pad, h_per_step)),
        cost_estimate=pl.CostEstimate(
            flops=flops, transcendentals=0, bytes_accessed=bytes_accessed),
    )(x2d, kparams["w1"], kparams["b1"], kparams["w2"], kparams["b2"],
      kparams["wf1"], kparams["bf1"], kparams["wf2"], kparams["bf2"])
    return out[:B]


# --------------------- one-time (offline) weight repacking -------------------
def _expand_conv_weight(w_oihw, w_in):
    """(Cout,Cin,KH,KW) -> (KH, w_in*Cin, w_out*Cout) width-Toeplitz matrix so a
    valid conv becomes  y_row[h] = sum_dh x_row[h+dh] @ big[dh]."""
    w = np.asarray(jax.device_get(w_oihw), np.float32)
    cout, cin, kh, kw = w.shape
    w_out = w_in - kw + 1
    big = np.zeros((kh, w_in * cin, w_out * cout), np.float32)
    for dh in range(kh):
        for dw in range(kw):
            blk = w[:, :, dh, dw].T                       # (cin, cout)
            for ow in range(w_out):
                big[dh, (ow + dw) * cin:(ow + dw + 1) * cin,
                    ow * cout:(ow + 1) * cout] = blk
    return jnp.asarray(big, dtype=jnp.bfloat16)


def prepare_params(params):
    """One-time repack of torch-layout params into the kernel layout (bf16)."""
    f32 = jnp.float32
    # fc1 weight: torch flattens NCHW, i.e. column k = c*256 + h*16 + w.
    # Kernel wants [h, w*32 + c, n]; permute once here, never at runtime.
    wf1 = params["fc1_w"].T.reshape(32, 16, 16, 256)      # (c, h, w, n)
    wf1 = jnp.transpose(wf1, (1, 2, 0, 3)).reshape(16, 512, 256)
    return {
        "w1": _expand_conv_weight(params["conv1_w"], 20),            # (3,60,288)
        "b1": jnp.tile(params["conv1_b"], 18).reshape(1, 288).astype(f32),
        "w2": _expand_conv_weight(params["conv2_w"], 18),            # (3,288,512)
        "b2": jnp.tile(params["conv2_b"], 16).reshape(1, 512).astype(f32),
        "wf1": wf1.astype(jnp.bfloat16),                              # 4 MiB
        "bf1": params["fc1_b"].reshape(1, 256).astype(f32),
        "wf2": params["fc2_w"].T.astype(jnp.bfloat16),                # (256, 4)
        "bf2": params["fc2_b"].reshape(1, 4).astype(f32),
    }


# ------------------------- pure-JAX reference (check) ------------------------
def dqn_forward_ref(params, x_nchw):
    def conv(x, w, b):
        y = jax.lax.conv_general_dilated(
            x, w, window_strides=(1, 1), padding="VALID",
            dimension_numbers=("NCHW", "OIHW", "NCHW"))
        return jax.nn.relu(y + b[None, :, None, None])
    y = conv(x_nchw, params["conv1_w"], params["conv1_b"])
    y = conv(y, params["conv2_w"], params["conv2_b"])
    feat = y.reshape(y.shape[0], -1)
    h = jax.nn.relu(feat @ params["fc1_w"].T + params["fc1_b"])
    return h @ params["fc2_w"].T + params["fc2_b"]


# --------------------------------- params ------------------------------------
def init_params(key):
    ks = jax.random.split(key, 8)

    def u(k, shape, fan_in):
        bound = 1.0 / jnp.sqrt(fan_in)
        return jax.random.uniform(k, shape, jnp.float32, -bound, bound)

    return {
        "conv1_w": u(ks[0], (16, 3, 3, 3), 3 * 3 * 3),
        "conv1_b": u(ks[1], (16,), 3 * 3 * 3),
        "conv2_w": u(ks[2], (32, 16, 3, 3), 16 * 3 * 3),
        "conv2_b": u(ks[3], (32,), 16 * 3 * 3),
        "fc1_w":   u(ks[4], (256, 32 * 16 * 16), 32 * 16 * 16),
        "fc1_b":   u(ks[5], (256,), 32 * 16 * 16),
        "fc2_w":   u(ks[6], (4, 256), 256),
        "fc2_b":   u(ks[7], (4,), 256),
    }


if __name__ == "__main__":
    key = jax.random.PRNGKey(0)
    pkey, xkey = jax.random.split(key)
    params = init_params(pkey)
    kparams = prepare_params(params)          # offline weight repack (bf16)
    # batch=2, NCHW input; spatial 20x20 so conv2 output is 16x16 (fc1 spec).
    x = jax.random.normal(xkey, (2, 3, 20, 20), dtype=jnp.float32)

    out = jax.block_until_ready(jax.jit(dqn_forward)(kparams, x))
    assert out.shape == (2, 4), out.shape

    ref = jax.block_until_ready(jax.jit(dqn_forward_ref)(params, x))
    assert jnp.allclose(out, ref, rtol=1e-2, atol=1e-2), (out, ref)

    print("KERNEL_OK")
</pallas_src>

<mosaic_0001>
module attributes {stable_mosaic.version = 11 : i64} {
  func.func @_dqn_fused_kernel(%arg0: i32, %arg1: memref<320x60xbf16, #tpu.memory_space<vmem>>, %arg2: memref<3x60x288xbf16, #tpu.memory_space<vmem>>, %arg3: memref<1x288xf32, #tpu.memory_space<vmem>>, %arg4: memref<3x288x512xbf16, #tpu.memory_space<vmem>>, %arg5: memref<1x512xf32, #tpu.memory_space<vmem>>, %arg6: memref<4x512x256xbf16, #tpu.memory_space<vmem>>, %arg7: memref<1x256xf32, #tpu.memory_space<vmem>>, %arg8: memref<256x4xbf16, #tpu.memory_space<vmem>>, %arg9: memref<1x4xf32, #tpu.memory_space<vmem>>, %arg10: memref<16x4xf32, #tpu.memory_space<vmem>>, %arg11: memref<256x512xbf16, #tpu.memory_space<vmem>>, %arg12: memref<16x256xf32, #tpu.memory_space<vmem>>) attributes {dimension_semantics = [#tpu.dimension_semantics<arbitrary>], iteration_bounds = array<i64: 4>, scalar_prefetch = 0 : i64, scratch_operands = 2 : i64, tpu.core_type = #tpu.core_type<tc>, window_params = [{pipeline_mode = #tpu.pipeline_mode<synchronous>, transform_indices = @transform_0, window_bounds = array<i64: 320, 60>}, {pipeline_mode = #tpu.pipeline_mode<synchronous>, transform_indices = @transform_1, window_bounds = array<i64: 3, 60, 288>}, {pipeline_mode = #tpu.pipeline_mode<synchronous>, transform_indices = @transform_2, window_bounds = array<i64: 1, 288>}, {pipeline_mode = #tpu.pipeline_mode<synchronous>, transform_indices = @transform_3, window_bounds = array<i64: 3, 288, 512>}, {pipeline_mode = #tpu.pipeline_mode<synchronous>, transform_indices = @transform_4, window_bounds = array<i64: 1, 512>}, {transform_indices = @transform_5, window_bounds = array<i64: 4, 512, 256>}, {pipeline_mode = #tpu.pipeline_mode<synchronous>, transform_indices = @transform_6, window_bounds = array<i64: 1, 256>}, {pipeline_mode = #tpu.pipeline_mode<synchronous>, transform_indices = @transform_7, window_bounds = array<i64: 256, 4>}, {pipeline_mode = #tpu.pipeline_mode<synchronous>, transform_indices = @transform_8, window_bounds = array<i64: 1, 4>}, {pipeline_mode = #tpu.pipeline_mode<synchronous>, transform_indices = @transform_9, window_bounds = array<i64: 16, 4>}]} {
    %c0_i32 = arith.constant 0 : i32
    %0 = arith.cmpi eq, %arg0, %c0_i32 : i32
    %1 = arith.extui %0 : i1 to i32
    %c0_i32_0 = arith.constant 0 : i32
    %2 = arith.cmpi ne, %1, %c0_i32_0 : i32
    scf.if %2 {
      %c0_29 = arith.constant 0 : index
      %c0_30 = arith.constant 0 : index
      %51 = vector.load %arg1[%c0_29, %c0_30] : memref<320x60xbf16, #tpu.memory_space<vmem>>, vector<288x60xbf16>
      %c0_31 = arith.constant 0 : index
      %c0_32 = arith.constant 0 : index
      %c0_33 = arith.constant 0 : index
      %52 = vector.load %arg2[%c0_31, %c0_32, %c0_33] : memref<3x60x288xbf16, #tpu.memory_space<vmem>>, vector<1x60x288xbf16>
      %53 = vector.shape_cast %52 : vector<1x60x288xbf16> to vector<60x288xbf16>
      %cst_34 = arith.constant dense<0.000000e+00> : vector<288x288xf32>
      %54 = tpu.matmul %51, %53, %cst_34 {dimension_numbers = #tpu.dot_dimension_numbers<[1], [0], [0], [1], [0, 0, 1, 1], [], []>} : vector<288x60xbf16>, vector<60x288xbf16>, vector<288x288xf32> -> vector<288x288xf32>
      %c16 = arith.constant 16 : index
      %c0_35 = arith.constant 0 : index
      %55 = vector.load %arg1[%c16, %c0_35] : memref<320x60xbf16, #tpu.memory_space<vmem>>, vector<288x60xbf16>
      %c1_36 = arith.constant 1 : index
      %c0_37 = arith.constant 0 : index
      %c0_38 = arith.constant 0 : index
      %56 = vector.load %arg2[%c1_36, %c0_37, %c0_38] : memref<3x60x288xbf16, #tpu.memory_space<vmem>>, vector<1x60x288xbf16>
      %57 = vector.shape_cast %56 : vector<1x60x288xbf16> to vector<60x288xbf16>
      %cst_39 = arith.constant dense<0.000000e+00> : vector<288x288xf32>
      %58 = tpu.matmul %55, %57, %cst_39 {dimension_numbers = #tpu.dot_dimension_numbers<[1], [0], [0], [1], [0, 0, 1, 1], [], []>} : vector<288x60xbf16>, vector<60x288xbf16>, vector<288x288xf32> -> vector<288x288xf32>
      %59 = arith.addf %54, %58 : vector<288x288xf32>
      %c32 = arith.constant 32 : index
      %c0_40 = arith.constant 0 : index
      %60 = vector.load %arg1[%c32, %c0_40] : memref<320x60xbf16, #tpu.memory_space<vmem>>, vector<288x60xbf16>
      %c2_41 = arith.constant 2 : index
      %c0_42 = arith.constant 0 : index
      %c0_43 = arith.constant 0 : index
      %61 = vector.load %arg2[%c2_41, %c0_42, %c0_43] : memref<3x60x288xbf16, #tpu.memory_space<vmem>>, vector<1x60x288xbf16>
      %62 = vector.shape_cast %61 : vector<1x60x288xbf16> to vector<60x288xbf16>
      %cst_44 = arith.constant dense<0.000000e+00> : vector<288x288xf32>
      %63 = tpu.matmul %60, %62, %cst_44 {dimension_numbers = #tpu.dot_dimension_numbers<[1], [0], [0], [1], [0, 0, 1, 1], [], []>} : vector<288x60xbf16>, vector<60x288xbf16>, vector<288x288xf32> -> vector<288x288xf32>
      %64 = arith.addf %59, %63 : vector<288x288xf32>
      %c0_45 = arith.constant 0 : index
      %c0_46 = arith.constant 0 : index
      %65 = vector.load %arg3[%c0_45, %c0_46] : memref<1x288xf32, #tpu.memory_space<vmem>>, vector<1x288xf32>
      %66 = vector.broadcast %65 : vector<1x288xf32> to vector<288x288xf32>
      %67 = arith.addf %64, %66 : vector<288x288xf32>
      %cst_47 = arith.constant 0.000000e+00 : f32
      %68 = vector.broadcast %cst_47 : f32 to vector<288x288xf32>
      %69 = arith.maximumf %67, %68 : vector<288x288xf32>
      %70 = arith.truncf %69 : vector<288x288xf32> to vector<288x288xbf16>
      %71 = vector.extract_strided_slice %70 {offsets = [0, 0], sizes = [256, 288], strides = [1, 1]} : vector<288x288xbf16> to vector<256x288xbf16>
      %c0_48 = arith.constant 0 : index
      %c0_49 = arith.constant 0 : index
      %c0_50 = arith.constant 0 : index
      %72 = vector.load %arg4[%c0_48, %c0_49, %c0_50] : memref<3x288x512xbf16, #tpu.memory_space<vmem>>, vector<1x288x512xbf16>
      %73 = vector.shape_cast %72 : vector<1x288x512xbf16> to vector<288x512xbf16>
      %cst_51 = arith.constant dense<0.000000e+00> : vector<256x512xf32>
      %74 = tpu.matmul %71, %73, %cst_51 {dimension_numbers = #tpu.dot_dimension_numbers<[1], [0], [0], [1], [0, 0, 1, 1], [], []>} : vector<256x288xbf16>, vector<288x512xbf16>, vector<256x512xf32> -> vector<256x512xf32>
      %75 = vector.extract_strided_slice %70 {offsets = [16, 0], sizes = [256, 288], strides = [1, 1]} : vector<288x288xbf16> to vector<256x288xbf16>
      %c1_52 = arith.constant 1 : index
      %c0_53 = arith.constant 0 : index
      %c0_54 = arith.constant 0 : index
      %76 = vector.load %arg4[%c1_52, %c0_53, %c0_54] : memref<3x288x512xbf16, #tpu.memory_space<vmem>>, vector<1x288x512xbf16>
      %77 = vector.shape_cast %76 : vector<1x288x512xbf16> to vector<288x512xbf16>
      %cst_55 = arith.constant dense<0.000000e+00> : vector<256x512xf32>
      %78 = tpu.matmul %75, %77, %cst_55 {dimension_numbers = #tpu.dot_dimension_numbers<[1], [0], [0], [1], [0, 0, 1, 1], [], []>} : vector<256x288xbf16>, vector<288x512xbf16>, vector<256x512xf32> -> vector<256x512xf32>
      %79 = arith.addf %74, %78 : vector<256x512xf32>
      %80 = vector.extract_strided_slice %70 {offsets = [32, 0], sizes = [256, 288], strides = [1, 1]} : vector<288x288xbf16> to vector<256x288xbf16>
      %c2_56 = arith.constant 2 : index
      %c0_57 = arith.constant 0 : index
      %c0_58 = arith.constant 0 : index
      %81 = vector.load %arg4[%c2_56, %c0_57, %c0_58] : memref<3x288x512xbf16, #tpu.memory_space<vmem>>, vector<1x288x512xbf16>
      %82 = vector.shape_cast %81 : vector<1x288x512xbf16> to vector<288x512xbf16>
      %cst_59 = arith.constant dense<0.000000e+00> : vector<256x512xf32>
      %83 = tpu.matmul %80, %82, %cst_59 {dimension_numbers = #tpu.dot_dimension_numbers<[1], [0], [0], [1], [0, 0, 1, 1], [], []>} : vector<256x288xbf16>, vector<288x512xbf16>, vector<256x512xf32> -> vector<256x512xf32>
      %84 = arith.addf %79, %83 : vector<256x512xf32>
      %c0_60 = arith.constant 0 : index
      %c0_61 = arith.constant 0 : index
      %85 = vector.load %arg5[%c0_60, %c0_61] : memref<1x512xf32, #tpu.memory_space<vmem>>, vector<1x512xf32>
      %86 = vector.broadcast %85 : vector<1x512xf32> to vector<256x512xf32>
      %87 = arith.addf %84, %86 : vector<256x512xf32>
      %cst_62 = arith.constant 0.000000e+00 : f32
      %88 = vector.broadcast %cst_62 : f32 to vector<256x512xf32>
      %89 = arith.maximumf %87, %88 : vector<256x512xf32>
      %90 = arith.truncf %89 : vector<256x512xf32> to vector<256x512xbf16>
      %c0_63 = arith.constant 0 : index
      %c0_64 = arith.constant 0 : index
      %91 = vector.load %arg11[%c0_63, %c0_64] : memref<256x512xbf16, #tpu.memory_space<vmem>>, vector<256x512xbf16>
      tpu.vector_store %arg11[%c0_63, %c0_64], %90 {strides = array<i32>} : memref<256x512xbf16, #tpu.memory_space<vmem>>, vector<256x512xbf16>,
    } else {
    }
    %c4_i32 = arith.constant 4 : i32
    %3 = arith.muli %arg0, %c4_i32 : i32
    %c0_i32_1 = arith.constant 0 : i32
    %4 = arith.addi %3, %c0_i32_1 : i32
    %c16_i32 = arith.constant 16 : i32
    %5 = arith.muli %4, %c16_i32 : i32
    %6 = tpu.assume_multiple %5, 16 : i32
    %7 = arith.index_cast %6 : i32 to index
    %c0 = arith.constant 0 : index
    %8 = vector.load %arg11[%7, %c0] : memref<256x512xbf16, #tpu.memory_space<vmem>>, vector<16x512xbf16>
    %c0_2 = arith.constant 0 : index
    %c0_3 = arith.constant 0 : index
    %c0_4 = arith.constant 0 : index
    %9 = vector.load %arg6[%c0_2, %c0_3, %c0_4] : memref<4x512x256xbf16, #tpu.memory_space<vmem>>, vector<1x512x256xbf16>
    %10 = vector.shape_cast %9 : vector<1x512x256xbf16> to vector<512x256xbf16>
    %cst = arith.constant dense<0.000000e+00> : vector<16x256xf32>
    %11 = tpu.matmul %8, %10, %cst {dimension_numbers = #tpu.dot_dimension_numbers<[1], [0], [0], [1], [0, 0, 1, 1], [], []>} : vector<16x512xbf16>, vector<512x256xbf16>, vector<16x256xf32> -> vector<16x256xf32>
    %c4_i32_5 = arith.constant 4 : i32
    %12 = arith.muli %arg0, %c4_i32_5 : i32
    %c1_i32 = arith.constant 1 : i32
    %13 = arith.addi %12, %c1_i32 : i32
    %c16_i32_6 = arith.constant 16 : i32
    %14 = arith.muli %13, %c16_i32_6 : i32
    %15 = tpu.assume_multiple %14, 16 : i32
    %16 = arith.index_cast %15 : i32 to index
    %c0_7 = arith.constant 0 : index
    %17 = vector.load %arg11[%16, %c0_7] : memref<256x512xbf16, #tpu.memory_space<vmem>>, vector<16x512xbf16>
    %c1 = arith.constant 1 : index
    %c0_8 = arith.constant 0 : index
    %c0_9 = arith.constant 0 : index
    %18 = vector.load %arg6[%c1, %c0_8, %c0_9] : memref<4x512x256xbf16, #tpu.memory_space<vmem>>, vector<1x512x256xbf16>
    %19 = vector.shape_cast %18 : vector<1x512x256xbf16> to vector<512x256xbf16>
    %cst_10 = arith.constant dense<0.000000e+00> : vector<16x256xf32>
    %20 = tpu.matmul %17, %19, %cst_10 {dimension_numbers = #tpu.dot_dimension_numbers<[1], [0], [0], [1], [0, 0, 1, 1], [], []>} : vector<16x512xbf16>, vector<512x256xbf16>, vector<16x256xf32> -> vector<16x256xf32>
    %21 = arith.addf %11, %20 : vector<16x256xf32>
    %c4_i32_11 = arith.constant 4 : i32
    %22 = arith.muli %arg0, %c4_i32_11 : i32
    %c2_i32 = arith.constant 2 : i32
    %23 = arith.addi %22, %c2_i32 : i32
    %c16_i32_12 = arith.constant 16 : i32
    %24 = arith.muli %23, %c16_i32_12 : i32
    %25 = tpu.assume_multiple %24, 16 : i32
    %26 = arith.index_cast %25 : i32 to index
    %c0_13 = arith.constant 0 : index
    %27 = vector.load %arg11[%26, %c0_13] : memref<256x512xbf16, #tpu.memory_space<vmem>>, vector<16x512xbf16>
    %c2 = arith.constant 2 : index
    %c0_14 = arith.constant 0 : index
    %c0_15 = arith.constant 0 : index
    %28 = vector.load %arg6[%c2, %c0_14, %c0_15] : memref<4x512x256xbf16, #tpu.memory_space<vmem>>, vector<1x512x256xbf16>
    %29 = vector.shape_cast %28 : vector<1x512x256xbf16> to vector<512x256xbf16>
    %cst_16 = arith.constant dense<0.000000e+00> : vector<16x256xf32>
    %30 = tpu.matmul %27, %29, %cst_16 {dimension_numbers = #tpu.dot_dimension_numbers<[1], [0], [0], [1], [0, 0, 1, 1], [], []>} : vector<16x512xbf16>, vector<512x256xbf16>, vector<16x256xf32> -> vector<16x256xf32>
    %31 = arith.addf %21, %30 : vector<16x256xf32>
    %c4_i32_17 = arith.constant 4 : i32
    %32 = arith.muli %arg0, %c4_i32_17 : i32
    %c3_i32 = arith.constant 3 : i32
    %33 = arith.addi %32, %c3_i32 : i32
    %c16_i32_18 = arith.constant 16 : i32
    %34 = arith.muli %33, %c16_i32_18 : i32
    %35 = tpu.assume_multiple %34, 16 : i32
    %36 = arith.index_cast %35 : i32 to index
    %c0_19 = arith.constant 0 : index
    %37 = vector.load %arg11[%36, %c0_19] : memref<256x512xbf16, #tpu.memory_space<vmem>>, vector<16x512xbf16>
    %c3 = arith.constant 3 : index
    %c0_20 = arith.constant 0 : index
    %c0_21 = arith.constant 0 : index
    %38 = vector.load %arg6[%c3, %c0_20, %c0_21] : memref<4x512x256xbf16, #tpu.memory_space<vmem>>, vector<1x512x256xbf16>
    %39 = vector.shape_cast %38 : vector<1x512x256xbf16> to vector<512x256xbf16>
    %cst_22 = arith.constant dense<0.000000e+00> : vector<16x256xf32>
    %40 = tpu.matmul %37, %39, %cst_22 {dimension_numbers = #tpu.dot_dimension_numbers<[1], [0], [0], [1], [0, 0, 1, 1], [], []>} : vector<16x512xbf16>, vector<512x256xbf16>, vector<16x256xf32> -> vector<16x256xf32>
    %41 = arith.addf %31, %40 : vector<16x256xf32>
    %c0_i32_23 = arith.constant 0 : i32
    %42 = arith.cmpi eq, %arg0, %c0_i32_23 : i32
    %43 = arith.extui %42 : i1 to i32
    %c0_i32_24 = arith.constant 0 : i32
    %44 = arith.cmpi ne, %43, %c0_i32_24 : i32
    scf.if %44 {
      %c0_29 = arith.constant 0 : index
      %c0_30 = arith.constant 0 : index
      %51 = vector.load %arg12[%c0_29, %c0_30] : memref<16x256xf32, #tpu.memory_space<vmem>>, vector<16x256xf32>
      tpu.vector_store %arg12[%c0_29, %c0_30], %41 {strides = array<i32>} : memref<16x256xf32, #tpu.memory_space<vmem>>, vector<16x256xf32>,
    } else {
    }
    %c0_i32_25 = arith.constant 0 : i32
    %45 = arith.cmpi ne, %arg0, %c0_i32_25 : i32
    %46 = arith.extui %45 : i1 to i32
    %c0_i32_26 = arith.constant 0 : i32
    %47 = arith.cmpi ne, %46, %c0_i32_26 : i32
    scf.if %47 {
      %c0_29 = arith.constant 0 : index
      %c0_30 = arith.constant 0 : index
      %51 = vector.load %arg12[%c0_29, %c0_30] : memref<16x256xf32, #tpu.memory_space<vmem>>, vector<16x256xf32>
      %52 = arith.addf %51, %41 : vector<16x256xf32>
      %c0_31 = arith.constant 0 : index
      %c0_32 = arith.constant 0 : index
      %53 = vector.load %arg12[%c0_31, %c0_32] : memref<16x256xf32, #tpu.memory_space<vmem>>, vector<16x256xf32>
      tpu.vector_store %arg12[%c0_31, %c0_32], %52 {strides = array<i32>} : memref<16x256xf32, #tpu.memory_space<vmem>>, vector<16x256xf32>,
    } else {
    }
    %c3_i32_27 = arith.constant 3 : i32
    %48 = arith.cmpi eq, %arg0, %c3_i32_27 : i32
    %49 = arith.extui %48 : i1 to i32
    %c0_i32_28 = arith.constant 0 : i32
    %50 = arith.cmpi ne, %49, %c0_i32_28 : i32
    scf.if %50 {
      %c0_29 = arith.constant 0 : index
      %c0_30 = arith.constant 0 : index
      %51 = vector.load %arg12[%c0_29, %c0_30] : memref<16x256xf32, #tpu.memory_space<vmem>>, vector<16x256xf32>
      %c0_31 = arith.constant 0 : index
      %c0_32 = arith.constant 0 : index
      %52 = vector.load %arg7[%c0_31, %c0_32] : memref<1x256xf32, #tpu.memory_space<vmem>>, vector<1x256xf32>
      %53 = vector.broadcast %52 : vector<1x256xf32> to vector<16x256xf32>
      %54 = arith.addf %51, %53 : vector<16x256xf32>
      %cst_33 = arith.constant 0.000000e+00 : f32
      %55 = vector.broadcast %cst_33 : f32 to vector<16x256xf32>
      %56 = arith.maximumf %54, %55 : vector<16x256xf32>
      %57 = arith.truncf %56 : vector<16x256xf32> to vector<16x256xbf16>
      %c0_34 = arith.constant 0 : index
      %c0_35 = arith.constant 0 : index
      %58 = vector.load %arg8[%c0_34, %c0_35] : memref<256x4xbf16, #tpu.memory_space<vmem>>, vector<256x4xbf16>
      %cst_36 = arith.constant dense<0.000000e+00> : vector<16x4xf32>
      %59 = tpu.matmul %57, %58, %cst_36 {dimension_numbers = #tpu.dot_dimension_numbers<[1], [0], [0], [1], [0, 0, 1, 1], [], []>} : vector<16x256xbf16>, vector<256x4xbf16>, vector<16x4xf32> -> vector<16x4xf32>
      %c0_37 = arith.constant 0 : index
      %c0_38 = arith.constant 0 : index
      %60 = vector.load %arg9[%c0_37, %c0_38] : memref<1x4xf32, #tpu.memory_space<vmem>>, vector<1x4xf32>
      %61 = vector.broadcast %60 : vector<1x4xf32> to vector<16x4xf32>
      %62 = arith.addf %59, %61 : vector<16x4xf32>
      %c0_39 = arith.constant 0 : index
      %c0_40 = arith.constant 0 : index
      %63 = vector.load %arg10[%c0_39, %c0_40] : memref<16x4xf32, #tpu.memory_space<vmem>>, vector<16x4xf32>
      tpu.vector_store %arg10[%c0_39, %c0_40], %62 {strides = array<i32>} : memref<16x4xf32, #tpu.memory_space<vmem>>, vector<16x4xf32>,
    } else {
    }
    return
  }
  func.func @transform_0(%arg0: i32) -> (i32, i32) {
    %c0_i32 = arith.constant 0 : i32
    %c0_i32_0 = arith.constant 0 : i32
    %c0_i32_1 = arith.constant 0 : i32
    return %c0_i32, %c0_i32_0 : i32, i32
  }
  func.func @transform_1(%arg0: i32) -> (i32, i32, i32) {
    %c0_i32 = arith.constant 0 : i32
    %c0_i32_0 = arith.constant 0 : i32
    %c0_i32_1 = arith.constant 0 : i32
    %c0_i32_2 = arith.constant 0 : i32
    return %c0_i32, %c0_i32_0, %c0_i32_1 : i32, i32, i32
  }
  func.func @transform_2(%arg0: i32) -> (i32, i32) {
    %c0_i32 = arith.constant 0 : i32
    %c0_i32_0 = arith.constant 0 : i32
    %c0_i32_1 = arith.constant 0 : i32
    return %c0_i32, %c0_i32_0 : i32, i32
  }
  func.func @transform_3(%arg0: i32) -> (i32, i32, i32) {
    %c0_i32 = arith.constant 0 : i32
    %c0_i32_0 = arith.constant 0 : i32
    %c0_i32_1 = arith.constant 0 : i32
    %c0_i32_2 = arith.constant 0 : i32
    return %c0_i32, %c0_i32_0, %c0_i32_1 : i32, i32, i32
  }
  func.func @transform_4(%arg0: i32) -> (i32, i32) {
    %c0_i32 = arith.constant 0 : i32
    %c0_i32_0 = arith.constant 0 : i32
    %c0_i32_1 = arith.constant 0 : i32
    return %c0_i32, %c0_i32_0 : i32, i32
  }
  func.func @transform_5(%arg0: i32) -> (i32, i32, i32) {
    %c0_i32 = arith.constant 0 : i32
    %c0_i32_0 = arith.constant 0 : i32
    %c0_i32_1 = arith.constant 0 : i32
    return %arg0, %c0_i32, %c0_i32_0 : i32, i32, i32
  }
  func.func @transform_6(%arg0: i32) -> (i32, i32) {
    %c0_i32 = arith.constant 0 : i32
    %c0_i32_0 = arith.constant 0 : i32
    %c0_i32_1 = arith.constant 0 : i32
    return %c0_i32, %c0_i32_0 : i32, i32
  }
  func.func @transform_7(%arg0: i32) -> (i32, i32) {
    %c0_i32 = arith.constant 0 : i32
    %c0_i32_0 = arith.constant 0 : i32
    %c0_i32_1 = arith.constant 0 : i32
    return %c0_i32, %c0_i32_0 : i32, i32
  }
  func.func @transform_8(%arg0: i32) -> (i32, i32) {
    %c0_i32 = arith.constant 0 : i32
    %c0_i32_0 = arith.constant 0 : i32
    %c0_i32_1 = arith.constant 0 : i32
    return %c0_i32, %c0_i32_0 : i32, i32
  }
  func.func @transform_9(%arg0: i32) -> (i32, i32) {
    %c0_i32 = arith.constant 0 : i32
    %c0_i32_0 = arith.constant 0 : i32
    %c0_i32_1 = arith.constant 0 : i32
    return %c0_i32, %c0_i32_0 : i32, i32
  }
}

</mosaic_0001>

<bundles_post_ra>
// kernel: dqn_forward.1
= control target key start
LH: loop header
LB: loop body
LE: loop exit
PB: predicated region body
PF: predicated region fallthrough
CT: control target
= control target key end

     0   :  { %s14529_s0 = inlined_call_operand.vmem [shape: bf16[320,60], index: 0, kind: input, shape index: {}]   ;;  %s14530_s1 = inlined_call_operand.hbm [shape: bf16[3,60,288], index: 1, kind: input, shape index: {}]   ;;  %s14531_s2 = inlined_call_operand.hbm [shape: f32[1,288], index: 2, kind: input, shape index: {}]   ;;  %s14532_s3 = inlined_call_operand.hbm [shape: bf16[3,288,512], index: 3, kind: input, shape index: {}]   ;;  %s14533_s4 = inlined_call_operand.hbm [shape: f32[1,512], index: 4, kind: input, shape index: {}]   ;;  %s14534_s5 = inlined_call_operand.hbm [shape: bf16[16,512,256], index: 5, kind: input, shape index: {}]   ;;  %s14535_s6 = inlined_call_operand.hbm [shape: f32[1,256], index: 6, kind: input, shape index: {}]   ;;  %s14536_s7 = inlined_call_operand.vmem [shape: bf16[256,4], index: 7, kind: input, shape index: {}]   ;;  %s14537_s8 = inlined_call_operand.hbm [shape: f32[1,4], index: 8, kind: input, shape index: {}]   ;;  %s14538_s9 = inlined_call_operand.vmem [shape: f32[16,4], index: 9, kind: output, shape index: {}]  }
   0x1   :  { %14566 = sst [smem:[#allocation40_spill]] %s14530_s1 }
   0x2   :  { %14567 = sst [smem:[#allocation41_spill]] %s14531_s2 }
   0x3   :  { %14568 = sst [smem:[#allocation42_spill]] %s14538_s9 }
   0x4   :  { %14 = vsyncpa [#allocation5], 0 }
   0x5   :  { %15 = vsyncpa [#allocation7], 0 }
   0x6   :  { %16 = vsyncpa [#allocation10], 0  ;;  %s12457_s30 = smov 0   ;;  %s12459_s10 = smov 0  }
   0x7   :  { %s12461_s11 = smov 0   ;;  %s12463_s12 = smov 0  }
   0x8 LB: > { %s12393_s13 = smov [#allocation6]   ;;  %s12478_s15 = sadd.s32 4294967295, %s12391_s12   ;;  %s12391_s12 = sphi %s12463_s12, %s14647_s12   ;;  %s12387_s11 = sphi %s12461_s11, %s14646_s11   ;;  %s12383_s10 = sphi %s12459_s10, %s14645_s10   ;;  %s12379_s30 = sphi %s12457_s30, %s14644_s30  }
   0x9   : > { %s271_s14 = sshll.u32 %s12393_s13, 4  ;;  %p9092_p0 = scmp.ge.s32.totalorder %s12391_s12, 1  ;;  %s272_s14 = int_to_ptr.vmem [resolvable:$true] %s271_s14 }
   0xa   : > { %p14539_p1 = scmp.eq.s32.totalorder %s12478_s15, 0  ;;  %p242_p2 = scmp.lt.s32.totalorder %s12391_s12, 5 }
   0xb   : > { %s12394_s17 = smov [#allocation4]   ;;  %s12395_s20 = smov [#allocation8]  }
   0xc   : > { %p12484_p4 = pnand %p9092_p0, %p242_p2  ;;  %s257_s18 = sshll.u32 %s12394_s17, 4  ;;  %s12490_s18 = int_to_ptr.vmem [resolvable:$true] %s257_s18 }
   0xd   : > { %s281_s21 = sshll.u32 %s12395_s20, 4  ;;  %s14571_s2 = sld [smem:[#allocation41_spill]]  ;;  %s12498_s21 = int_to_ptr.vmem [resolvable:$true] %s281_s21 }
   0xe   : > { %s14569_s16 = scalar_select %p12484_p4, 1, 0 }
   0xf   : > { %p11248_p5 = pneg %p12484_p4 }
  0x11   : > { %p12494_p6 = pnand %p11248_p5, %p14539_p1 }
  0x13   : > { %s12139_s24 = scalar_lea.hbm %s14571_s2, 48  ;;  %p12508_p8 = pneg %p12494_p6 }
  0x14   : > { %p12140_p7 = scmp.ne.s32.totalorder %s14571_s2, %s12139_s24  ;;  %p12146_p11 = scmp.lt.u32.totalorder %s12139_s24, %s14571_s2 }
  0x16   : > { %p12142_p9 = pnand %p12508_p8, %p12140_p7 }
  0x18   : > { %p12143_p10 = pneg %p12142_p9 }
  0x1a   : > { %p12148_p12 = pnand %p12146_p11, %p12143_p10 }
  0x1c   : > { %12151 = shalt.err (!%p12148_p12)
}
  0x1d   : > { %s12152_s13 = scalar_lea.vmem %s272_s14, 48  ;;  %s12159_s17 = scalar_lea.vmem %s272_s14, 64 }
  0x1e   : > { %p12153_p13 = scmp.ne.s32.totalorder %s272_s14, %s12152_s13  ;;  %p12160_p5 = scmp.lt.s32.totalorder %s272_s14, %s272_s14 }
  0x1f   : > { %p12161_p3 = scmp.lt.s32.totalorder %s12159_s17, %s12152_s13 }
  0x20   : > { %p12155_p0 = pnand %p12153_p13, %p12508_p8 }
  0x21   : > { %p12162_p1 = por %p12161_p3, %p12160_p5 }
  0x22   : > { %p12156_p2 = pneg %p12155_p0 }
  0x24   : > { %p12163_p4 = pnand %p12162_p1, %p12156_p2 }
  0x26   : > { %12166 = shalt.err (!%p12163_p4)
}
  0x27   : > { %11254 = dma.hbm_to_vmem [thread:$0]  (!%p12494_p6), %s14571_s2, 48, %s272_s14, [#allocation7]  }
  0x28   : > { %s14573_s1 = sld [smem:[#allocation40_spill]] }
  0x2e   : > { %s12167_s25 = scalar_lea.hbm %s14573_s1, 4608 }
  0x2f   : > { %p12168_p7 = scmp.ne.s32.totalorder %s14573_s1, %s12167_s25  ;;  %p12174_p1 = scmp.lt.u32.totalorder %s12167_s25, %s14573_s1 }
  0x31   : > { %p12170_p9 = pnand %p12168_p7, %p12508_p8 }
  0x33   : > { %p12171_p3 = pneg %p12170_p9 }
  0x35   : > { %p12176_p4 = pnand %p12174_p1, %p12171_p3 }
  0x37   : > { %12179 = shalt.err (!%p12176_p4)
}
  0x38   : > { %s12180_s14 = scalar_lea.vmem %s12490_s18, 4608  ;;  %p12188_p13 = scmp.lt.s32.totalorder %s12490_s18, %s12490_s18 }
  0x39   : > { %p12181_p10 = scmp.ne.s32.totalorder %s12490_s18, %s12180_s14  ;;  %p12189_p0 = scmp.lt.s32.totalorder %s12180_s14, %s12180_s14 }
  0x3b   : > { %p12183_p11 = pnand %p12181_p10, %p12508_p8  ;;  %p12190_p2 = por %p12189_p0, %p12188_p13 }
  0x3d   : > { %p12184_p12 = pneg %p12183_p11 }
  0x3f   : > { %p12191_p5 = pnand %p12190_p2, %p12184_p12 }
  0x41   : > { %12194 = shalt.err (!%p12191_p5)
}
  0x42   : > { %s12396_s17 = smov 192   ;;  %s12397_s20 = smov 12  }
  0x43   : > { %11251 = dma.hbm_to_vmem [thread:$0]  (!%p12494_p6), %s14573_s1, 4608, %s12490_s18, [#allocation5], %s12396_s17, %s12396_s17, %s12397_s20  }
  0x44   : > { %s12195_s26 = scalar_lea.hbm %s14532_s3, 27648 }
  0x45   : > { %p12196_p7 = scmp.ne.s32.totalorder %s14532_s3, %s12195_s26  ;;  %p12202_p1 = scmp.lt.u32.totalorder %s12195_s26, %s14532_s3 }
  0x47   : > { %p12198_p9 = pnand %p12196_p7, %p12508_p8 }
  0x49   : > { %p12199_p3 = pneg %p12198_p9 }
  0x4b   : > { %p12204_p4 = pnand %p12202_p1, %p12199_p3 }
  0x4d   : > { %12207 = shalt.err (!%p12204_p4)
}
  0x4e   : > { %s12208_s18 = scalar_lea.vmem %s12498_s21, 27648  ;;  %p12216_p13 = scmp.lt.s32.totalorder %s12498_s21, %s12498_s21 }
  0x4f   : > { %p12209_p10 = scmp.ne.s32.totalorder %s12498_s21, %s12208_s18  ;;  %p12217_p0 = scmp.lt.s32.totalorder %s12208_s18, %s12208_s18 }
  0x51   : > { %p12211_p11 = pnand %p12209_p10, %p12508_p8  ;;  %p12218_p2 = por %p12217_p0, %p12216_p13 }
  0x53   : > { %p12212_p12 = pneg %p12211_p11 }
  0x55   : > { %p12219_p5 = pnand %p12218_p2, %p12212_p12 }
  0x57   : > { %12222 = shalt.err (!%p12219_p5)
}
  0x58   : > { %s12398_s17 = smov 256   ;;  %s12399_s20 = smov 16  }
  0x59   : > { %11257 = dma.hbm_to_vmem [thread:$0]  (!%p12494_p6), %s14532_s3, 27648, %s12498_s21, [#allocation7], %s12398_s17, %s12398_s17, %s12399_s20  }
  0x5a   : > { %s12400_s24 = smov [#allocation9]   ;;  %s12401_s26 = smov [#allocation12]  }
  0x5b   : > { %s295_s25 = sshll.u32 %s12400_s24, 4  ;;  %s306_s28 = sshll.u32 %s12401_s26, 4  ;;  %s296_s25 = int_to_ptr.vmem [resolvable:$true] %s295_s25  ;;  %s307_s28 = int_to_ptr.vmem [resolvable:$true] %s306_s28 }
  0x5c   : > { %s12223_s14 = scalar_lea.hbm %s14533_s4, 64 }
  0x5d   : > { %p12224_p7 = scmp.ne.s32.totalorder %s14533_s4, %s12223_s14  ;;  %p12230_p1 = scmp.lt.u32.totalorder %s12223_s14, %s14533_s4 }
  0x5f   : > { %p12226_p9 = pnand %p12224_p7, %p12508_p8 }
  0x61   : > { %p12227_p3 = pneg %p12226_p9 }
  0x63   : > { %p12232_p4 = pnand %p12230_p1, %p12227_p3 }
  0x65   : > { %12235 = shalt.err (!%p12232_p4)
}
  0x66   : > { %s12236_s21 = scalar_lea.vmem %s296_s25, 64  ;;  %p12244_p13 = scmp.lt.s32.totalorder %s296_s25, %s296_s25 }
  0x67   : > { %p12237_p10 = scmp.ne.s32.totalorder %s296_s25, %s12236_s21  ;;  %p12245_p0 = scmp.lt.s32.totalorder %s12236_s21, %s12236_s21 }
  0x69   : > { %p12239_p11 = pnand %p12237_p10, %p12508_p8  ;;  %p12246_p2 = por %p12245_p0, %p12244_p13 }
  0x6b   : > { %p12240_p12 = pneg %p12239_p11 }
  0x6d   : > { %p12247_p5 = pnand %p12246_p2, %p12240_p12 }
  0x6f   : > { %12250 = shalt.err (!%p12247_p5)
}
  0x70   : > { %11260 = dma.hbm_to_vmem [thread:$0]  (!%p12494_p6), %s14533_s4, 64, %s296_s25, [#allocation10]  }
  0x71   : > { %s12251_s20 = scalar_lea.hbm %s14535_s6, 32 }
  0x72   : > { %p12252_p7 = scmp.ne.s32.totalorder %s14535_s6, %s12251_s20  ;;  %p12258_p1 = scmp.lt.u32.totalorder %s12251_s20, %s14535_s6 }
  0x74   : > { %p12254_p9 = pnand %p12252_p7, %p12508_p8 }
  0x76   : > { %p12255_p3 = pneg %p12254_p9 }
  0x78   : > { %p12260_p4 = pnand %p12258_p1, %p12255_p3 }
  0x7a   : > { %12263 = shalt.err (!%p12260_p4)
}
  0x7b   : > { %s12264_s29 = scalar_lea.vmem %s307_s28, 32  ;;  %p12272_p13 = scmp.lt.s32.totalorder %s307_s28, %s307_s28 }
  0x7c   : > { %p12265_p10 = scmp.ne.s32.totalorder %s307_s28, %s12264_s29  ;;  %p12273_p0 = scmp.lt.s32.totalorder %s12264_s29, %s12264_s29 }
  0x7e   : > { %p12267_p11 = pnand %p12265_p10, %p12508_p8  ;;  %p12274_p2 = por %p12273_p0, %p12272_p13 }
  0x80   : > { %p12268_p12 = pneg %p12267_p11 }
  0x82   : > { %p12275_p5 = pnand %p12274_p2, %p12268_p12 }
  0x84   : > { %12278 = shalt.err (!%p12275_p5)
}
  0x85   : > { %11263 = dma.hbm_to_vmem [thread:$0]  (!%p12494_p6), %s14535_s6, 32, %s307_s28, [#allocation7]  }
  0x86   : > { %s12402_s14 = smov [#allocation13]   ;;  %s12279_s17 = scalar_lea.hbm %s14537_s8, 16 }
  0x87   : > { %s320_s18 = sshll.u32 %s12402_s14, 4  ;;  %p12280_p7 = scmp.ne.s32.totalorder %s14537_s8, %s12279_s17  ;;  %s321_s18 = int_to_ptr.vmem [resolvable:$true] %s320_s18 }
  0x88   : > { %p12286_p1 = scmp.lt.u32.totalorder %s12279_s17, %s14537_s8 }
  0x89   : > { %p12282_p9 = pnand %p12280_p7, %p12508_p8 }
  0x8b   : > { %p12283_p3 = pneg %p12282_p9 }
  0x8d   : > { %p12288_p4 = pnand %p12286_p1, %p12283_p3 }
  0x8f   : > { %12291 = shalt.err (!%p12288_p4)
}
  0x90   : > { %s12292_s28 = scalar_lea.vmem %s321_s18, 16  ;;  %s12299_s23 = scalar_lea.vmem %s321_s18, 32 }
  0x91   : > { %p12293_p10 = scmp.ne.s32.totalorder %s321_s18, %s12292_s28  ;;  %p12300_p13 = scmp.lt.s32.totalorder %s321_s18, %s321_s18 }
  0x92   : > { %p12301_p0 = scmp.lt.s32.totalorder %s12299_s23, %s12292_s28 }
  0x93   : > { %p12295_p11 = pnand %p12293_p10, %p12508_p8 }
  0x94   : > { %p12302_p2 = por %p12301_p0, %p12300_p13 }
  0x95   : > { %p12296_p12 = pneg %p12295_p11 }
  0x97   : > { %p12303_p5 = pnand %p12302_p2, %p12296_p12 }
  0x99   : > { %12306 = shalt.err (!%p12303_p5)
}
  0x9a   : > { %11266 = dma.hbm_to_vmem [thread:$0]  (!%p12494_p6), %s14537_s8, 16, %s321_s18, [#allocation10]  }
  0x9b   : > { %s12625_s27 = sadd.s32 1, %s12391_s12   ;;  %s134_s19 = sadd.s32 1, %s12387_s11 }
  0x9c   : > { %s131_s29 = ssub.s32 %s12391_s12, %s12625_s27  ;;  %p141_p8 = scmp.ne.s32.totalorder %s12387_s11, %s12383_s10 }
  0x9d   : > { %p132_p7 = scmp.eq.s32.totalorder %s131_s29, 0  ;;  %p142_p9 = scmp.eq.s32.totalorder %s12391_s12, 0 }
  0x9e   : > { %p147_p3 = scmp.ne.s32.totalorder %s12383_s10, %s12379_s30  ;;  %p11277_p1 = scmp.lt.s32.totalorder %s12391_s12, 4 }
  0x9f   : > { %s12637_s25 = scalar_select %p132_p7, %s12387_s11, %s134_s19  }
  0xa0   : > { %p143_p4 = por %p142_p9, %p141_p8  ;;  %p14574_p10 = scmp.eq.s32.totalorder %s12478_s15, 0 }
  0xa1   : > { %s331_s14 = sand.u32 1, %s12391_s12   ;;  %s333_s18 = sand.u32 1, %s12387_s11  }
  0xa2   : > { %p12641_p11 = por %p14574_p10, %p147_p3  ;;  %s9100_s21 = sshll.u32 %s333_s18, 11 }
  0xa3   : > { %s10093_s1 = sshll.u32 %s12391_s12, 15  ;;  %s335_s30 = scalar_lea.vmem [#allocation11], %s9100_s21 }
  0xa4   : > { %s12651_s9 = scalar_lea.hbm %s14534_s5, %s10093_s1  ;;  %s343_s20 = sshll.u32 %s335_s30, 4  ;;  %s12653_s20 = int_to_ptr.vmem [resolvable:$true] %s343_s20 }
  0xa5   : > { %p12655_p6 = pnand %p11277_p1, %p143_p4  ;;  %s12659_s12 = scalar_lea.sflag [#allocation5], %s331_s14 }
  0xa6   : > { %s12307_s28 = scalar_lea.hbm %s12651_s9, 32768  ;;  %s12312_s26 = scalar_lea.hbm %s14534_s5, 131072 }
  0xa7   : > { %p12308_p12 = scmp.ne.s32.totalorder %s12651_s9, %s12307_s28  ;;  %p12309_p13 = pneg %p12655_p6 }
  0xa8   : > { %p12313_p5 = scmp.lt.u32.totalorder %s12651_s9, %s14534_s5  ;;  %p12314_p8 = scmp.lt.u32.totalorder %s12312_s26, %s12307_s28 }
  0xa9   : > { %p12310_p0 = pnand %p12309_p13, %p12308_p12  ;;  %p12316_p9 = scmp.lt.u32.totalorder %s12307_s28, %s12651_s9 }
  0xaa   : > { %p12315_p7 = por %p12314_p8, %p12313_p5 }
  0xab   : > { %p12311_p2 = pneg %p12310_p0 }
  0xac   : > { %p12317_p3 = por %p12316_p9, %p12315_p7 }
  0xae   : > { %p12318_p1 = pnand %p12317_p3, %p12311_p2 }
  0xb0   : > { %12321 = shalt.err (!%p12318_p1)
}
  0xb1   : > { %s12322_s14 = scalar_lea.vmem %s12653_s20, 32768  ;;  %s12403_s18 = smov [#allocation11]  }
  0xb2   : > { %p12323_p4 = scmp.ne.s32.totalorder %s12653_s20, %s12322_s14  ;;  %s12327_s21 = sshll.u32 %s12403_s18, 4  ;;  %s12328_s21 = int_to_ptr.vmem [resolvable:$false] %s12327_s21 }
  0xb3   : > { %s12329_s1 = scalar_lea.vmem %s12328_s21, 65536  ;;  %p12330_p0 = scmp.lt.s32.totalorder %s12653_s20, %s12328_s21 }
  0xb4   : > { %p12325_p10 = pnand %p12323_p4, %p12309_p13  ;;  %p12331_p5 = scmp.lt.s32.totalorder %s12329_s1, %s12322_s14 }
  0xb6   : > { %p12326_p12 = pneg %p12325_p10  ;;  %p12332_p8 = por %p12331_p5, %p12330_p0 }
  0xb8   : > { %p12333_p7 = pnand %p12332_p8, %p12326_p12 }
  0xba   : > { %12336 = shalt.err (!%p12333_p7)
}
  0xbb   : > { %s12404_s17 = smov 128   ;;  %s12405_s2 = smov 8  }
  0xbc   : > { %11270 = dma.hbm_to_vmem [thread:$0]  (!%p12655_p6), %s12651_s9, 32768, %s12653_s20, %s12659_s12, %s12404_s17, %s12404_s17, %s12405_s2  }
  0xbd   : > { %p14577_p13 = scmp.ne.s32.totalorder %s14569_s16, 0 }
  0xbe   : > { %p14578_p2 = scmp.eq.s32.totalorder (!%p14577_p13), %s12478_s15, 0 }
  0xbf   : > { %355 = sbr.rel (%p14577_p13) target bundleno = 2383 (0x94f), region = 56 }
  0xc6   : > { %12354 = dma.done.wait (%p14578_p2), [#allocation5], 4608   ;;  %p14579_p9 = pmov %p14578_p2 }
  0xc7   : > { %p14580_p3 = pmov %p14578_p2 }
  0xc8   : > { %12356 = vsyncadd (%p14579_p9), [#allocation5], 4294962688 }
  0xc9   : > { %12358 = dma.done.wait (%p14580_p3), [#allocation7], 27696   ;;  %p14581_p1 = pmov %p14578_p2 }
  0xcb   : > { %12360 = vsyncadd (%p14581_p1), [#allocation7], 4294939600  ;;  %p14582_p4 = pmov %p14581_p1 }
  0xcc   : > { %p14583_p6 = pmov %p14581_p1 }
  0xcd   : > { %12362 = dma.done.wait (%p14582_p4), [#allocation10], 64  }
  0xce   : > { %12364 = vsyncadd (%p14583_p6), [#allocation10], 4294967232  ;;  %s373_s16 = sand.u32 1, %s12478_s15   ;;  %s375_s9 = sand.u32 1, %s12383_s10  }
  0xcf   : > { %s9109_s30 = sshll.u32 %s375_s9, 11  ;;  %s374_s20 = scalar_lea.sflag [#allocation5], %s373_s16 }
  0xd0   : > { %s12703_s22 = scalar_lea.vmem [#allocation11], %s9109_s30 }
  0xd1   : > { %12366 = dma.done.wait (%p12641_p11), %s374_s20, 32768  }
  0xd2   : > { %12368 = vsyncadd (%p12641_p11), %s374_s20, 4294934528  ;;  %p14584_p10 = pmov %p14581_p1 }
  0xd3   : > { %p14585_p12 = pmov %p14581_p1 }
  0xd4   : > { %12370 = dma.done.wait (%p14584_p10), [#allocation7], 32  }
  0xd5   : > { %12372 = vsyncadd (%p14585_p12), [#allocation7], 4294967264  ;;  %p14586_p0 = pmov %p14581_p1 }
  0xd7   : > { %12374 = dma.done.wait (%p14586_p0), [#allocation10], 16   ;;  %p14587_p5 = pmov %p14586_p0 }
  0xd8   : > { %p14588_p8 = scmp.ne.s32.totalorder %s12478_s15, 0 }
  0xd9   : > { %12376 = vsyncadd (%p14587_p5), [#allocation10], 4294967280 }
  0xda   : > { %420 = sbr.rel (%p14588_p8) target bundleno = 1642 (0x66a), region = 88 }
  0xe1   : > { %v11329_v0 = vld [vmem:[#allocation4 + $0x64] ss:$12 sps:$4 sm:$0xff]   ;;  %v11331_v1 = vld [vmem:[#allocation4 + $0x60] ss:$12 sps:$4 sm:$0xff]   ;;  %v14542_v2 = vmov 0   ;;  %vm698_vm0 = vcmask 1045504  }
  0xe2   : > { %740 = vmatprep.mubr.bf16.mxu0 %v14542_v2  ;;  %790 = vmatprep.mubr.bf16.mxu1 %v14542_v2  ;;  %v11332_v3 = vld [vmem:[#allocation4 + $0x7c] ss:$12 sps:$4 sm:$0xff]   ;;  %v11334_v4 = vld [vmem:[#allocation4 + $0x78] ss:$12 sps:$4 sm:$0xff]   ;;  %v11335_v5 = vld [vmem:[#allocation4 + $0x94] ss:$12 sps:$4 sm:$0xff]  }
  0xe3   : > { %708 = vmatprep.subr.bf16.mxu0 %v11329_v0  ;;  %10327 = vmatprep.subr.bf16.mxu1 %v11329_v0  ;;  %v11337_v6 = vld [vmem:[#allocation4 + $0x90] ss:$12 sps:$4 sm:$0xff]   ;;  %v11340_v7 = vld [vmem:[#allocation4 + $0xa8] ss:$12 sps:$4 sm:$0x3f]   ;;  %vm643_vm1 = vcmask 490496  }
  0xe4   : > { %709 = vmatpush1.bf16.msra.mxu0 %v11331_v1  ;;  %10331 = vmatpush1.bf16.msra.mxu1 %v11331_v1  ;;  %v11338_v8 = vld [vmem:[#allocation4 + $0xac] ss:$12 sps:$4 sm:$0x3f]   ;;  %v700_v9 = vsel %vm698_vm0, %v11340_v7, 0  ;;  %v11345_v10 = vld [vmem:[#allocation4 + $0x4] ss:$12 sps:$4 sm:$0xff]  }
  0xe5   : > { %710 = vmatprep.subr.bf16.mxu0 %v11332_v3  ;;  %10328 = vmatprep.subr.bf16.mxu1 %v11332_v3  ;;  %v12727_v11 = vld [vmem:[%s14529_s0 + $0x8] sm:$0xff]   ;;  %v12732_v12 = vld [vmem:[%s14529_s0 + $0x30] sm:$0xff]   ;;  %v11348_v15 = vld [vmem:[#allocation4 + $0x18] ss:$12 sps:$4 sm:$0xff]   ;;  %vm3123_vm2 = vcmask 261120  }
  0xe6   : > { %v11343_v13 = vld [vmem:[#allocation4] ss:$12 sps:$4 sm:$0xff]   ;;  %v11350_v14 = vld [vmem:[#allocation4 + $0x1c] ss:$12 sps:$4 sm:$0xff]   ;;  %v12743_v17 = vld [vmem:[%s14529_s0 + $0x10] sm:$0xff]  }
  0xe7   : > { %v11355_v16 = vld [vmem:[#allocation4 + $0x34] ss:$12 sps:$4 sm:$0xff]   ;;  %v12748_v18 = vld [vmem:[%s14529_s0 + $0x38] sm:$0xff]   ;;  %v11367_v22 = vld [vmem:[#allocation4 + $0xc4] ss:$12 sps:$4 sm:$0xff]  }
  0xe8   : > { %711 = vmatpush1.bf16.msra.mxu0 %v11334_v4  ;;  %10332 = vmatpush1.bf16.msra.mxu1 %v11334_v4  ;;  %v11358_v19 = vld [vmem:[#allocation4 + $0x4c] ss:$12 sps:$4 sm:$0x3f]   ;;  %v11360_v20 = vld [vmem:[#allocation4 + $0x48] ss:$12 sps:$4 sm:$0x3f]  }
  0xe9   : > { %712 = vmatprep.subr.bf16.mxu0 %v11335_v5  ;;  %10329 = vmatprep.subr.bf16.mxu1 %v11335_v5  ;;  %v11353_v21 = vld [vmem:[#allocation4 + $0x30] ss:$12 sps:$4 sm:$0xff]   ;;  %v1168_v23 = vsel %vm698_vm0, %v11360_v20, 0  ;;  %v11372_v24 = vld [vmem:[#allocation4 + $0x68] ss:$12 sps:$4 sm:$0xff]   ;;  %v12766_v26 = vld [vmem:[%s14529_s0 + $0x40] sm:$0xff]  }
  0xea   : > { %v12761_v25 = vld [vmem:[%s14529_s0 + $0x18] sm:$0xff]   ;;  %v11378_v27 = vld [vmem:[#allocation4 + $0x80] ss:$12 sps:$4 sm:$0xff]   ;;  %v12799_v34 = vld [vmem:[%s14529_s0 + $0x50] sm:$0xff]  }
  0xeb   : > { %v11380_v28 = vld [vmem:[#allocation4 + $0x98] ss:$12 sps:$4 sm:$0xff]   ;;  %v12782_v30 = vld [vmem:[%s14529_s0 + $0x48] sm:$0xff]   ;;  %v11381_v31 = vld [vmem:[#allocation4 + $0xb0] ss:$12 sps:$4 sm:$0x3f]  }
  0xec   : > { %713 = vmatpush1.bf16.msra.mxu0 %v11337_v6  ;;  %10333 = vmatpush1.bf16.msra.mxu1 %v11337_v6  ;;  %v12777_v29 = vld [vmem:[%s14529_s0 + $0x20] sm:$0xff]   ;;  %v706_v32 = vsel %vm698_vm0, %v11381_v31, 0  ;;  %v12794_v33 = vld [vmem:[%s14529_s0 + $0x28] sm:$0xff]   ;;  %v12813_v36 = vld [vmem:[%s14529_s0 + $0x58] sm:$0xff]  }
  0xed   : > { %9143 = vmatprep.subr.msk.bf16.mxu0 %vm698_vm0, %v11338_v8  ;;  %10330 = vmatprep.subr.msk.bf16.mxu1 %vm698_vm0, %v11338_v8  ;;  %v12802_v35 = vld [vmem:[#allocation4 + $0x8] ss:$12 sps:$4 sm:$0xff]   ;;  %v12818_v37 = vld [vmem:[%s14529_s0] sm:$0xff]   ;;  %v11382_v43 = vld [vmem:[#allocation4 + $0xf0] ss:$12 sps:$4 sm:$0xff]  }
  0xee   : > { %v11365_v38 = vld [vmem:[#allocation4 + $0xc0] ss:$12 sps:$4 sm:$0xff]   ;;  %v11375_v39 = vld [vmem:[#allocation4 + $0xdc] ss:$12 sps:$4 sm:$0xff]   ;;  %v11373_v40 = vld [vmem:[#allocation4 + $0xd8] ss:$12 sps:$4 sm:$0xff]  }
  0xef   : > { %v11384_v41 = vld [vmem:[#allocation4 + $0xf4] ss:$12 sps:$4 sm:$0xff]   ;;  %v11385_v44 = vld [vmem:[#allocation4 + $0x10c] ss:$12 sps:$4 sm:$0x3f]  }
  0xf0   : > { %715 = vmatpush1.bf16.msra.mxu0 %v700_v9  ;;  %10334 = vmatpush1.bf16.msra.mxu1 %v700_v9  ;;  %v12830_v42 = vld [vmem:[%s14529_s0 + $0x60] sm:$0xff]   ;;  %v11387_v45 = vld [vmem:[#allocation4 + $0x108] ss:$12 sps:$4 sm:$0x3f]   ;;  %v12865_v49 = vld [vmem:[%s14529_s0 + $0x78] sm:$0xff]  }
  0xf1   : > { %1176 = vmatprep.subr.bf16.mxu0 %v11345_v10  ;;  %10195 = vmatprep.subr.bf16.mxu1 %v11372_v24  ;;  %v12841_v46 = vld [vmem:[%s14529_s0 + $0x68] sm:$0xff]   ;;  %v1825_v47 = vsel %vm698_vm0, %v11387_v45, 0  ;;  %v12854_v48 = vld [vmem:[%s14529_s0 + $0x70] sm:$0xff]   ;;  %v12876_v50 = vld [vmem:[%s14529_s0 + $0x80] sm:$0xff]  }
  0xf2   : > { %v12887_v51 = vld [vmem:[%s14529_s0 + $0x88] sm:$0xff]   ;;  %v11379_v52 = vld [vmem:[%s14529_s0 + $0x90] sm:$0xff]   ;;  %v11390_v54 = vld [vmem:[#allocation4 + $0x38] ss:$12 sps:$4 sm:$0xff]  }
  0xf3   : > { %9144 = vmatmul.mubr.msk.bf16.vlgmr.msra.gmra.mrb[0].mxu0 %vm643_vm1, %v12727_v11  ;;  %9149 = vmatmul.mubr.msk.bf16.vlgmr.msra.gmra.mrb[0].mxu1 %vm643_vm1, %v12732_v12  ;;  %v11389_v53 = vld [vmem:[#allocation4 + $0x20] ss:$12 sps:$4 sm:$0xff]   ;;  %v11391_v55 = vld [vmem:[#allocation4 + $0x50] ss:$12 sps:$4 sm:$0x3f]  }
  0xf4   : > { %1177 = vmatpush1.bf16.msra.mxu0 %v11343_v13  ;;  %750 = vmatprep.mubr.bf16.mxu0 %v14542_v2  ;;  %v11399_v56 = vld [vmem:[#allocation4 + $0xc8] ss:$12 sps:$4 sm:$0xff]   ;;  %v1174_v57 = vsel %vm698_vm0, %v11391_v55, 0  ;;  %v11410_v58 = vld [vmem:[#allocation8 + $0x24c] ss:$16 sps:$4 sm:$0xff]   ;;  %v12993_v5 = vld [vmem:[%s14529_s0 + $0x18] sm:$0xff]  }
  0xf5   : > { %800 = vmatprep.mubr.bf16.mxu1 %v14542_v2  ;;  %1178 = vmatprep.subr.bf16.mxu0 %v11350_v14  ;;  %v11400_v59 = vld [vmem:[#allocation4 + $0xe0] ss:$12 sps:$4 sm:$0xff]   ;;  %v11402_v60 = vld [vmem:[#allocation4 + $0xf8] ss:$12 sps:$4 sm:$0xff]   ;;  %v12979_v61 = vld [vmem:[%s14529_s0 + $0x10] sm:$0xff]  }
  0xf6   : > { %10196 = vmatpush3.bf16.msra.mxu1 %v11372_v24  ;;  %v11408_v62 = vld [vmem:[#allocation8 + $0x248] ss:$16 sps:$4 sm:$0xff]   ;;  %v11414_v0 = vld [vmem:[#allocation8 + $0x26c] ss:$16 sps:$4 sm:$0xff]   ;;  %v11440_v9 = vld [vmem:[#allocation8 + $0x244] ss:$16 sps:$4 sm:$0xff]  }
  0xf7   : > { %10197 = vmatprep.subr.bf16.mxu1 %v11378_v27  ;;  %v11403_v63 = vld [vmem:[#allocation4 + $0x110] ss:$12 sps:$4 sm:$0x3f]  }
  0xf8   : > { %1179 = vmatpush1.bf16.msra.mxu0 %v11348_v15  ;;  %v11412_v1 = vld [vmem:[#allocation8 + $0x268] ss:$16 sps:$4 sm:$0xff]   ;;  %v1831_v3 = vsel %vm698_vm0, %v11403_v63, 0  ;;  %v11418_v4 = vld [vmem:[#allocation8 + $0x28c] ss:$16 sps:$4 sm:$0xff]  }
  0xf9   : > { %1180 = vmatprep.subr.bf16.mxu0 %v11355_v16  ;;  %v11416_v6 = vld [vmem:[#allocation8 + $0x288] ss:$16 sps:$4 sm:$0xff]   ;;  %v11422_v7 = vld [vmem:[#allocation8 + $0x2ac] ss:$16 sps:$4 sm:$0xff]  }
  0xfa   : > { %10198 = vmatpush3.bf16.msra.mxu1 %v11378_v27  ;;  %v11738_v8 = vld [vmem:[%s14529_s0 + $0x30] sm:$0xff]   ;;  %v11420_v10 = vld [vmem:[#allocation8 + $0x2a8] ss:$16 sps:$4 sm:$0xff]  }
  0xfb   : > { %9145 = vmatmul.mubr.msk.bf16.gmra.mrb[4].mxu0 %vm643_vm1, %v12743_v17  ;;  %9150 = vmatmul.mubr.msk.bf16.gmra.mrb[4].mxu1 %vm643_vm1, %v12748_v18  ;;  %v11424_v13 = vld [vmem:[#allocation8 + $0x2c8] ss:$16 sps:$4 sm:$0xff]   ;;  %v11431_v14 = vld [vmem:[#allocation8 + $0x2ec] ss:$16 sps:$4 sm:$0xff]  }
  0xfc   : > { %760 = vmatprep.mubr.bf16.mxu0 %v14542_v2  ;;  %810 = vmatprep.mubr.bf16.mxu1 %v14542_v2  ;;  %v11429_v15 = vld [vmem:[#allocation8 + $0x2e8] ss:$16 sps:$4 sm:$0xff]   ;;  %v11434_v16 = vld [vmem:[#allocation8 + $0x30c] ss:$16 sps:$4 sm:$0xff]  }
  0xfd   : > { %1181 = vmatpush1.bf16.msra.mxu0 %v11353_v21  ;;  %10199 = vmatprep.subr.bf16.mxu1 %v11380_v28  ;;  %v11435_v20 = vld [vmem:[#allocation8 + $0x328] ss:$16 sps:$4 sm:$0xff]  }
  0xfe   : > { %9193 = vmatprep.subr.msk.bf16.mxu0 %vm698_vm0, %v11358_v19  ;;  %10200 = vmatpush3.bf16.msra.mxu1 %v11380_v28  ;;  %v11432_v19 = vld [vmem:[#allocation8 + $0x308] ss:$16 sps:$4 sm:$0xff]   ;;  %v11452_v28 = vld [vmem:[#allocation8 + $0x36c] ss:$16 sps:$4 sm:$0xff]  }
  0xff   : > { %11219 = vmatprep.subr.msk.bf16.mxu1 %vm698_vm0, %v11381_v31  ;;  %v11441_v27 = vld [vmem:[#allocation8 + $0x348] ss:$16 sps:$4 sm:$0xff]   ;;  %v11461_v31 = vld [vmem:[#allocation8 + $0x38c] ss:$16 sps:$4 sm:$0xff]  }
 0x100   : > { %v11477_v45 = vld [vmem:[#allocation8 + $0x3c8] ss:$16 sps:$4 sm:$0xff]  }
 0x101   : > { %1183 = vmatpush1.bf16.msra.mxu0 %v1168_v23  ;;  %v13033_v23 = vld [vmem:[%s14529_s0 + $0x30] sm:$0xff]  }
 0x102   : > { %1833 = vmatprep.subr.bf16.mxu0 %v11367_v22  ;;  %10202 = vmatpush3.bf16.msra.mxu1 %v706_v32  ;;  %v11443_v22 = vld [vmem:[#allocation8 + $0x34c] ss:$16 sps:$4 sm:$0xff]   ;;  %v13053_v32 = vld [vmem:[%s14529_s0 + $0x38] sm:$0xff]  }
 0x103   : > { %9146 = vmatmul.mubr.msk.bf16.gmra.mrb[8].mxu0 %vm643_vm1, %v12761_v25  ;;  %9151 = vmatmul.mubr.msk.bf16.gmra.mrb[8].mxu1 %vm643_vm1, %v12766_v26 }
 0x104   : > { %770 = vmatprep.mubr.bf16.mxu0 %v14542_v2  ;;  %820 = vmatprep.mubr.bf16.mxu1 %v14542_v2 }
 0x105   : > { %10239 = vmatprep.subr.bf16.mxu1 %v12802_v35 }
 0x10b   : > { %9147 = vmatmul.mubr.msk.bf16.gmra.mrb[12].mxu0 %vm643_vm1, %v12777_v29  ;;  %9152 = vmatmul.mubr.msk.bf16.gmra.mrb[12].mxu1 %vm643_vm1, %v12782_v30 }
 0x10c   : > { %780 = vmatprep.mubr.bf16.mxu0 %v14542_v2  ;;  %830 = vmatprep.mubr.bf16.mxu1 %v14542_v2 }
 0x113   : > { %9148 = vmatmul.mubr.msk.bf16.gmra.mrb[16].mxu0 %vm643_vm1, %v12794_v33  ;;  %9153 = vmatmul.mubr.msk.bf16.gmra.mrb[16].mxu1 %vm643_vm1, %v12799_v34 }
 0x114   : > { %840 = vmatprep.mubr.bf16.mxu1 %v14542_v2  ;;  %1208 = vmatprep.mubr.bf16.mxu0 %v14542_v2 }
 0x11b   : > { %9154 = vmatmul.mubr.msk.bf16.gmra.mrb[20].mxu1 %vm643_vm1, %v12813_v36  ;;  %9194 = vmatmul.mubr.msk.bf16.vlgmr.msra.gmra.mrb[0].mxu0 %vm643_vm1, %v12818_v37 }
 0x11c   : > { %1834 = vmatpush1.bf16.msra.mxu0 %v11365_v38  ;;  %850 = vmatprep.mubr.bf16.mxu1 %v14542_v2  ;;  %v11468_v38 = vld [vmem:[#allocation8 + $0x3a8] ss:$16 sps:$4 sm:$0xff]  }
 0x11d   : > { %1218 = vmatprep.mubr.bf16.mxu0 %v14542_v2  ;;  %1835 = vmatprep.subr.bf16.mxu0 %v11375_v39 }
 0x120   : > { %1836 = vmatpush1.bf16.msra.mxu0 %v11373_v40  ;;  %v11479_v40 = vld [vmem:[#allocation8 + $0x3cc] ss:$16 sps:$4 sm:$0xff]  }
 0x121   : > { %1837 = vmatprep.subr.bf16.mxu0 %v11384_v41  ;;  %v13073_v41 = vld [vmem:[%s14529_s0 + $0x40] sm:$0xff]  }
 0x123   : > { %9155 = vmatmul.mubr.msk.bf16.gmra.mrb[24].mxu1 %vm643_vm1, %v12830_v42  ;;  %9195 = vmatmul.mubr.msk.bf16.gmra.mrb[4].mxu0 %vm643_vm1, %v12727_v11 }
 0x124   : > { %860 = vmatprep.mubr.bf16.mxu1 %v14542_v2  ;;  %1228 = vmatprep.mubr.bf16.mxu0 %v14542_v2 }
 0x125   : > { %1838 = vmatpush1.bf16.msra.mxu0 %v11382_v43 }
 0x126   : > { %9260 = vmatprep.subr.msk.bf16.mxu0 %vm698_vm0, %v11385_v44 }
 0x129   : > { %1840 = vmatpush1.bf16.msra.mxu0 %v1825_v47  ;;  %v11486_v47 = vld [vmem:[#allocation8 + $0x3e8] ss:$16 sps:$4 sm:$0xff]  }
 0x12a   : > { %3558 = vmatprep.subr.bf16.mxu0 %v11410_v58 }
 0x12b   : > { %9156 = vmatmul.mubr.msk.bf16.gmra.mrb[28].mxu1 %vm643_vm1, %v12841_v46  ;;  %9196 = vmatmul.mubr.msk.bf16.gmra.mrb[8].mxu0 %vm643_vm1, %v12743_v17 }
 0x12c   : > { %870 = vmatprep.mubr.bf16.mxu1 %v14542_v2  ;;  %1238 = vmatprep.mubr.bf16.mxu0 %v14542_v2 }
 0x133   : > { %9157 = vmatmul.mubr.msk.bf16.gmra.mrb[32].mxu1 %vm643_vm1, %v12854_v48  ;;  %9197 = vmatmul.mubr.msk.bf16.gmra.mrb[12].mxu0 %vm643_vm1, %v12761_v25 }
 0x134   : > { %880 = vmatprep.mubr.bf16.mxu1 %v14542_v2  ;;  %1248 = vmatprep.mubr.bf16.mxu0 %v14542_v2 }
 0x13b   : > { %9158 = vmatmul.mubr.msk.bf16.gmra.mrb[36].mxu1 %vm643_vm1, %v12865_v49  ;;  %9198 = vmatmul.mubr.msk.bf16.gmra.mrb[16].mxu0 %vm643_vm1, %v12777_v29 }
 0x13c   : > { %890 = vmatprep.mubr.bf16.mxu1 %v14542_v2  ;;  %1258 = vmatprep.mubr.bf16.mxu0 %v14542_v2 }
 0x143   : > { %9159 = vmatmul.mubr.msk.bf16.gmra.mrb[40].mxu1 %vm643_vm1, %v12876_v50  ;;  %9199 = vmatmul.mubr.msk.bf16.gmra.mrb[20].mxu0 %vm643_vm1, %v12794_v33 }
 0x144   : > { %900 = vmatprep.mubr.bf16.mxu1 %v14542_v2  ;;  %1268 = vmatprep.mubr.bf16.mxu0 %v14542_v2 }
 0x14b   : > { %9160 = vmatmul.mubr.msk.bf16.gmra.mrb[44].mxu1 %vm643_vm1, %v12887_v51  ;;  %9200 = vmatmul.mubr.msk.bf16.gmra.mrb[24].mxu0 %vm643_vm1, %v12732_v12 }
 0x14c   : > { %910 = vmatprep.mubr.bf16.mxu1 %v14542_v2  ;;  %1278 = vmatprep.mubr.bf16.mxu0 %v14542_v2 }
 0x153   : > { %9161 = vmatmul.mubr.msk.bf16.gmra.mrb[48].mxu1 %vm643_vm1, %v11379_v52  ;;  %9201 = vmatmul.mubr.msk.bf16.gmra.mrb[28].mxu0 %vm643_vm1, %v12748_v18 }
 0x154   : > { %10203 = vmatprep.mubr.msk.bf16.mxu1 %vm643_vm1, %v12727_v11  ;;  %1288 = vmatprep.mubr.bf16.mxu0 %v14542_v2 }
 0x15b   : > { %10204 = vmatmul.mubr.msk.bf16.vlgmr.msra.gmra.mrb[52].mxu1 %vm643_vm1, %v12743_v17  ;;  %9202 = vmatmul.mubr.msk.bf16.gmra.mrb[32].mxu0 %vm643_vm1, %v12766_v26 }
 0x15c   : > { %10207 = vmatprep.mubr.msk.bf16.mxu1 %vm643_vm1, %v12761_v25  ;;  %1298 = vmatprep.mubr.bf16.mxu0 %v14542_v2 }
 0x15d   : > { %10240 = vmatpush3.bf16.msra.mxu1 %v12802_v35 }
 0x15e   : > { %10241 = vmatprep.subr.bf16.mxu1 %v11389_v53 }
 0x161   : > { %10242 = vmatpush3.bf16.msra.mxu1 %v11389_v53 }
 0x162   : > { %10243 = vmatprep.subr.bf16.mxu1 %v11390_v54 }
 0x163   : > { %10208 = vmatmul.mubr.msk.bf16.gmra.mrb[56].mxu1 %vm643_vm1, %v12777_v29  ;;  %9203 = vmatmul.mubr.msk.bf16.gmra.mrb[36].mxu0 %vm643_vm1, %v12782_v30 }
 0x164   : > { %10211 = vmatprep.mubr.msk.bf16.mxu1 %vm643_vm1, %v12794_v33  ;;  %1308 = vmatprep.mubr.bf16.mxu0 %v14542_v2 }
 0x165   : > { %10244 = vmatpush3.bf16.msra.mxu1 %v11390_v54 }
 0x166   : > { %11220 = vmatprep.subr.msk.bf16.mxu1 %vm698_vm0, %v11391_v55  ;;  %v11404_v55 = vld [vmem:[%s14529_s0 + $0x50] sm:$0xff]  }
 0x169   : > { %10246 = vmatpush3.bf16.msra.mxu1 %v1174_v57 }
 0x16a   : > { %10283 = vmatprep.subr.bf16.mxu1 %v11399_v56 }
 0x16b   : > { %10212 = vmatmul.mubr.msk.bf16.gmra.mrb[60].mxu1 %vm643_vm1, %v12732_v12  ;;  %9204 = vmatmul.mubr.msk.bf16.gmra.mrb[40].mxu0 %vm643_vm1, %v12799_v34  ;;  %v13007_v12 = vld [vmem:[%s14529_s0 + $0x20] sm:$0xff]  }
 0x16c   : > { %10215 = vmatprep.mubr.msk.bf16.mxu1 %vm643_vm1, %v12748_v18  ;;  %1318 = vmatprep.mubr.bf16.mxu0 %v14542_v2 }
 0x173   : > { %10216 = vmatmul.mubr.msk.bf16.gmra.mrb[64].mxu1 %vm643_vm1, %v12766_v26  ;;  %9205 = vmatmul.mubr.msk.bf16.gmra.mrb[44].mxu0 %vm643_vm1, %v12813_v36 }
 0x174   : > { %10219 = vmatprep.mubr.msk.bf16.mxu1 %vm643_vm1, %v12782_v30  ;;  %1328 = vmatprep.mubr.bf16.mxu0 %v14542_v2 }
 0x17b   : > { %10220 = vmatmul.mubr.msk.bf16.gmra.mrb[68].mxu1 %vm643_vm1, %v12799_v34  ;;  %9206 = vmatmul.mubr.msk.bf16.gmra.mrb[48].mxu0 %vm643_vm1, %v12830_v42 }
 0x17c   : > { %10223 = vmatprep.mubr.msk.bf16.mxu1 %vm643_vm1, %v12813_v36  ;;  %1338 = vmatprep.mubr.bf16.mxu0 %v14542_v2 }
 0x183   : > { %10224 = vmatmul.mubr.msk.bf16.gmra.mrb[72].mxu1 %vm643_vm1, %v12830_v42  ;;  %9207 = vmatmul.mubr.msk.bf16.gmra.mrb[52].mxu0 %vm643_vm1, %v12841_v46 }
 0x184   : > { %10227 = vmatprep.mubr.msk.bf16.mxu1 %vm643_vm1, %v12841_v46  ;;  %1348 = vmatprep.mubr.bf16.mxu0 %v14542_v2 }
 0x18b   : > { %10228 = vmatmul.mubr.msk.bf16.gmra.mrb[76].mxu1 %vm643_vm1, %v12854_v48  ;;  %9208 = vmatmul.mubr.msk.bf16.gmra.mrb[56].mxu0 %vm643_vm1, %v12854_v48 }
 0x18c   : > { %10231 = vmatprep.mubr.msk.bf16.mxu1 %vm643_vm1, %v12865_v49  ;;  %1358 = vmatprep.mubr.bf16.mxu0 %v14542_v2 }
 0x193   : > { %10232 = vmatmul.mubr.msk.bf16.gmra.mrb[80].mxu1 %vm643_vm1, %v12876_v50  ;;  %9209 = vmatmul.mubr.msk.bf16.gmra.mrb[60].mxu0 %vm643_vm1, %v12865_v49 }
 0x194   : > { %10235 = vmatprep.mubr.msk.bf16.mxu1 %vm643_vm1, %v12887_v51  ;;  %1368 = vmatprep.mubr.bf16.mxu0 %v14542_v2 }
 0x19b   : > { %10236 = vmatmul.mubr.msk.bf16.gmra.mrb[84].mxu1 %vm643_vm1, %v11379_v52  ;;  %9210 = vmatmul.mubr.msk.bf16.gmra.mrb[64].mxu0 %vm643_vm1, %v12876_v50  ;;  %v13093_v52 = vld [vmem:[%s14529_s0 + $0x48] sm:$0xff]  }
 0x19c   : > { %1378 = vmatprep.mubr.bf16.mxu0 %v14542_v2  ;;  %10247 = vmatprep.mubr.msk.bf16.mxu1 %vm643_vm1, %v12818_v37  ;;  %v11470_v37 = vld [vmem:[#allocation8 + $0x3ac] ss:$16 sps:$4 sm:$0xff]  }
 0x1a3   : > { %9211 = vmatmul.mubr.msk.bf16.gmra.mrb[68].mxu0 %vm643_vm1, %v12887_v51  ;;  %10248 = vmatmul.mubr.msk.bf16.vlgmr.msra.gmra.mrb[52].mxu1 %vm643_vm1, %v12727_v11  ;;  %v11426_v11 = vld [vmem:[#allocation8 + $0x2cc] ss:$16 sps:$4 sm:$0xff]  }
 0x1a4   : > { %10251 = vmatprep.mubr.msk.bf16.mxu1 %vm643_vm1, %v12743_v17  ;;  %1865 = vmatprep.mubr.bf16.mxu0 %v14542_v2  ;;  %v13019_v17 = vld [vmem:[%s14529_s0 + $0x28] sm:$0xff]  }
 0x1a5   : > { %10284 = vmatpush3.bf16.msra.mxu1 %v11399_v56 }
 0x1a6   : > { %10285 = vmatprep.subr.bf16.mxu1 %v11400_v59 }
 0x1a9   : > { %10286 = vmatpush3.bf16.msra.mxu1 %v11400_v59  ;;  %v11446_v59 = vld [vmem:[#allocation8 + $0x264] ss:$16 sps:$4 sm:$0xff]  }
 0x1aa   : > { %10287 = vmatprep.subr.bf16.mxu1 %v11402_v60 }
 0x1ab   : > { %10252 = vmatmul.mubr.msk.bf16.gmra.mrb[56].mxu1 %vm643_vm1, %v12761_v25  ;;  %9261 = vmatmul.mubr.msk.bf16.vlgmr.msra.gmra.mrb[0].mxu0 %vm643_vm1, %v12979_v61 }
 0x1ac   : > { %10255 = vmatprep.mubr.msk.bf16.mxu1 %vm643_vm1, %v12777_v29  ;;  %1875 = vmatprep.mubr.bf16.mxu0 %v14542_v2  ;;  %v11450_v29 = vld [vmem:[#allocation8 + $0x368] ss:$16 sps:$4 sm:$0xff]  }
 0x1ad   : > { %10288 = vmatpush3.bf16.msra.mxu1 %v11402_v60  ;;  %3559 = vmatpush1.bf16.msra.mxu0 %v11408_v62  ;;  %v11444_v60 = vld [vmem:[#allocation8 + $0x260] ss:$16 sps:$4 sm:$0xff]   ;;  %v11449_v62 = vld [vmem:[#allocation8 + $0x284] ss:$16 sps:$4 sm:$0xff]  }
 0x1ae   : > { %11221 = vmatprep.subr.msk.bf16.mxu1 %vm698_vm0, %v11403_v63  ;;  %3560 = vmatprep.subr.bf16.mxu0 %v11414_v0  ;;  %v13130_v63 = vld [vmem:[%s14529_s0 + $0x58] sm:$0xff]  }
 0x1b1   : > { %10290 = vmatpush3.bf16.msra.mxu1 %v1831_v3  ;;  %3561 = vmatpush1.bf16.msra.mxu0 %v11412_v1 }
 0x1b2   : > { %3562 = vmatprep.subr.bf16.mxu0 %v11418_v4  ;;  %3172 = vmatprep.subr.bf16.mxu1 %v11440_v9  ;;  %v11447_v4 = vld [vmem:[#allocation8 + $0x280] ss:$16 sps:$4 sm:$0xff]  }
 0x1b3   : > { %10256 = vmatmul.mubr.msk.bf16.gmra.mrb[60].mxu1 %vm643_vm1, %v12794_v33  ;;  %9262 = vmatmul.mubr.msk.bf16.gmra.mrb[4].mxu0 %vm643_vm1, %v12993_v5  ;;  %v11406_v9 = vld [vmem:[%s14529_s0 + $0x60] sm:$0xff]  }
 0x1b4   : > { %10259 = vmatprep.mubr.msk.bf16.mxu1 %vm643_vm1, %v11738_v8  ;;  %1885 = vmatprep.mubr.bf16.mxu0 %v14542_v2  ;;  %v11458_v8 = vld [vmem:[#allocation8 + $0x2c4] ss:$16 sps:$4 sm:$0xff]  }
 0x1b5   : > { %3563 = vmatpush1.bf16.msra.mxu0 %v11416_v6  ;;  %v11453_v6 = vld [vmem:[#allocation8 + $0x2a0] ss:$16 sps:$4 sm:$0xff]  }
 0x1b6   : > { %3564 = vmatprep.subr.bf16.mxu0 %v11422_v7 }
 0x1b9   : > { %3565 = vmatpush1.bf16.msra.mxu0 %v11420_v10 }
 0x1ba   : > { %3566 = vmatprep.subr.bf16.mxu0 %v11426_v11 }
 0x1bb   : > { %10260 = vmatmul.mubr.msk.bf16.gmra.mrb[64].mxu1 %vm643_vm1, %v12748_v18  ;;  %9263 = vmatmul.mubr.msk.bf16.gmra.mrb[8].mxu0 %vm643_vm1, %v13007_v12  ;;  %v11437_v18 = vld [vmem:[#allocation8 + $0x32c] ss:$16 sps:$4 sm:$0xff]  }
 0x1bc   : > { %10263 = vmatprep.mubr.msk.bf16.mxu1 %vm643_vm1, %v12766_v26  ;;  %1895 = vmatprep.mubr.bf16.mxu0 %v14542_v2 }
 0x1bd   : > { %3567 = vmatpush1.bf16.msra.mxu0 %v11424_v13  ;;  %v11456_v13 = vld [vmem:[#allocation8 + $0x2c0] ss:$16 sps:$4 sm:$0xff]  }
 0x1be   : > { %3568 = vmatprep.subr.bf16.mxu0 %v11431_v14  ;;  %v11464_v14 = vld [vmem:[#allocation8 + $0x2e4] ss:$16 sps:$4 sm:$0xff]  }
 0x1c1   : > { %3569 = vmatpush1.bf16.msra.mxu0 %v11429_v15  ;;  %v11462_v15 = vld [vmem:[#allocation8 + $0x2e0] ss:$16 sps:$4 sm:$0xff]  }
 0x1c2   : > { %3570 = vmatprep.subr.bf16.mxu0 %v11434_v16 }
 0x1c3   : > { %10264 = vmatmul.mubr.msk.bf16.gmra.mrb[68].mxu1 %vm643_vm1, %v12782_v30  ;;  %9264 = vmatmul.mubr.msk.bf16.gmra.mrb[12].mxu0 %vm643_vm1, %v13019_v17 }
 0x1c4   : > { %10267 = vmatprep.mubr.msk.bf16.mxu1 %vm643_vm1, %v12799_v34  ;;  %1905 = vmatprep.mubr.bf16.mxu0 %v14542_v2 }
 0x1c5   : > { %3571 = vmatpush1.bf16.msra.mxu0 %v11432_v19  ;;  %v11407_v19 = vld [vmem:[%s14529_s0 + $0x68] sm:$0xff]  }
 0x1c6   : > { %v13028_v21 = vpop.f32.mrb[0].mxu1  ;;  %3572 = vmatprep.subr.bf16.mxu0 %v11437_v18 }
 0x1c7   : > { %v13035_v24 = vpop.f32.mrb[1].mxu1 }
 0x1c8   : > { %v13037_v25 = vpop.f32.mrb[2].mxu1 }
 0x1c9   : > { %v13039_v26 = vpop.f32.mrb[3].mxu1  ;;  %3573 = vmatpush1.bf16.msra.mxu0 %v11435_v20 }
 0x1ca   : > { %3574 = vmatprep.subr.bf16.mxu0 %v11443_v22 }
 0x1cb   : > { %10268 = vmatmul.mubr.msk.bf16.gmra.mrb[72].mxu1 %vm643_vm1, %v12813_v36  ;;  %9265 = vmatmul.mubr.msk.bf16.gmra.mrb[16].mxu0 %vm643_vm1, %v13033_v23  ;;  %v11459_v36 = vld [vmem:[#allocation8 + $0x388] ss:$16 sps:$4 sm:$0xff]  }
 0x1cc   : > { %10271 = vmatprep.mubr.msk.bf16.mxu1 %vm643_vm1, %v12830_v42  ;;  %1915 = vmatprep.mubr.bf16.mxu0 %v14542_v2 }
 0x1cd   : > { %3575 = vmatpush1.bf16.msra.mxu0 %v11441_v27  ;;  %v11473_v27 = vld [vmem:[#allocation8 + $0x324] ss:$16 sps:$4 sm:$0xff]  }
 0x1ce   : > { %v13048_v30 = vpop.f32.mrb[4].mxu1  ;;  %3576 = vmatprep.subr.bf16.mxu0 %v11452_v28  ;;  %v11471_v28 = vld [vmem:[#allocation8 + $0x320] ss:$16 sps:$4 sm:$0xff]  }
 0x1cf   : > { %v13055_v33 = vpop.f32.mrb[5].mxu1 }
 0x1d0   : > { %v13057_v34 = vpop.f32.mrb[6].mxu1 }
 0x1d1   : > { %v13059_v35 = vpop.f32.mrb[7].mxu1  ;;  %3577 = vmatpush1.bf16.msra.mxu0 %v11450_v29  ;;  %v11476_v29 = vld [vmem:[#allocation8 + $0x344] ss:$16 sps:$4 sm:$0xff]  }
 0x1d2   : > { %3578 = vmatprep.subr.bf16.mxu0 %v11461_v31 }
 0x1d3   : > { %10272 = vmatmul.mubr.msk.bf16.gmra.mrb[76].mxu1 %vm643_vm1, %v12841_v46  ;;  %9266 = vmatmul.mubr.msk.bf16.gmra.mrb[20].mxu0 %vm643_vm1, %v13053_v32  ;;  %v11488_v46 = vld [vmem:[#allocation8 + $0x3ec] ss:$16 sps:$4 sm:$0xff]  }
 0x1d4   : > { %10275 = vmatprep.mubr.msk.bf16.mxu1 %vm643_vm1, %v12854_v48  ;;  %1925 = vmatprep.mubr.bf16.mxu0 %v14542_v2 }
 0x1d5   : > { %3579 = vmatpush1.bf16.msra.mxu0 %v11459_v36  ;;  %v11497_v36 = vld [vmem:[#allocation8 + $0x40c] ss:$16 sps:$4 sm:$0xff]  }
 0x1d6   : > { %v13068_v39 = vpop.f32.mrb[8].mxu1  ;;  %3580 = vmatprep.subr.bf16.mxu0 %v11470_v37  ;;  %v11411_v37 = vld [vmem:[%s14529_s0 + $0x70] sm:$0xff]  }
 0x1d7   : > { %v13075_v42 = vpop.f32.mrb[9].mxu1 }
 0x1d8   : > { %v13077_v43 = vpop.f32.mrb[10].mxu1 }
 0x1d9   : > { %v13079_v44 = vpop.f32.mrb[11].mxu1  ;;  %3581 = vmatpush1.bf16.msra.mxu0 %v11468_v38 }
 0x1da   : > { %3582 = vmatprep.subr.bf16.mxu0 %v11479_v40 }
 0x1db   : > { %10276 = vmatmul.mubr.msk.bf16.gmra.mrb[80].mxu1 %vm643_vm1, %v12865_v49  ;;  %9267 = vmatmul.mubr.msk.bf16.gmra.mrb[24].mxu0 %vm643_vm1, %v13073_v41 }
 0x1dc   : > { %10279 = vmatprep.mubr.msk.bf16.mxu1 %vm643_vm1, %v12876_v50  ;;  %1935 = vmatprep.mubr.bf16.mxu0 %v14542_v2 }
 0x1dd   : > { %3583 = vmatpush1.bf16.msra.mxu0 %v11477_v45  ;;  %v11474_v45 = vld [vmem:[#allocation8 + $0x340] ss:$16 sps:$4 sm:$0xff]  }
 0x1de   : > { %v13088_v48 = vpop.f32.mrb[12].mxu1  ;;  %3584 = vmatprep.subr.bf16.mxu0 %v11488_v46  ;;  %v11482_v46 = vld [vmem:[#allocation8 + $0x364] ss:$16 sps:$4 sm:$0xff]  }
 0x1df   : > { %v13095_v53 = vpop.f32.mrb[13].mxu1 }
 0x1e0   : > { %v13097_v49 = vpop.f32.mrb[14].mxu1 }
 0x1e1   : > { %v13099_v54 = vpop.f32.mrb[15].mxu1  ;;  %3585 = vmatpush1.bf16.msra.mxu0 %v11486_v47  ;;  %v11506_v47 = vld [vmem:[#allocation8 + $0x42c] ss:$16 sps:$4 sm:$0xff]  }
 0x1e2   : > { %3586 = vmatprep.subr.bf16.mxu0 %v11497_v36  ;;  %v11503_v36 = vld [vmem:[#allocation8 + $0x404] ss:$16 sps:$4 sm:$0xff]  }
 0x1e3   : > { %10280 = vmatmul.mubr.msk.bf16.gmra.mrb[84].mxu1 %vm643_vm1, %v12887_v51  ;;  %9268 = vmatmul.mubr.msk.bf16.gmra.mrb[28].mxu0 %vm643_vm1, %v13093_v52  ;;  %v11438_v51 = vld [vmem:[#allocation8 + $0x240] ss:$16 sps:$4 sm:$0xff]  }
 0x1e4   : > { %1945 = vmatprep.mubr.bf16.mxu0 %v14542_v2  ;;  %10291 = vmatprep.mubr.msk.bf16.mxu1 %vm643_vm1, %v12979_v61 }
 0x1e6   : > { %v13108_v50 = vpop.f32.mrb[16].mxu1 }
 0x1e7   : > { %v13113_v56 = vpop.f32.mrb[17].mxu1 }
 0x1e8   : > { %v13115_v57 = vpop.f32.mrb[18].mxu1 }
 0x1e9   : > { %v13117_v58 = vpop.f32.mrb[19].mxu1 }
 0x1eb   : > { %9269 = vmatmul.mubr.msk.bf16.gmra.mrb[32].mxu0 %vm643_vm1, %v11404_v55  ;;  %10292 = vmatmul.mubr.msk.bf16.vlgmr.msra.gmra.mrb[52].mxu1 %vm643_vm1, %v12993_v5  ;;  %v11455_v5 = vld [vmem:[#allocation8 + $0x2a4] ss:$16 sps:$4 sm:$0xff]  }
 0x1ec   : > { %1955 = vmatprep.mubr.bf16.mxu0 %v14542_v2  ;;  %10295 = vmatprep.mubr.msk.bf16.mxu1 %vm643_vm1, %v13007_v12 }
 0x1ed   : > { %3173 = vmatpush1.bf16.msra.mxu1 %v11438_v51 }
 0x1ee   : > { %v13125_v61 = vpop.f32.mrb[20].mxu1  ;;  %3174 = vmatprep.subr.bf16.mxu1 %v11446_v59  ;;  %v11485_v59 = vld [vmem:[#allocation8 + $0x384] ss:$16 sps:$4 sm:$0xff]  }
 0x1ef   : > { %v13132_v0 = vpop.f32.mrb[21].mxu1 }
 0x1f0   : > { %v13134_v1 = vpop.f32.mrb[22].mxu1 }
 0x1f1   : > { %v13136_v3 = vpop.f32.mrb[23].mxu1  ;;  %3175 = vmatpush1.bf16.msra.mxu1 %v11444_v60  ;;  %v11415_v60 = vld [vmem:[%s14529_s0 + $0x78] sm:$0xff]  }
 0x1f2   : > { %3176 = vmatprep.subr.bf16.mxu1 %v11449_v62 }
 0x1f3   : > { %9270 = vmatmul.mubr.msk.bf16.gmra.mrb[36].mxu0 %vm643_vm1, %v13130_v63  ;;  %10296 = vmatmul.mubr.msk.bf16.gmra.mrb[56].mxu1 %vm643_vm1, %v13019_v17  ;;  %v11467_v17 = vld [vmem:[#allocation8 + $0x304] ss:$16 sps:$4 sm:$0xff]  }
 0x1f4   : > { %1965 = vmatprep.mubr.bf16.mxu0 %v14542_v2  ;;  %10299 = vmatprep.mubr.msk.bf16.mxu1 %vm643_vm1, %v13033_v23  ;;  %v11465_v23 = vld [vmem:[#allocation8 + $0x300] ss:$16 sps:$4 sm:$0xff]  }
 0x1f5   : > { %3177 = vmatpush1.bf16.msra.mxu1 %v11447_v4 }
 0x1f6   : > { %v13145_v7 = vpop.f32.mrb[24].mxu1  ;;  %3178 = vmatprep.subr.bf16.mxu1 %v11455_v5  ;;  %v11483_v5 = vld [vmem:[#allocation8 + $0x380] ss:$16 sps:$4 sm:$0xff]  }
 0x1f7   : > { %v13150_v10 = vpop.f32.mrb[25].mxu1 }
 0x1f8   : > { %v13152_v11 = vpop.f32.mrb[26].mxu1 }
 0x1f9   : > { %v13154_v12 = vpop.f32.mrb[27].mxu1  ;;  %3179 = vmatpush1.bf16.msra.mxu1 %v11453_v6  ;;  %v11491_v6 = vld [vmem:[#allocation8 + $0x3a4] ss:$16 sps:$4 sm:$0xff]  }
 0x1fa   : > { %3180 = vmatprep.subr.bf16.mxu1 %v11458_v8  ;;  %v11489_v8 = vld [vmem:[#allocation8 + $0x3a0] ss:$16 sps:$4 sm:$0xff]  }
 0x1fb   : > { %9271 = vmatmul.mubr.msk.bf16.gmra.mrb[40].mxu0 %vm643_vm1, %v11406_v9  ;;  %10300 = vmatmul.mubr.msk.bf16.gmra.mrb[60].mxu1 %vm643_vm1, %v13053_v32  ;;  %v11495_v32 = vld [vmem:[#allocation8 + $0x408] ss:$16 sps:$4 sm:$0xff]  }
 0x1fc   : > { %1975 = vmatprep.mubr.bf16.mxu0 %v14542_v2  ;;  %10303 = vmatprep.mubr.msk.bf16.mxu1 %vm643_vm1, %v13073_v41 }
 0x1fd   : > { %3181 = vmatpush1.bf16.msra.mxu1 %v11456_v13  ;;  %3587 = vmatpush1.bf16.msra.mxu0 %v11495_v32  ;;  %v11494_v13 = vld [vmem:[#allocation8 + $0x3c4] ss:$16 sps:$4 sm:$0xff]  }
 0x1fe   : > { %v13162_v16 = vpop.f32.mrb[28].mxu1  ;;  %3182 = vmatprep.subr.bf16.mxu1 %v11464_v14  ;;  %3588 = vmatprep.subr.bf16.mxu0 %v11506_v47  ;;  %v11419_v14 = vld [vmem:[%s14529_s0 + $0x80] sm:$0xff]  }
 0x1ff   : > { %v13167_v18 = vpop.f32.mrb[29].mxu1 }
 0x200   : > { %v13169_v20 = vpop.f32.mrb[30].mxu1 }
 0x201   : > { %v13171_v22 = vpop.f32.mrb[31].mxu1  ;;  %3183 = vmatpush1.bf16.msra.mxu1 %v11462_v15 }
 0x202   : > { %3184 = vmatprep.subr.bf16.mxu1 %v11467_v17  ;;  %v11515_v17 = vld [vmem:[#allocation8 + $0x44c] ss:$16 sps:$4 sm:$0xff]  }
 0x203   : > { %9272 = vmatmul.mubr.msk.bf16.gmra.mrb[44].mxu0 %vm643_vm1, %v11407_v19  ;;  %10304 = vmatmul.mubr.msk.bf16.gmra.mrb[64].mxu1 %vm643_vm1, %v13093_v52  ;;  %v11504_v52 = vld [vmem:[#allocation8 + $0x428] ss:$16 sps:$4 sm:$0xff]  }
 0x204   : > { %1985 = vmatprep.mubr.bf16.mxu0 %v14542_v2  ;;  %10307 = vmatprep.mubr.msk.bf16.mxu1 %vm643_vm1, %v11404_v55  ;;  %v11480_v55 = vld [vmem:[#allocation8 + $0x360] ss:$16 sps:$4 sm:$0xff]  }
 0x205   : > { %3185 = vmatpush1.bf16.msra.mxu1 %v11465_v23  ;;  %3589 = vmatpush1.bf16.msra.mxu0 %v11504_v52 }
 0x206   : > { %v13178_v31 = vpop.f32.mrb[32].mxu1  ;;  %3186 = vmatprep.subr.bf16.mxu1 %v11473_v27  ;;  %v11492_v27 = vld [vmem:[#allocation8 + $0x3c0] ss:$16 sps:$4 sm:$0xff]   ;;  %3751 = vmatprep.subr.bf16.mxu0 %v11515_v17 }
 0x207   : > { %v13183_v38 = vpop.f32.mrb[33].mxu1 }
 0x208   : > { %v13185_v40 = vpop.f32.mrb[34].mxu1 }
 0x209   : > { %v13187_v41 = vpop.f32.mrb[35].mxu1  ;;  %3187 = vmatpush1.bf16.msra.mxu1 %v11471_v28  ;;  %v11500_v28 = vld [vmem:[#allocation8 + $0x3e4] ss:$16 sps:$4 sm:$0xff]  }
 0x20a   : > { %3188 = vmatprep.subr.bf16.mxu1 %v11476_v29  ;;  %v11498_v29 = vld [vmem:[#allocation8 + $0x3e0] ss:$16 sps:$4 sm:$0xff]  }
 0x20b   : > { %9273 = vmatmul.mubr.msk.bf16.gmra.mrb[48].mxu0 %vm643_vm1, %v11411_v37  ;;  %10308 = vmatmul.mubr.msk.bf16.gmra.mrb[68].mxu1 %vm643_vm1, %v13130_v63 }
 0x20c   : > { %1995 = vmatprep.mubr.bf16.mxu0 %v14542_v2  ;;  %10311 = vmatprep.mubr.msk.bf16.mxu1 %vm643_vm1, %v11406_v9 }
 0x20d   : > { %3189 = vmatpush1.bf16.msra.mxu1 %v11474_v45 }
 0x20e   : > { %v13194_v51 = vpop.f32.mrb[36].mxu1  ;;  %3190 = vmatprep.subr.bf16.mxu1 %v11482_v46  ;;  %v11427_v46 = vld [vmem:[%s14529_s0 + $0x90] sm:$0xff]  }
 0x20f   : > { %v13199_v62 = vpop.f32.mrb[37].mxu1 }
 0x210   : > { %v13201_v63 = vpop.f32.mrb[38].mxu1 }
 0x211   : > { %v13203_v4 = vpop.f32.mrb[39].mxu1  ;;  %3191 = vmatpush1.bf16.msra.mxu1 %v11480_v55  ;;  %v11501_v55 = vld [vmem:[#allocation8 + $0x400] ss:$16 sps:$4 sm:$0xff]  }
 0x212   : > { %14589 = vst [vmem:[#allocation20_spill] sm:$0xff] %v13203_v4  ;;  %3192 = vmatprep.subr.bf16.mxu1 %v11485_v59  ;;  %v11509_v59 = vld [vmem:[#allocation8 + $0x424] ss:$16 sps:$4 sm:$0xff]  }
 0x213   : > { %9274 = vmatmul.mubr.msk.bf16.gmra.mrb[52].mxu0 %vm643_vm1, %v11415_v60  ;;  %10312 = vmatmul.mubr.msk.bf16.gmra.mrb[72].mxu1 %vm643_vm1, %v11407_v19 }
 0x214   : > { %2005 = vmatprep.mubr.bf16.mxu0 %v14542_v2  ;;  %10315 = vmatprep.mubr.msk.bf16.mxu1 %vm643_vm1, %v11411_v37  ;;  %v11423_v37 = vld [vmem:[%s14529_s0 + $0x88] sm:$0xff]  }
 0x215   : > { %3193 = vmatpush1.bf16.msra.mxu1 %v11483_v5 }
 0x216   : > { %v13209_v9 = vpop.f32.mrb[40].mxu1  ;;  %3194 = vmatprep.subr.bf16.mxu1 %v11491_v6  ;;  %v11512_v6 = vld [vmem:[#allocation8 + $0x444] ss:$16 sps:$4 sm:$0xff]  }
 0x217   : > { %14590 = vst [vmem:[#allocation21_spill] sm:$0xff] %v13209_v9  ;;  %v13214_v15 = vpop.f32.mrb[41].mxu1 }
 0x218   : > { %14591 = vst [vmem:[#allocation22_spill] sm:$0xff] %v13214_v15  ;;  %v13216_v23 = vpop.f32.mrb[42].mxu1  ;;  %v11521_v15 = vld [vmem:[#allocation8 + $0x46c] ss:$16 sps:$4 sm:$0xff]  }
 0x219   : > { %14592 = vst [vmem:[#allocation23_spill] sm:$0xff] %v13216_v23  ;;  %v13218_v19 = vpop.f32.mrb[43].mxu1  ;;  %3195 = vmatpush1.bf16.msra.mxu1 %v11489_v8  ;;  %v11428_v8 = vld [vmem:[%s14529_s0 + $0x98] sm:$0xff]  }
 0x21a   : > { %14593 = vst [vmem:[#allocation24_spill] sm:$0xff] %v13218_v19  ;;  %3196 = vmatprep.subr.bf16.mxu1 %v11494_v13 }
 0x21b   : > { %9275 = vmatmul.mubr.msk.bf16.gmra.mrb[56].mxu0 %vm643_vm1, %v11419_v14  ;;  %10316 = vmatmul.mubr.msk.bf16.gmra.mrb[76].mxu1 %vm643_vm1, %v11415_v60  ;;  %v11507_v60 = vld [vmem:[#allocation8 + $0x420] ss:$16 sps:$4 sm:$0xff]  }
 0x21c   : > { %2015 = vmatprep.mubr.bf16.mxu0 %v14542_v2  ;;  %10319 = vmatprep.mubr.msk.bf16.mxu1 %vm643_vm1, %v11419_v14 }
 0x21d   : > { %3197 = vmatpush1.bf16.msra.mxu1 %v11492_v27  ;;  %v2333_v27 = vlaneseq }
 0x21e   : > { %v13224_v32 = vpop.f32.mrb[44].mxu1  ;;  %3198 = vmatprep.subr.bf16.mxu1 %v11500_v28 }
 0x21f   : > { %14594 = vst [vmem:[#allocation25_spill] sm:$0xff] %v13224_v32  ;;  %v13229_v45 = vpop.f32.mrb[45].mxu1  ;;  %v13257_v28 = vshrl.u32 %v2333_v27, 7 }
 0x220   : > { %14595 = vst [vmem:[#allocation26_spill] sm:$0xff] %v13229_v45  ;;  %v13234_v47 = vpop.f32.mrb[46].mxu1 }
 0x221   : > { %14596 = vst [vmem:[#allocation27_spill] sm:$0xff] %v13234_v47  ;;  %v13236_v52 = vpop.f32.mrb[47].mxu1  ;;  %3199 = vmatpush1.bf16.msra.mxu1 %v11498_v29  ;;  %14602 = vst [vmem:[#allocation33_spill] sm:$0xff] %v13257_v28  ;;  %v14544_v29 = vsub.s32 0, %v13257_v28 }
 0x222   : > { %14597 = vst [vmem:[#allocation28_spill] sm:$0xff] %v13236_v52  ;;  %3200 = vmatprep.subr.bf16.mxu1 %v11503_v36  ;;  %v13260_v36 = vld [vmem:[#allocation6] sm:$0x7] }
 0x223   : > { %9276 = vmatmul.mubr.msk.bf16.gmra.mrb[60].mxu0 %vm643_vm1, %v11423_v37  ;;  %10320 = vmatmul.mubr.msk.bf16.gmra.mrb[80].mxu1 %vm643_vm1, %v11423_v37  ;;  %v14545_v37 = vsub.s32 1, %v13257_v28 }
 0x224   : > { %2025 = vmatprep.mubr.bf16.mxu0 %v14542_v2  ;;  %10323 = vmatprep.mubr.msk.bf16.mxu1 %vm643_vm1, %v11427_v46 }
 0x225   : > { %3201 = vmatpush1.bf16.msra.mxu1 %v11501_v55  ;;  %v13266_v55 = vrot.slane %v13260_v36, %v14544_v29 }
 0x226   : > { %v13242_v5 = vpop.f32.mrb[48].mxu1  ;;  %3202 = vmatprep.subr.bf16.mxu1 %v11509_v59 }
 0x227   : > { %14598 = vst [vmem:[#allocation29_spill] sm:$0xff] %v13242_v5  ;;  %v13247_v13 = vpop.f32.mrb[49].mxu1 }
 0x228   : > { %14599 = vst [vmem:[#allocation30_spill] sm:$0xff] %v13247_v13  ;;  %v13249_v14 = vpop.f32.mrb[50].mxu1 }
 0x229   : > { %14600 = vst [vmem:[#allocation31_spill] sm:$0xff] %v13249_v14  ;;  %v13251_v17 = vpop.f32.mrb[51].mxu1  ;;  %3203 = vmatpush1.bf16.msra.mxu1 %v11507_v60 }
 0x22a   : > { %14601 = vst [vmem:[#allocation32_spill] sm:$0xff] %v13251_v17  ;;  %3365 = vmatprep.subr.bf16.mxu1 %v11512_v6 }
 0x22b   : > { %9277 = vmatmul.mubr.msk.bf16.gmra.mrb[64].mxu0 %vm643_vm1, %v11427_v46  ;;  %10324 = vmatmul.mubr.msk.bf16.gmra.mrb[84].mxu1 %vm643_vm1, %v11428_v8  ;;  %v13271_v46 = vrot.slane %v13260_v36, %v14545_v37 }
 0x22c   : > { %2035 = vmatprep.mubr.bf16.mxu0 %v14542_v2 }
 0x233   : > { %9278 = vmatmul.mubr.msk.bf16.gmra.mrb[68].mxu0 %vm643_vm1, %v11428_v8 }
 0x27e   : > { %v1867_v59 = vpop.f32.mrb[0].mxu0 }
 0x27f   : > { %v2348_v60 = vadd.f32 %v13266_v55, %v1867_v59  ;;  %v1869_v6 = vpop.f32.mrb[1].mxu0 }
 0x280   : > { %v2349_v8 = vadd.f32 %v13271_v46, %v1869_v6  ;;  %v1871_v27 = vpop.f32.mrb[2].mxu0 }
 0x281   : > { %v2351_v2 = vadd.f32 %v13266_v55, %v1871_v27  ;;  %v1873_v17 = vpop.f32.mrb[3].mxu0  ;;  %v2456_v13 = vmax.f32 %v2348_v60, 0.0 }
 0x282   : > { %v2352_v14 = vadd.f32 %v13271_v46, %v1873_v17  ;;  %v2457_v5 = vmax.f32 %v2349_v8, 0.0 }
 0x283   : > { %v2459_v29 = vmax.f32 %v2351_v2, 0.0 }
 0x284   : > { %v2460_v52 = vmax.f32 %v2352_v14, 0.0 }
 0x285   : > { %v13277_v47 = vpack.c.bf16 %v2459_v29, %v2456_v13  ;;  %v11510_v29 = vld [vmem:[#allocation8 + $0x440] ss:$16 sps:$4 sm:$0xff]  }
 0x286   : > { %v13279_v37 = vpack.c.bf16 %v2460_v52, %v2457_v5  ;;  %v1877_v45 = vpop.f32.mrb[4].mxu0 }
 0x287   : > { %14603 = vst [vmem:[#allocation34_spill] sm:$0xff] %v13277_v47  ;;  %v2354_v59 = vadd.f32 %v13266_v55, %v1877_v45  ;;  %v1879_v32 = vpop.f32.mrb[5].mxu0  ;;  %v11513_v45 = vld [vmem:[#allocation8 + $0x448] ss:$16 sps:$4 sm:$0xff]  }
 0x288   : > { %14604 = vst [vmem:[#allocation35_spill] sm:$0xff] %v13279_v37  ;;  %v2355_v6 = vadd.f32 %v13271_v46, %v1879_v32  ;;  %v1881_v19 = vpop.f32.mrb[6].mxu0  ;;  %v11518_v37 = vld [vmem:[#allocation8 + $0x464] ss:$16 sps:$4 sm:$0xff]  }
 0x289   : > { %v2357_v27 = vadd.f32 %v13266_v55, %v1881_v19  ;;  %v1883_v23 = vpop.f32.mrb[7].mxu0  ;;  %v2462_v60 = vmax.f32 %v2354_v59, 0.0 }
 0x28a   : > { %v2358_v17 = vadd.f32 %v13271_v46, %v1883_v23  ;;  %v2463_v8 = vmax.f32 %v2355_v6, 0.0 }
 0x28b   : > { %v2465_v2 = vmax.f32 %v2357_v27, 0.0  ;;  %v11516_v27 = vld [vmem:[#allocation8 + $0x460] ss:$16 sps:$4 sm:$0xff]  }
 0x28c   : > { %v2466_v14 = vmax.f32 %v2358_v17, 0.0  ;;  %v11519_v17 = vld [vmem:[#allocation8 + $0x468] ss:$16 sps:$4 sm:$0xff]  }
 0x28d   : > { %v13285_v13 = vpack.c.bf16 %v2465_v2, %v2462_v60 }
 0x28e   : > { %v13287_v52 = vpack.c.bf16 %v2466_v14, %v2463_v8  ;;  %v1887_v5 = vpop.f32.mrb[8].mxu0  ;;  %v11524_v8 = vld [vmem:[#allocation8 + $0x4] ss:$16 sps:$4 sm:$0xff]  }
 0x28f   : > { %v2360_v47 = vadd.f32 %v13266_v55, %v1887_v5  ;;  %v1889_v32 = vpop.f32.mrb[9].mxu0 }
 0x290   : > { %14605 = vst [vmem:[#allocation36_spill] sm:$0xff] %v13287_v52  ;;  %v2361_v19 = vadd.f32 %v13271_v46, %v1889_v32  ;;  %v1891_v9 = vpop.f32.mrb[10].mxu0  ;;  %3204 = vmatprep.mubr.bf16.mxu1 %v13287_v52  ;;  %3590 = vmatprep.mubr.bf16.mxu0 %v13287_v52  ;;  %v11527_v32 = vld [vmem:[#allocation8 + $0xc] ss:$16 sps:$4 sm:$0xff]  }
 0x291   : > { %v2363_v23 = vadd.f32 %v13266_v55, %v1891_v9  ;;  %v1893_v59 = vpop.f32.mrb[11].mxu0  ;;  %3205 = vmatmul.mubr.bf16.vlgmr.msra.gmra.mrb[88].mxu1 %v13285_v13  ;;  %3591 = vmatmul.mubr.bf16.vlgmr.msra.gmra.mrb[72].mxu0 %v13285_v13  ;;  %v2468_v60 = vmax.f32 %v2360_v47, 0.0 }
 0x292   : > { %v2364_v6 = vadd.f32 %v13271_v46, %v1893_v59  ;;  %3366 = vmatpush1.bf16.msra.mxu1 %v11510_v29  ;;  %3752 = vmatpush1.bf16.msra.mxu0 %v11513_v45  ;;  %v2469_v14 = vmax.f32 %v2361_v19, 0.0 }
 0x293   : > { %v2471_v2 = vmax.f32 %v2363_v23, 0.0  ;;  %3367 = vmatprep.subr.bf16.mxu1 %v11518_v37  ;;  %3753 = vmatprep.subr.bf16.mxu0 %v11521_v15 }
 0x294   : > { %v2472_v5 = vmax.f32 %v2364_v6, 0.0 }
 0x295   : > { %v13297_v9 = vpack.c.bf16 %v2471_v2, %v2468_v60 }
 0x296   : > { %v13299_v52 = vpack.c.bf16 %v2472_v5, %v2469_v14  ;;  %v1897_v4 = vpop.f32.mrb[12].mxu0  ;;  %3368 = vmatpush1.bf16.msra.mxu1 %v11516_v27  ;;  %3754 = vmatpush1.bf16.msra.mxu0 %v11519_v17 }
 0x297   : > { %v2366_v29 = vadd.f32 %v13266_v55, %v1897_v4  ;;  %v1899_v45 = vpop.f32.mrb[13].mxu0  ;;  %4307 = vmatprep.subr.bf16.mxu1 %v11524_v8  ;;  %4693 = vmatprep.subr.bf16.mxu0 %v11527_v32 }
 0x298   : > { %v2367_v47 = vadd.f32 %v13271_v46, %v1899_v45  ;;  %v1901_v37 = vpop.f32.mrb[14].mxu0  ;;  %3214 = vmatprep.mubr.bf16.mxu1 %v13299_v52  ;;  %3600 = vmatprep.mubr.bf16.mxu0 %v13299_v52 }
 0x299   : > { %v2369_v15 = vadd.f32 %v13266_v55, %v1901_v37  ;;  %v1903_v19 = vpop.f32.mrb[15].mxu0  ;;  %3215 = vmatmul.mubr.bf16.gmra.mrb[92].mxu1 %v13297_v9  ;;  %3601 = vmatmul.mubr.bf16.gmra.mrb[76].mxu0 %v13297_v9  ;;  %v2474_v4 = vmax.f32 %v2366_v29, 0.0 }
 0x29a   : > { %v2370_v23 = vadd.f32 %v13271_v46, %v1903_v19  ;;  %v2475_v6 = vmax.f32 %v2367_v47, 0.0 }
 0x29b   : > { %v2477_v59 = vmax.f32 %v2369_v15, 0.0 }
 0x29c   : > { %v2478_v27 = vmax.f32 %v2370_v23, 0.0 }
 0x29d   : > { %v13309_v17 = vpack.c.bf16 %v2477_v59, %v2474_v4 }
 0x29e   : > { %v13311_v60 = vpack.c.bf16 %v2478_v27, %v2475_v6  ;;  %v1907_v2 = vpop.f32.mrb[16].mxu0 }
 0x29f   : > { %v2372_v8 = vadd.f32 %v13266_v55, %v1907_v2  ;;  %v1909_v14 = vpop.f32.mrb[17].mxu0 }
 0x2a0   : > { %v2373_v5 = vadd.f32 %v13271_v46, %v1909_v14  ;;  %v1911_v32 = vpop.f32.mrb[18].mxu0  ;;  %3224 = vmatprep.mubr.bf16.mxu1 %v13311_v60  ;;  %3610 = vmatprep.mubr.bf16.mxu0 %v13311_v60 }
 0x2a1   : > { %v2375_v29 = vadd.f32 %v13266_v55, %v1911_v32  ;;  %v1913_v45 = vpop.f32.mrb[19].mxu0  ;;  %3225 = vmatmul.mubr.bf16.gmra.mrb[96].mxu1 %v13309_v17  ;;  %3611 = vmatmul.mubr.bf16.gmra.mrb[80].mxu0 %v13309_v17  ;;  %v2480_v37 = vmax.f32 %v2372_v8, 0.0 }
 0x2a2   : > { %v2376_v47 = vadd.f32 %v13271_v46, %v1913_v45  ;;  %v2481_v19 = vmax.f32 %v2373_v5, 0.0 }
 0x2a3   : > { %v2483_v15 = vmax.f32 %v2375_v29, 0.0 }
 0x2a4   : > { %v2484_v23 = vmax.f32 %v2376_v47, 0.0 }
 0x2a5   : > { %v13321_v4 = vpack.c.bf16 %v2483_v15, %v2480_v37 }
 0x2a6   : > { %v13323_v59 = vpack.c.bf16 %v2484_v23, %v2481_v19  ;;  %v1917_v6 = vpop.f32.mrb[20].mxu0 }
 0x2a7   : > { %14606 = vst [vmem:[#allocation37_spill] sm:$0xff] %v13321_v4  ;;  %v10335_v27 = vadd.f32 %v1917_v6, %v13028_v21  ;;  %v1919_v2 = vpop.f32.mrb[21].mxu0 }
 0x2a8   : > { %v10336_v14 = vadd.f32 %v1919_v2, %v13035_v24  ;;  %v1921_v32 = vpop.f32.mrb[22].mxu0  ;;  %3234 = vmatprep.mubr.bf16.mxu1 %v13323_v59  ;;  %3620 = vmatprep.mubr.bf16.mxu0 %v13323_v59 }
 0x2a9   : > { %v2378_v8 = vadd.f32 %v10335_v27, %v13266_v55  ;;  %v10337_v5 = vadd.f32 %v1921_v32, %v13037_v25  ;;  %v1923_v29 = vpop.f32.mrb[23].mxu0  ;;  %3235 = vmatmul.mubr.bf16.gmra.mrb[100].mxu1 %v13321_v4  ;;  %3621 = vmatmul.mubr.bf16.gmra.mrb[84].mxu0 %v13321_v4 }
 0x2aa   : > { %v2379_v45 = vadd.f32 %v10336_v14, %v13271_v46  ;;  %v10338_v21 = vadd.f32 %v1923_v29, %v13039_v26 }
 0x2ab   : > { %v2381_v24 = vadd.f32 %v10337_v5, %v13266_v55  ;;  %v2486_v37 = vmax.f32 %v2378_v8, 0.0 }
 0x2ac   : > { %v2382_v47 = vadd.f32 %v10338_v21, %v13271_v46  ;;  %v2487_v19 = vmax.f32 %v2379_v45, 0.0 }
 0x2ad   : > { %v2489_v15 = vmax.f32 %v2381_v24, 0.0 }
 0x2ae   : > { %v2490_v23 = vmax.f32 %v2382_v47, 0.0  ;;  %v1927_v6 = vpop.f32.mrb[24].mxu0 }
 0x2af   : > { %v13337_v27 = vpack.c.bf16 %v2489_v15, %v2486_v37  ;;  %v10339_v25 = vadd.f32 %v1927_v6, %v13048_v30  ;;  %v1929_v2 = vpop.f32.mrb[25].mxu0 }
 0x2b0   : > { %v13340_v32 = vpack.c.bf16 %v2490_v23, %v2487_v19  ;;  %v10340_v14 = vadd.f32 %v1929_v2, %v13055_v33  ;;  %v1931_v4 = vpop.f32.mrb[26].mxu0  ;;  %v14552_v19 = vsub.s32 2, %v13257_v28 }
 0x2b1   : > { %v2384_v26 = vadd.f32 %v10339_v25, %v13266_v55  ;;  %v10341_v5 = vadd.f32 %v1931_v4, %v13057_v34  ;;  %v1933_v29 = vpop.f32.mrb[27].mxu0 }
 0x2b2   : > { %v2385_v8 = vadd.f32 %v10340_v14, %v13271_v46  ;;  %v10342_v45 = vadd.f32 %v1933_v29, %v13059_v35  ;;  %3244 = vmatprep.mubr.bf16.mxu1 %v13340_v32  ;;  %3630 = vmatprep.mubr.bf16.mxu0 %v13340_v32 }
 0x2b3   : > { %v2387_v30 = vadd.f32 %v10341_v5, %v13266_v55  ;;  %3245 = vmatmul.mubr.bf16.gmra.mrb[104].mxu1 %v13337_v27  ;;  %3631 = vmatmul.mubr.bf16.gmra.mrb[88].mxu0 %v13337_v27  ;;  %v2492_v21 = vmax.f32 %v2384_v26, 0.0 }
 0x2b4   : > { %v2388_v33 = vadd.f32 %v10342_v45, %v13271_v46  ;;  %v2493_v34 = vmax.f32 %v2385_v8, 0.0 }
 0x2b5   : > { %v2495_v24 = vmax.f32 %v2387_v30, 0.0 }
 0x2b6   : > { %v2496_v4 = vmax.f32 %v2388_v33, 0.0  ;;  %v1937_v47 = vpop.f32.mrb[28].mxu0 }
 0x2b7   : > { %v13353_v37 = vpack.c.bf16 %v2495_v24, %v2492_v21  ;;  %v10343_v35 = vadd.f32 %v1937_v47, %v13068_v39  ;;  %v1939_v15 = vpop.f32.mrb[29].mxu0 }
 0x2b8   : > { %v13357_v23 = vpack.c.bf16 %v2496_v4, %v2493_v34  ;;  %v10344_v6 = vadd.f32 %v1939_v15, %v13075_v42  ;;  %v1941_v25 = vpop.f32.mrb[30].mxu0  ;;  %v13372_v42 = vrot.slane %v13260_v36, %v14552_v19 }
 0x2b9   : > { %v2390_v2 = vadd.f32 %v10343_v35, %v13266_v55  ;;  %v10345_v14 = vadd.f32 %v1941_v25, %v13077_v43  ;;  %v1943_v26 = vpop.f32.mrb[31].mxu0 }
 0x2ba   : > { %v2391_v5 = vadd.f32 %v10344_v6, %v13271_v46  ;;  %v10346_v29 = vadd.f32 %v1943_v26, %v13079_v44  ;;  %3254 = vmatprep.mubr.bf16.mxu1 %v13357_v23  ;;  %3640 = vmatprep.mubr.bf16.mxu0 %v13357_v23 }
 0x2bb   : > { %v2393_v39 = vadd.f32 %v10345_v14, %v13266_v55  ;;  %3255 = vmatmul.mubr.bf16.gmra.mrb[108].mxu1 %v13353_v37  ;;  %3641 = vmatmul.mubr.bf16.gmra.mrb[92].mxu0 %v13353_v37  ;;  %v2498_v8 = vmax.f32 %v2390_v2, 0.0 }
 0x2bc   : > { %v2394_v43 = vadd.f32 %v10346_v29, %v13271_v46  ;;  %v2499_v44 = vmax.f32 %v2391_v5, 0.0 }
 0x2bd   : > { %v2501_v45 = vmax.f32 %v2393_v39, 0.0 }
 0x2be   : > { %v2502_v30 = vmax.f32 %v2394_v43, 0.0  ;;  %v1947_v33 = vpop.f32.mrb[32].mxu0  ;;  %v10293_v21 = vpop.f32.mrb[52].mxu1 }
 0x2bf   : > { %v13375_v24 = vpack.c.bf16 %v2501_v45, %v2498_v8  ;;  %v10347_v34 = vadd.f32 %v1947_v33, %v13088_v48  ;;  %v2356_v4 = vadd.f32 %v10293_v21, %v13372_v42  ;;  %v1949_v47 = vpop.f32.mrb[33].mxu0  ;;  %v2080_v35 = vpop.f32.mrb[53].mxu1 }
 0x2c0   : > { %v13379_v15 = vpack.c.bf16 %v2502_v30, %v2499_v44  ;;  %v10348_v36 = vadd.f32 %v1949_v47, %v13095_v53  ;;  %v2350_v6 = vadd.f32 %v13372_v42, %v2080_v35  ;;  %v1951_v25 = vpop.f32.mrb[34].mxu0  ;;  %v10294_v2 = vpop.f32.mrb[54].mxu1 }
 0x2c1   : > { %v2396_v14 = vadd.f32 %v10347_v34, %v13266_v55  ;;  %v10349_v26 = vadd.f32 %v1951_v25, %v13097_v49  ;;  %v2359_v5 = vadd.f32 %v10294_v2, %v13372_v42  ;;  %v1953_v29 = vpop.f32.mrb[35].mxu0  ;;  %v2083_v48 = vpop.f32.mrb[55].mxu1  ;;  %v2464_v53 = vmax.f32 %v2356_v4, 0.0 }
 0x2c2   : > { %v2397_v39 = vadd.f32 %v10348_v36, %v13271_v46  ;;  %v10350_v43 = vadd.f32 %v1953_v29, %v13099_v54  ;;  %v2353_v8 = vadd.f32 %v13372_v42, %v2083_v48  ;;  %3264 = vmatprep.mubr.bf16.mxu1 %v13379_v15  ;;  %3650 = vmatprep.mubr.bf16.mxu0 %v13379_v15  ;;  %v2458_v49 = vmax.f32 %v2350_v6, 0.0 }
 0x2c3   : > { %v2399_v45 = vadd.f32 %v10349_v26, %v13266_v55  ;;  %v2467_v44 = vmax.f32 %v2359_v5, 0.0  ;;  %3265 = vmatmul.mubr.bf16.gmra.mrb[112].mxu1 %v13375_v24  ;;  %3651 = vmatmul.mubr.bf16.gmra.mrb[96].mxu0 %v13375_v24  ;;  %v2504_v21 = vmax.f32 %v2396_v14, 0.0 }
 0x2c4   : > { %v2400_v30 = vadd.f32 %v10350_v43, %v13271_v46  ;;  %v2461_v33 = vmax.f32 %v2353_v8, 0.0  ;;  %v2505_v47 = vmax.f32 %v2397_v39, 0.0 }
 0x2c5   : > { %v2507_v54 = vmax.f32 %v2399_v45, 0.0  ;;  %v13395_v34 = vpack.c.bf16 %v2467_v44, %v2464_v53 }
 0x2c6   : > { %v2508_v35 = vmax.f32 %v2400_v30, 0.0  ;;  %v13397_v36 = vpack.c.bf16 %v2461_v33, %v2458_v49  ;;  %v1957_v4 = vpop.f32.mrb[36].mxu0  ;;  %v10297_v25 = vpop.f32.mrb[56].mxu1 }
 0x2c7   : > { %v13399_v2 = vpack.c.bf16 %v2507_v54, %v2504_v21  ;;  %v10351_v26 = vadd.f32 %v1957_v4, %v13108_v50  ;;  %v2368_v5 = vadd.f32 %v10297_v25, %v13372_v42  ;;  %v1959_v6 = vpop.f32.mrb[37].mxu0  ;;  %v2096_v29 = vpop.f32.mrb[57].mxu1 }
 0x2c8   : > { %14607 = vst [vmem:[#allocation38_spill] sm:$0xff] %v13397_v36  ;;  %v13403_v48 = vpack.c.bf16 %v2508_v35, %v2505_v47  ;;  %v10352_v14 = vadd.f32 %v1959_v6, %v13113_v56  ;;  %v2362_v43 = vadd.f32 %v13372_v42, %v2096_v29  ;;  %v1961_v39 = vpop.f32.mrb[38].mxu0  ;;  %v10298_v8 = vpop.f32.mrb[58].mxu1 }
 0x2c9   : > { %v2402_v53 = vadd.f32 %v10351_v26, %v13266_v55  ;;  %v10353_v45 = vadd.f32 %v1961_v39, %v13115_v57  ;;  %v2371_v44 = vadd.f32 %v10298_v8, %v13372_v42  ;;  %v1963_v49 = vpop.f32.mrb[39].mxu0  ;;  %v2099_v50 = vpop.f32.mrb[59].mxu1  ;;  %v2476_v56 = vmax.f32 %v2368_v5, 0.0 }
 0x2ca   : > { %v2403_v30 = vadd.f32 %v10352_v14, %v13271_v46  ;;  %v10354_v33 = vadd.f32 %v1963_v49, %v13117_v58  ;;  %v2365_v21 = vadd.f32 %v13372_v42, %v2099_v50  ;;  %3274 = vmatprep.mubr.bf16.mxu1 %v13403_v48  ;;  %3660 = vmatprep.mubr.bf16.mxu0 %v13403_v48  ;;  %v2470_v57 = vmax.f32 %v2362_v43, 0.0 }
 0x2cb   : > { %v2405_v54 = vadd.f32 %v10353_v45, %v13266_v55  ;;  %v2479_v47 = vmax.f32 %v2371_v44, 0.0  ;;  %3275 = vmatmul.mubr.bf16.gmra.mrb[116].mxu1 %v13399_v2  ;;  %3661 = vmatmul.mubr.bf16.gmra.mrb[100].mxu0 %v13399_v2  ;;  %v2510_v25 = vmax.f32 %v2402_v53, 0.0 }
 0x2cc   : > { %v2406_v35 = vadd.f32 %v10354_v33, %v13271_v46  ;;  %v2473_v4 = vmax.f32 %v2365_v21, 0.0  ;;  %v2511_v6 = vmax.f32 %v2403_v30, 0.0 }
 0x2cd   : > { %v2513_v58 = vmax.f32 %v2405_v54, 0.0  ;;  %v13419_v26 = vpack.c.bf16 %v2479_v47, %v2476_v56 }
 0x2ce   : > { %v2514_v29 = vmax.f32 %v2406_v35, 0.0  ;;  %v13421_v14 = vpack.c.bf16 %v2473_v4, %v2470_v57  ;;  %v1967_v5 = vpop.f32.mrb[40].mxu0  ;;  %v10301_v39 = vpop.f32.mrb[60].mxu1 }
 0x2cf   : > { %v13423_v8 = vpack.c.bf16 %v2513_v58, %v2510_v25  ;;  %v10355_v45 = vadd.f32 %v1967_v5, %v13125_v61  ;;  %v2380_v44 = vadd.f32 %v10301_v39, %v13372_v42  ;;  %v1969_v43 = vpop.f32.mrb[41].mxu0  ;;  %v2112_v49 = vpop.f32.mrb[61].mxu1 }
 0x2d0   : > { %v13427_v50 = vpack.c.bf16 %v2514_v29, %v2511_v6  ;;  %v10356_v53 = vadd.f32 %v1969_v43, %v13132_v0  ;;  %v2374_v33 = vadd.f32 %v13372_v42, %v2112_v49  ;;  %v1971_v30 = vpop.f32.mrb[42].mxu0  ;;  %v10302_v21 = vpop.f32.mrb[62].mxu1 }
 0x2d1   : > { %v2408_v56 = vadd.f32 %v10355_v45, %v13266_v55  ;;  %v10357_v54 = vadd.f32 %v1971_v30, %v13134_v1  ;;  %v2383_v47 = vadd.f32 %v10302_v21, %v13372_v42  ;;  %v1973_v57 = vpop.f32.mrb[43].mxu0  ;;  %v2115_v61 = vpop.f32.mrb[63].mxu1  ;;  %v2488_v0 = vmax.f32 %v2380_v44, 0.0 }
 0x2d2   : > { %v2409_v35 = vadd.f32 %v10356_v53, %v13271_v46  ;;  %v10358_v4 = vadd.f32 %v1973_v57, %v13136_v3  ;;  %v2377_v25 = vadd.f32 %v13372_v42, %v2115_v61  ;;  %3284 = vmatprep.mubr.bf16.mxu1 %v13427_v50  ;;  %3670 = vmatprep.mubr.bf16.mxu0 %v13427_v50  ;;  %v2482_v1 = vmax.f32 %v2374_v33, 0.0 }
 0x2d3   : > { %v2411_v58 = vadd.f32 %v10357_v54, %v13266_v55  ;;  %v2491_v6 = vmax.f32 %v2383_v47, 0.0  ;;  %3285 = vmatmul.mubr.bf16.gmra.mrb[120].mxu1 %v13423_v8  ;;  %3671 = vmatmul.mubr.bf16.gmra.mrb[104].mxu0 %v13423_v8  ;;  %v2516_v39 = vmax.f32 %v2408_v56, 0.0 }
 0x2d4   : > { %v2412_v29 = vadd.f32 %v10358_v4, %v13271_v46  ;;  %v2485_v5 = vmax.f32 %v2377_v25, 0.0  ;;  %v2517_v43 = vmax.f32 %v2409_v35, 0.0 }
 0x2d5   : > { %v2519_v3 = vmax.f32 %v2411_v58, 0.0  ;;  %v13443_v45 = vpack.c.bf16 %v2491_v6, %v2488_v0 }
 0x2d6   : > { %v2520_v49 = vmax.f32 %v2412_v29, 0.0  ;;  %v13445_v53 = vpack.c.bf16 %v2485_v5, %v2482_v1  ;;  %v1977_v44 = vpop.f32.mrb[44].mxu0  ;;  %v10305_v30 = vpop.f32.mrb[64].mxu1 }
 0x2d7   : > { %v13447_v21 = vpack.c.bf16 %v2519_v3, %v2516_v39  ;;  %v10359_v54 = vadd.f32 %v1977_v44, %v13145_v7  ;;  %v2392_v47 = vadd.f32 %v10305_v30, %v13372_v42  ;;  %v1979_v33 = vpop.f32.mrb[45].mxu0  ;;  %v2128_v57 = vpop.f32.mrb[65].mxu1 }
 0x2d8   : > { %v13451_v61 = vpack.c.bf16 %v2520_v49, %v2517_v43  ;;  %v10360_v56 = vadd.f32 %v1979_v33, %v13150_v10  ;;  %v2386_v4 = vadd.f32 %v13372_v42, %v2128_v57  ;;  %v1981_v35 = vpop.f32.mrb[46].mxu0  ;;  %v10306_v25 = vpop.f32.mrb[66].mxu1 }
 0x2d9   : > { %v2414_v0 = vadd.f32 %v10359_v54, %v13266_v55  ;;  %v10361_v58 = vadd.f32 %v1981_v35, %v13152_v11  ;;  %v2395_v6 = vadd.f32 %v10306_v25, %v13372_v42  ;;  %v1983_v1 = vpop.f32.mrb[47].mxu0  ;;  %v2131_v7 = vpop.f32.mrb[67].mxu1  ;;  %v2500_v10 = vmax.f32 %v2392_v47, 0.0 }
 0x2da   : > { %v2415_v29 = vadd.f32 %v10360_v56, %v13271_v46  ;;  %v10362_v5 = vadd.f32 %v1983_v1, %v13154_v12  ;;  %v2389_v39 = vadd.f32 %v13372_v42, %v2131_v7  ;;  %3294 = vmatprep.mubr.bf16.mxu1 %v13451_v61  ;;  %3680 = vmatprep.mubr.bf16.mxu0 %v13451_v61  ;;  %v2494_v11 = vmax.f32 %v2386_v4, 0.0 }
 0x2db   : > { %v2417_v3 = vadd.f32 %v10361_v58, %v13266_v55  ;;  %v2503_v43 = vmax.f32 %v2395_v6, 0.0  ;;  %3295 = vmatmul.mubr.bf16.gmra.mrb[124].mxu1 %v13447_v21  ;;  %3681 = vmatmul.mubr.bf16.gmra.mrb[108].mxu0 %v13447_v21  ;;  %v2522_v30 = vmax.f32 %v2414_v0, 0.0 }
 0x2dc   : > { %v2418_v49 = vadd.f32 %v10362_v5, %v13271_v46  ;;  %v2497_v44 = vmax.f32 %v2389_v39, 0.0  ;;  %v2523_v33 = vmax.f32 %v2415_v29, 0.0 }
 0x2dd   : > { %v2525_v12 = vmax.f32 %v2417_v3, 0.0  ;;  %v13467_v54 = vpack.c.bf16 %v2503_v43, %v2500_v10 }
 0x2de   : > { %v2526_v57 = vmax.f32 %v2418_v49, 0.0  ;;  %v13469_v56 = vpack.c.bf16 %v2497_v44, %v2494_v11  ;;  %v1987_v47 = vpop.f32.mrb[48].mxu0  ;;  %v10309_v35 = vpop.f32.mrb[68].mxu1 }
 0x2df   : > { %v13471_v25 = vpack.c.bf16 %v2525_v12, %v2522_v30  ;;  %v10363_v58 = vadd.f32 %v1987_v47, %v13162_v16  ;;  %v2404_v6 = vadd.f32 %v10309_v35, %v13372_v42  ;;  %v1989_v4 = vpop.f32.mrb[49].mxu0  ;;  %v2144_v1 = vpop.f32.mrb[69].mxu1 }
 0x2e0   : > { %v13475_v7 = vpack.c.bf16 %v2526_v57, %v2523_v33  ;;  %v10364_v0 = vadd.f32 %v1989_v4, %v13167_v18  ;;  %v2398_v5 = vadd.f32 %v13372_v42, %v2144_v1  ;;  %v1991_v29 = vpop.f32.mrb[50].mxu0  ;;  %v10310_v39 = vpop.f32.mrb[70].mxu1 }
 0x2e1   : > { %v2420_v10 = vadd.f32 %v10363_v58, %v13266_v55  ;;  %v10365_v3 = vadd.f32 %v1991_v29, %v13169_v20  ;;  %v2407_v43 = vadd.f32 %v10310_v39, %v13372_v42  ;;  %v1993_v11 = vpop.f32.mrb[51].mxu0  ;;  %v2147_v16 = vpop.f32.mrb[71].mxu1  ;;  %v2512_v18 = vmax.f32 %v2404_v6, 0.0 }
 0x2e2   : > { %v2421_v49 = vadd.f32 %v10364_v0, %v13271_v46  ;;  %v10366_v44 = vadd.f32 %v1993_v11, %v13171_v22  ;;  %v2401_v30 = vadd.f32 %v13372_v42, %v2147_v16  ;;  %3304 = vmatprep.mubr.bf16.mxu1 %v13475_v7  ;;  %3690 = vmatprep.mubr.bf16.mxu0 %v13475_v7  ;;  %v2506_v20 = vmax.f32 %v2398_v5, 0.0 }
 0x2e3   : > { %v2423_v12 = vadd.f32 %v10365_v3, %v13266_v55  ;;  %v2515_v33 = vmax.f32 %v2407_v43, 0.0  ;;  %3305 = vmatmul.mubr.bf16.gmra.mrb[128].mxu1 %v13471_v25  ;;  %3691 = vmatmul.mubr.bf16.gmra.mrb[112].mxu0 %v13471_v25  ;;  %v2528_v35 = vmax.f32 %v2420_v10, 0.0 }
 0x2e4   : > { %v2424_v57 = vadd.f32 %v10366_v44, %v13271_v46  ;;  %v2509_v47 = vmax.f32 %v2401_v30, 0.0  ;;  %v2529_v4 = vmax.f32 %v2421_v49, 0.0 }
 0x2e5   : > { %v2531_v22 = vmax.f32 %v2423_v12, 0.0  ;;  %v13491_v58 = vpack.c.bf16 %v2515_v33, %v2512_v18 }
 0x2e6   : > { %v2532_v1 = vmax.f32 %v2424_v57, 0.0  ;;  %v13493_v0 = vpack.c.bf16 %v2509_v47, %v2506_v20  ;;  %v1997_v6 = vpop.f32.mrb[52].mxu0  ;;  %v10313_v29 = vpop.f32.mrb[72].mxu1 }
 0x2e7   : > { %v13495_v39 = vpack.c.bf16 %v2531_v22, %v2528_v35  ;;  %v10367_v3 = vadd.f32 %v1997_v6, %v13178_v31  ;;  %v2416_v43 = vadd.f32 %v10313_v29, %v13372_v42  ;;  %v1999_v5 = vpop.f32.mrb[53].mxu0  ;;  %v2160_v11 = vpop.f32.mrb[73].mxu1 }
 0x2e8   : > { %v13499_v16 = vpack.c.bf16 %v2532_v1, %v2529_v4  ;;  %v10368_v10 = vadd.f32 %v1999_v5, %v13183_v38  ;;  %v2410_v44 = vadd.f32 %v13372_v42, %v2160_v11  ;;  %v2001_v49 = vpop.f32.mrb[54].mxu0  ;;  %v10314_v30 = vpop.f32.mrb[74].mxu1 }
 0x2e9   : > { %v2426_v18 = vadd.f32 %v10367_v3, %v13266_v55  ;;  %v10369_v12 = vadd.f32 %v2001_v49, %v13185_v40  ;;  %v2419_v33 = vadd.f32 %v10314_v30, %v13372_v42  ;;  %v2003_v20 = vpop.f32.mrb[55].mxu0  ;;  %v2163_v31 = vpop.f32.mrb[75].mxu1  ;;  %v2524_v38 = vmax.f32 %v2416_v43, 0.0 }
 0x2ea   : > { %v2427_v57 = vadd.f32 %v10368_v10, %v13271_v46  ;;  %v10370_v47 = vadd.f32 %v2003_v20, %v13187_v41  ;;  %v2413_v35 = vadd.f32 %v13372_v42, %v2163_v31  ;;  %3314 = vmatprep.mubr.bf16.mxu1 %v13499_v16  ;;  %3700 = vmatprep.mubr.bf16.mxu0 %v13499_v16  ;;  %v2518_v40 = vmax.f32 %v2410_v44, 0.0 }
 0x2eb   : > { %v2429_v22 = vadd.f32 %v10369_v12, %v13266_v55  ;;  %v2527_v4 = vmax.f32 %v2419_v33, 0.0  ;;  %3315 = vmatmul.mubr.bf16.gmra.mrb[132].mxu1 %v13495_v39  ;;  %3701 = vmatmul.mubr.bf16.gmra.mrb[116].mxu0 %v13495_v39  ;;  %v2534_v29 = vmax.f32 %v2426_v18, 0.0 }
 0x2ec   : > { %v2430_v1 = vadd.f32 %v10370_v47, %v13271_v46  ;;  %v2521_v6 = vmax.f32 %v2413_v35, 0.0  ;;  %v2535_v5 = vmax.f32 %v2427_v57, 0.0 }
 0x2ed   : > { %v2537_v41 = vmax.f32 %v2429_v22, 0.0  ;;  %v13515_v3 = vpack.c.bf16 %v2527_v4, %v2524_v38 }
 0x2ee   : > { %v2538_v11 = vmax.f32 %v2430_v1, 0.0  ;;  %v13517_v10 = vpack.c.bf16 %v2521_v6, %v2518_v40  ;;  %v2007_v43 = vpop.f32.mrb[56].mxu0  ;;  %v10317_v49 = vpop.f32.mrb[76].mxu1  ;;  %v14609_v6 = vld [vmem:[#allocation20_spill] sm:$0xff] }
 0x2ef   : > { %v13519_v30 = vpack.c.bf16 %v2537_v41, %v2534_v29  ;;  %v10371_v12 = vadd.f32 %v2007_v43, %v13194_v51  ;;  %v2428_v33 = vadd.f32 %v10317_v49, %v13372_v42  ;;  %v2009_v44 = vpop.f32.mrb[57].mxu0  ;;  %v2176_v20 = vpop.f32.mrb[77].mxu1 }
 0x2f0   : > { %v13523_v31 = vpack.c.bf16 %v2538_v11, %v2535_v5  ;;  %v10372_v18 = vadd.f32 %v2009_v44, %v13199_v62  ;;  %v2422_v47 = vadd.f32 %v13372_v42, %v2176_v20  ;;  %v2011_v57 = vpop.f32.mrb[58].mxu0  ;;  %v10318_v35 = vpop.f32.mrb[78].mxu1 }
 0x2f1   : > { %14608 = vst [vmem:[#allocation39_spill] sm:$0xff] %v13519_v30  ;;  %v2432_v38 = vadd.f32 %v10371_v12, %v13266_v55  ;;  %v10373_v22 = vadd.f32 %v2011_v57, %v13201_v63  ;;  %v2431_v4 = vadd.f32 %v10318_v35, %v13372_v42  ;;  %v2013_v40 = vpop.f32.mrb[59].mxu0  ;;  %v2179_v51 = vpop.f32.mrb[79].mxu1  ;;  %v2536_v62 = vmax.f32 %v2428_v33, 0.0 }
 0x2f2   : > { %v2433_v1 = vadd.f32 %v10372_v18, %v13271_v46  ;;  %v10374_v29 = vadd.f32 %v2013_v40, %v14609_v6  ;;  %v2425_v41 = vadd.f32 %v13372_v42, %v2179_v51  ;;  %3324 = vmatprep.mubr.bf16.mxu1 %v13523_v31  ;;  %3710 = vmatprep.mubr.bf16.mxu0 %v13523_v31  ;;  %v2530_v63 = vmax.f32 %v2422_v47, 0.0 }
 0x2f3   : > { %v2435_v5 = vadd.f32 %v10373_v22, %v13266_v55  ;;  %v2539_v11 = vmax.f32 %v2431_v4, 0.0  ;;  %3325 = vmatmul.mubr.bf16.gmra.mrb[136].mxu1 %v13519_v30  ;;  %3711 = vmatmul.mubr.bf16.gmra.mrb[120].mxu0 %v13519_v30  ;;  %v2540_v12 = vmax.f32 %v2432_v38, 0.0  ;;  %v14611_v4 = vld [vmem:[#allocation21_spill] sm:$0xff]  ;;  %v14613_v38 = vld [vmem:[#allocation22_spill] sm:$0xff] }
 0x2f4   : > { %v2436_v43 = vadd.f32 %v10374_v29, %v13271_v46  ;;  %v2533_v49 = vmax.f32 %v2425_v41, 0.0  ;;  %v2541_v18 = vmax.f32 %v2433_v1, 0.0 }
 0x2f5   : > { %v2543_v44 = vmax.f32 %v2435_v5, 0.0  ;;  %v13539_v20 = vpack.c.bf16 %v2539_v11, %v2536_v62 }
 0x2f6   : > { %v2544_v57 = vmax.f32 %v2436_v43, 0.0  ;;  %v13541_v35 = vpack.c.bf16 %v2533_v49, %v2530_v63  ;;  %v2017_v33 = vpop.f32.mrb[60].mxu0  ;;  %v10321_v40 = vpop.f32.mrb[80].mxu1  ;;  %v14614_v63 = vld [vmem:[#allocation23_spill] sm:$0xff] }
 0x2f7   : > { %v13543_v22 = vpack.c.bf16 %v2543_v44, %v2540_v12  ;;  %v10375_v51 = vadd.f32 %v2017_v33, %v14611_v4  ;;  %v2440_v6 = vadd.f32 %v10321_v40, %v13372_v42  ;;  %v2019_v47 = vpop.f32.mrb[61].mxu0  ;;  %v2192_v19 = vpop.f32.mrb[81].mxu1  ;;  %v14615_v40 = vld [vmem:[#allocation24_spill] sm:$0xff] }
 0x2f8   : > { %v13547_v29 = vpack.c.bf16 %v2544_v57, %v2541_v18  ;;  %v10376_v41 = vadd.f32 %v2019_v47, %v14613_v38  ;;  %v2434_v62 = vadd.f32 %v13372_v42, %v2192_v19  ;;  %v2021_v1 = vpop.f32.mrb[62].mxu0  ;;  %v10322_v5 = vpop.f32.mrb[82].mxu1 }
 0x2f9   : > { %14610 = vst [vmem:[#allocation20_spill] sm:$0xff] %v13543_v22  ;;  %v2438_v11 = vadd.f32 %v10375_v51, %v13266_v55  ;;  %v10377_v43 = vadd.f32 %v2021_v1, %v14614_v63  ;;  %v2443_v49 = vadd.f32 %v10322_v5, %v13372_v42  ;;  %v2023_v12 = vpop.f32.mrb[63].mxu0  ;;  %v2195_v44 = vpop.f32.mrb[83].mxu1  ;;  %v2548_v19 = vmax.f32 %v2440_v6, 0.0 }
 0x2fa   : > { %14612 = vst [vmem:[#allocation21_spill] sm:$0xff] %v13547_v29  ;;  %v2439_v33 = vadd.f32 %v10376_v41, %v13271_v46  ;;  %v10378_v4 = vadd.f32 %v2023_v12, %v14615_v40  ;;  %v2437_v18 = vadd.f32 %v13372_v42, %v2195_v44  ;;  %3334 = vmatprep.mubr.bf16.mxu1 %v13547_v29  ;;  %v2542_v47 = vmax.f32 %v2434_v62, 0.0 }
 0x2fb   : > { %3720 = vmatprep.mubr.bf16.mxu0 %v13547_v29  ;;  %v2441_v57 = vadd.f32 %v10377_v43, %v13266_v55  ;;  %v2551_v51 = vmax.f32 %v2443_v49, 0.0  ;;  %3335 = vmatmul.mubr.bf16.gmra.mrb[140].mxu1 %v13543_v22  ;;  %v2546_v1 = vmax.f32 %v2438_v11, 0.0  ;;  %v14617_v49 = vld [vmem:[#allocation25_spill] sm:$0xff]  ;;  %v14619_v11 = vld [vmem:[#allocation26_spill] sm:$0xff] }
 0x2fc   : > { %3721 = vmatmul.mubr.bf16.gmra.mrb[124].mxu0 %v13543_v22  ;;  %v2442_v38 = vadd.f32 %v10378_v4, %v13271_v46  ;;  %v2545_v41 = vmax.f32 %v2437_v18, 0.0  ;;  %v2547_v12 = vmax.f32 %v2439_v33, 0.0 }
 0x2fd   : > { %v2549_v5 = vmax.f32 %v2441_v57, 0.0  ;;  %v13563_v63 = vpack.c.bf16 %v2551_v51, %v2548_v19 }
 0x2fe   : > { %v2550_v44 = vmax.f32 %v2442_v38, 0.0  ;;  %v13565_v40 = vpack.c.bf16 %v2545_v41, %v2542_v47  ;;  %v2027_v6 = vpop.f32.mrb[64].mxu0  ;;  %v10325_v28 = vpop.f32.mrb[84].mxu1  ;;  %v14620_v47 = vld [vmem:[#allocation27_spill] sm:$0xff] }
 0x2ff   : > { %v13567_v43 = vpack.c.bf16 %v2549_v5, %v2546_v1  ;;  %v10379_v36 = vadd.f32 %v2027_v6, %v14617_v49  ;;  %v2452_v22 = vadd.f32 %v10325_v28, %v13372_v42  ;;  %v2029_v62 = vpop.f32.mrb[65].mxu0  ;;  %v2208_v29 = vpop.f32.mrb[85].mxu1  ;;  %v14621_v6 = vld [vmem:[#allocation28_spill] sm:$0xff] }
 0x300   : > { %v13571_v4 = vpack.c.bf16 %v2550_v44, %v2547_v12  ;;  %v10380_v18 = vadd.f32 %v2029_v62, %v14619_v11  ;;  %v2446_v19 = vadd.f32 %v13372_v42, %v2208_v29  ;;  %v2031_v33 = vpop.f32.mrb[66].mxu0  ;;  %v10326_v57 = vpop.f32.mrb[86].mxu1 }
 0x301   : > { %14616 = vst [vmem:[#allocation22_spill] sm:$0xff] %v13567_v43  ;;  %v2444_v51 = vadd.f32 %v10379_v36, %v13266_v55  ;;  %v10381_v38 = vadd.f32 %v2031_v33, %v14620_v47  ;;  %v2455_v41 = vadd.f32 %v10326_v57, %v13372_v42  ;;  %v2033_v1 = vpop.f32.mrb[67].mxu0  ;;  %v2211_v5 = vpop.f32.mrb[87].mxu1  ;;  %v2560_v29 = vmax.f32 %v2452_v22, 0.0 }
 0x302   : > { %14618 = vst [vmem:[#allocation23_spill] sm:$0xff] %v13571_v4  ;;  %v2445_v28 = vadd.f32 %v10380_v18, %v13271_v46  ;;  %v10382_v49 = vadd.f32 %v2033_v1, %v14621_v6  ;;  %v2449_v12 = vadd.f32 %v13372_v42, %v2211_v5  ;;  %3344 = vmatprep.mubr.bf16.mxu1 %v13571_v4  ;;  %v2554_v62 = vmax.f32 %v2446_v19, 0.0  ;;  %v14623_v19 = vld [vmem:[#allocation30_spill] sm:$0xff] }
 0x303   : > { %3730 = vmatprep.mubr.bf16.mxu0 %v13571_v4  ;;  %v2447_v44 = vadd.f32 %v10381_v38, %v13266_v55  ;;  %v2563_v36 = vmax.f32 %v2455_v41, 0.0  ;;  %3345 = vmatmul.mubr.bf16.gmra.mrb[144].mxu1 %v13567_v43  ;;  %v2552_v33 = vmax.f32 %v2444_v51, 0.0  ;;  %v14622_v38 = vld [vmem:[#allocation29_spill] sm:$0xff] }
 0x304   : > { %3731 = vmatmul.mubr.bf16.gmra.mrb[128].mxu0 %v13567_v43  ;;  %v2448_v11 = vadd.f32 %v10382_v49, %v13271_v46  ;;  %v2557_v18 = vmax.f32 %v2449_v12, 0.0  ;;  %v2553_v42 = vmax.f32 %v2445_v28, 0.0  ;;  %v14624_v12 = vld [vmem:[#allocation31_spill] sm:$0xff] }
 0x305   : > { %v2555_v57 = vmax.f32 %v2447_v44, 0.0  ;;  %v13587_v47 = vpack.c.bf16 %v2563_v36, %v2560_v29  ;;  %v14625_v36 = vld [vmem:[#allocation32_spill] sm:$0xff] }
 0x306   : > { %v2556_v1 = vmax.f32 %v2448_v11, 0.0  ;;  %v13589_v5 = vpack.c.bf16 %v2557_v18, %v2554_v62  ;;  %v2037_v22 = vpop.f32.mrb[68].mxu0  ;;  %v14626_v18 = vmov 0  }
 0x307   : > { %v13591_v6 = vpack.c.bf16 %v2555_v57, %v2552_v33  ;;  %v10383_v41 = vadd.f32 %v2037_v22, %v14622_v38  ;;  %v2039_v4 = vpop.f32.mrb[69].mxu0  ;;  %v11522_v22 = vld [vmem:[#allocation8] ss:$16 sps:$4 sm:$0xff]   ;;  %v11525_v38 = vld [vmem:[#allocation8 + $0x8] ss:$16 sps:$4 sm:$0xff]  }
 0x308   : > { %v13594_v30 = vpack.c.bf16 %v2556_v1, %v2553_v42  ;;  %v10384_v43 = vadd.f32 %v2039_v4, %v14623_v19  ;;  %v2041_v49 = vpop.f32.mrb[70].mxu0  ;;  %v11533_v19 = vld [vmem:[#allocation8 + $0x2c] ss:$16 sps:$4 sm:$0xff]  }
 0x309   : > { %v2450_v51 = vadd.f32 %v10383_v41, %v13266_v55  ;;  %v10385_v29 = vadd.f32 %v2041_v49, %v14624_v12  ;;  %v2043_v44 = vpop.f32.mrb[71].mxu0  ;;  %v11530_v41 = vld [vmem:[#allocation8 + $0x24] ss:$16 sps:$4 sm:$0xff]   ;;  %v11531_v49 = vld [vmem:[#allocation8 + $0x28] ss:$16 sps:$4 sm:$0xff]  }
 0x30a   : > { %v2451_v28 = vadd.f32 %v10384_v43, %v13271_v46  ;;  %v10386_v62 = vadd.f32 %v2043_v44, %v14625_v36  ;;  %3354 = vmatprep.mubr.bf16.mxu1 %v13594_v30  ;;  %3740 = vmatprep.mubr.bf16.mxu0 %v13594_v30  ;;  %v11539_v12 = vld [vmem:[#allocation8 + $0x4c] ss:$16 sps:$4 sm:$0xff]   ;;  %v11537_v44 = vld [vmem:[#allocation8 + $0x48] ss:$16 sps:$4 sm:$0xff]  }
 0x30b   : > { %v2453_v11 = vadd.f32 %v10385_v29, %v13266_v55  ;;  %3355 = vmatmul.mubr.bf16.gmra.mrb[148].mxu1 %v13591_v6  ;;  %v2558_v33 = vmax.f32 %v2450_v51, 0.0  ;;  %v11536_v51 = vld [vmem:[#allocation8 + $0x44] ss:$16 sps:$4 sm:$0xff]   ;;  %v11534_v29 = vld [vmem:[#allocation8 + $0x40] ss:$16 sps:$4 sm:$0xff]  }
 0x30c   : > { %3741 = vmatmul.mubr.bf16.gmra.mrb[132].mxu0 %v13591_v6  ;;  %v2454_v4 = vadd.f32 %v10386_v62, %v13271_v46  ;;  %3397 = vmatprep.mubr.bf16.mxu1 %v14626_v18  ;;  %v2559_v57 = vmax.f32 %v2451_v28, 0.0  ;;  %v11528_v46 = vld [vmem:[#allocation8 + $0x20] ss:$16 sps:$4 sm:$0xff]   ;;  %v11542_v28 = vld [vmem:[#allocation8 + $0x64] ss:$16 sps:$4 sm:$0xff]  }
 0x30d   : > { %3783 = vmatprep.mubr.bf16.mxu0 %v14626_v18  ;;  %v2561_v43 = vmax.f32 %v2453_v11, 0.0  ;;  %v11545_v36 = vld [vmem:[#allocation8 + $0x6c] ss:$16 sps:$4 sm:$0xff]   ;;  %v11540_v62 = vld [vmem:[#allocation8 + $0x60] ss:$16 sps:$4 sm:$0xff]  }
 0x30e   : > { %v2562_v42 = vmax.f32 %v2454_v4, 0.0  ;;  %v11543_v11 = vld [vmem:[#allocation8 + $0x68] ss:$16 sps:$4 sm:$0xff]   ;;  %v11548_v4 = vld [vmem:[#allocation8 + $0x84] ss:$16 sps:$4 sm:$0xff]  }
 0x30f   : > { %v13609_v1 = vpack.c.bf16 %v2561_v43, %v2558_v33  ;;  %v11551_v33 = vld [vmem:[#allocation8 + $0x8c] ss:$16 sps:$4 sm:$0xff]   ;;  %v11546_v43 = vld [vmem:[#allocation8 + $0x80] ss:$16 sps:$4 sm:$0xff]  }
 0x310   : > { %v13611_v55 = vpack.c.bf16 %v2562_v42, %v2559_v57  ;;  %v11549_v57 = vld [vmem:[#allocation8 + $0x88] ss:$16 sps:$4 sm:$0xff]   ;;  %v11554_v42 = vld [vmem:[#allocation8 + $0xa4] ss:$16 sps:$4 sm:$0xff]  }
 0x313   : > { %9369 = vmatmul.mubr.msk.bf16.vlgmr.msra.gmra.mrb[88].mxu1 %vm3123_vm2, %v13395_v34 }
 0x314   : > { %9385 = vmatmul.mubr.msk.bf16.vlgmr.msra.gmra.mrb[72].mxu0 %vm3123_vm2, %v13395_v34  ;;  %4308 = vmatpush1.bf16.msra.mxu1 %v11522_v22  ;;  %v11557_v22 = vld [vmem:[#allocation8 + $0xac] ss:$16 sps:$4 sm:$0xff]  }
 0x315   : > { %4694 = vmatpush1.bf16.msra.mxu0 %v11525_v38  ;;  %3407 = vmatprep.mubr.bf16.mxu1 %v14626_v18  ;;  %v11552_v38 = vld [vmem:[#allocation8 + $0xa0] ss:$16 sps:$4 sm:$0xff]  }
 0x316   : > { %3793 = vmatprep.mubr.bf16.mxu0 %v14626_v18  ;;  %4309 = vmatprep.subr.bf16.mxu1 %v11530_v41  ;;  %v11555_v41 = vld [vmem:[#allocation8 + $0xa8] ss:$16 sps:$4 sm:$0xff]  }
 0x317   : > { %4695 = vmatprep.subr.bf16.mxu0 %v11533_v19  ;;  %v11560_v19 = vld [vmem:[#allocation8 + $0xc4] ss:$16 sps:$4 sm:$0xff]  }
 0x318   : > { %4310 = vmatpush1.bf16.msra.mxu1 %v11528_v46  ;;  %v11563_v46 = vld [vmem:[#allocation8 + $0xcc] ss:$16 sps:$4 sm:$0xff]  }
 0x319   : > { %4696 = vmatpush1.bf16.msra.mxu0 %v11531_v49  ;;  %4311 = vmatprep.subr.bf16.mxu1 %v11536_v51  ;;  %v11558_v49 = vld [vmem:[#allocation8 + $0xc0] ss:$16 sps:$4 sm:$0xff]   ;;  %v11561_v51 = vld [vmem:[#allocation8 + $0xc8] ss:$16 sps:$4 sm:$0xff]  }
 0x31a   : > { %4697 = vmatprep.subr.bf16.mxu0 %v11539_v12  ;;  %v11566_v12 = vld [vmem:[#allocation8 + $0xe4] ss:$16 sps:$4 sm:$0xff]  }
 0x31b   : > { %9370 = vmatmul.mubr.msk.bf16.gmra.mrb[92].mxu1 %vm3123_vm2, %v13421_v14 }
 0x31c   : > { %9386 = vmatmul.mubr.msk.bf16.gmra.mrb[76].mxu0 %vm3123_vm2, %v13421_v14  ;;  %3417 = vmatprep.mubr.bf16.mxu1 %v14626_v18 }
 0x31d   : > { %3803 = vmatprep.mubr.bf16.mxu0 %v14626_v18  ;;  %4312 = vmatpush1.bf16.msra.mxu1 %v11534_v29  ;;  %v11569_v29 = vld [vmem:[#allocation8 + $0xec] ss:$16 sps:$4 sm:$0xff]  }
 0x31e   : > { %4698 = vmatpush1.bf16.msra.mxu0 %v11537_v44  ;;  %4313 = vmatprep.subr.bf16.mxu1 %v11542_v28  ;;  %v11564_v44 = vld [vmem:[#allocation8 + $0xe0] ss:$16 sps:$4 sm:$0xff]   ;;  %v11567_v28 = vld [vmem:[#allocation8 + $0xe8] ss:$16 sps:$4 sm:$0xff]  }
 0x31f   : > { %4699 = vmatprep.subr.bf16.mxu0 %v11545_v36  ;;  %v11572_v36 = vld [vmem:[#allocation8 + $0x104] ss:$16 sps:$4 sm:$0xff]  }
 0x321   : > { %4314 = vmatpush1.bf16.msra.mxu1 %v11540_v62  ;;  %v11575_v62 = vld [vmem:[#allocation8 + $0x10c] ss:$16 sps:$4 sm:$0xff]  }
 0x322   : > { %4700 = vmatpush1.bf16.msra.mxu0 %v11543_v11  ;;  %4315 = vmatprep.subr.bf16.mxu1 %v11548_v4  ;;  %v11570_v11 = vld [vmem:[#allocation8 + $0x100] ss:$16 sps:$4 sm:$0xff]   ;;  %v11573_v4 = vld [vmem:[#allocation8 + $0x108] ss:$16 sps:$4 sm:$0xff]  }
 0x323   : > { %4701 = vmatprep.subr.bf16.mxu0 %v11551_v33  ;;  %9371 = vmatmul.mubr.msk.bf16.gmra.mrb[96].mxu1 %vm3123_vm2, %v13419_v26  ;;  %v11578_v33 = vld [vmem:[#allocation8 + $0x124] ss:$16 sps:$4 sm:$0xff]  }
 0x324   : > { %9387 = vmatmul.mubr.msk.bf16.gmra.mrb[80].mxu0 %vm3123_vm2, %v13419_v26  ;;  %3427 = vmatprep.mubr.bf16.mxu1 %v14626_v18 }
 0x325   : > { %3813 = vmatprep.mubr.bf16.mxu0 %v14626_v18  ;;  %4316 = vmatpush1.bf16.msra.mxu1 %v11546_v43  ;;  %v11581_v43 = vld [vmem:[#allocation8 + $0x12c] ss:$16 sps:$4 sm:$0xff]  }
 0x326   : > { %4702 = vmatpush1.bf16.msra.mxu0 %v11549_v57  ;;  %4317 = vmatprep.subr.bf16.mxu1 %v11554_v42  ;;  %v11576_v57 = vld [vmem:[#allocation8 + $0x120] ss:$16 sps:$4 sm:$0xff]   ;;  %v11579_v42 = vld [vmem:[#allocation8 + $0x128] ss:$16 sps:$4 sm:$0xff]  }
 0x327   : > { %4703 = vmatprep.subr.bf16.mxu0 %v11557_v22  ;;  %v11584_v22 = vld [vmem:[#allocation8 + $0x144] ss:$16 sps:$4 sm:$0xff]  }
 0x329   : > { %4318 = vmatpush1.bf16.msra.mxu1 %v11552_v38  ;;  %v11587_v38 = vld [vmem:[#allocation8 + $0x14c] ss:$16 sps:$4 sm:$0xff]  }
 0x32a   : > { %4704 = vmatpush1.bf16.msra.mxu0 %v11555_v41  ;;  %4319 = vmatprep.subr.bf16.mxu1 %v11560_v19  ;;  %v11582_v41 = vld [vmem:[#allocation8 + $0x140] ss:$16 sps:$4 sm:$0xff]   ;;  %v11585_v19 = vld [vmem:[#allocation8 + $0x148] ss:$16 sps:$4 sm:$0xff]  }
 0x32b   : > { %4705 = vmatprep.subr.bf16.mxu0 %v11563_v46  ;;  %9372 = vmatmul.mubr.msk.bf16.gmra.mrb[100].mxu1 %vm3123_vm2, %v13445_v53  ;;  %v11590_v46 = vld [vmem:[#allocation8 + $0x164] ss:$16 sps:$4 sm:$0xff]  }
 0x32c   : > { %9388 = vmatmul.mubr.msk.bf16.gmra.mrb[84].mxu0 %vm3123_vm2, %v13445_v53  ;;  %3437 = vmatprep.mubr.bf16.mxu1 %v14626_v18 }
 0x32d   : > { %3823 = vmatprep.mubr.bf16.mxu0 %v14626_v18  ;;  %4320 = vmatpush1.bf16.msra.mxu1 %v11558_v49  ;;  %v11593_v49 = vld [vmem:[#allocation8 + $0x16c] ss:$16 sps:$4 sm:$0xff]  }
 0x32e   : > { %4706 = vmatpush1.bf16.msra.mxu0 %v11561_v51  ;;  %4321 = vmatprep.subr.bf16.mxu1 %v11566_v12  ;;  %v11588_v51 = vld [vmem:[#allocation8 + $0x160] ss:$16 sps:$4 sm:$0xff]   ;;  %v11591_v12 = vld [vmem:[#allocation8 + $0x168] ss:$16 sps:$4 sm:$0xff]  }
 0x32f   : > { %4707 = vmatprep.subr.bf16.mxu0 %v11569_v29  ;;  %v11596_v29 = vld [vmem:[#allocation8 + $0x184] ss:$16 sps:$4 sm:$0xff]  }
 0x331   : > { %4322 = vmatpush1.bf16.msra.mxu1 %v11564_v44  ;;  %v11599_v44 = vld [vmem:[#allocation8 + $0x18c] ss:$16 sps:$4 sm:$0xff]  }
 0x332   : > { %4708 = vmatpush1.bf16.msra.mxu0 %v11567_v28  ;;  %4323 = vmatprep.subr.bf16.mxu1 %v11572_v36  ;;  %v11594_v28 = vld [vmem:[#allocation8 + $0x180] ss:$16 sps:$4 sm:$0xff]   ;;  %v11597_v36 = vld [vmem:[#allocation8 + $0x188] ss:$16 sps:$4 sm:$0xff]  }
 0x333   : > { %4709 = vmatprep.subr.bf16.mxu0 %v11575_v62  ;;  %9373 = vmatmul.mubr.msk.bf16.gmra.mrb[104].mxu1 %vm3123_vm2, %v13443_v45  ;;  %v11602_v62 = vld [vmem:[#allocation8 + $0x1a4] ss:$16 sps:$4 sm:$0xff]  }
 0x334   : > { %9389 = vmatmul.mubr.msk.bf16.gmra.mrb[88].mxu0 %vm3123_vm2, %v13443_v45  ;;  %3447 = vmatprep.mubr.bf16.mxu1 %v14626_v18 }
 0x335   : > { %3833 = vmatprep.mubr.bf16.mxu0 %v14626_v18  ;;  %4324 = vmatpush1.bf16.msra.mxu1 %v11570_v11  ;;  %v11605_v11 = vld [vmem:[#allocation8 + $0x1ac] ss:$16 sps:$4 sm:$0xff]  }
 0x336   : > { %4710 = vmatpush1.bf16.msra.mxu0 %v11573_v4  ;;  %4325 = vmatprep.subr.bf16.mxu1 %v11578_v33  ;;  %v11600_v4 = vld [vmem:[#allocation8 + $0x1a0] ss:$16 sps:$4 sm:$0xff]   ;;  %v11603_v33 = vld [vmem:[#allocation8 + $0x1a8] ss:$16 sps:$4 sm:$0xff]  }
 0x337   : > { %4711 = vmatprep.subr.bf16.mxu0 %v11581_v43  ;;  %v11608_v43 = vld [vmem:[#allocation8 + $0x1c4] ss:$16 sps:$4 sm:$0xff]  }
 0x339   : > { %4326 = vmatpush1.bf16.msra.mxu1 %v11576_v57  ;;  %v11611_v57 = vld [vmem:[#allocation8 + $0x1cc] ss:$16 sps:$4 sm:$0xff]  }
 0x33a   : > { %4712 = vmatpush1.bf16.msra.mxu0 %v11579_v42  ;;  %4327 = vmatprep.subr.bf16.mxu1 %v11584_v22  ;;  %v11606_v42 = vld [vmem:[#allocation8 + $0x1c0] ss:$16 sps:$4 sm:$0xff]   ;;  %v11609_v22 = vld [vmem:[#allocation8 + $0x1c8] ss:$16 sps:$4 sm:$0xff]  }
 0x33b   : > { %4713 = vmatprep.subr.bf16.mxu0 %v11587_v38  ;;  %9374 = vmatmul.mubr.msk.bf16.gmra.mrb[108].mxu1 %vm3123_vm2, %v13469_v56  ;;  %v11614_v38 = vld [vmem:[#allocation8 + $0x1e4] ss:$16 sps:$4 sm:$0xff]  }
 0x33c   : > { %9390 = vmatmul.mubr.msk.bf16.gmra.mrb[92].mxu0 %vm3123_vm2, %v13469_v56  ;;  %3457 = vmatprep.mubr.bf16.mxu1 %v14626_v18 }
 0x33d   : > { %3843 = vmatprep.mubr.bf16.mxu0 %v14626_v18  ;;  %4328 = vmatpush1.bf16.msra.mxu1 %v11582_v41  ;;  %v11617_v41 = vld [vmem:[#allocation8 + $0x1ec] ss:$16 sps:$4 sm:$0xff]  }
 0x33e   : > { %4714 = vmatpush1.bf16.msra.mxu0 %v11585_v19  ;;  %4329 = vmatprep.subr.bf16.mxu1 %v11590_v46  ;;  %v11612_v19 = vld [vmem:[#allocation8 + $0x1e0] ss:$16 sps:$4 sm:$0xff]   ;;  %v11615_v46 = vld [vmem:[#allocation8 + $0x1e8] ss:$16 sps:$4 sm:$0xff]  }
 0x33f   : > { %4715 = vmatprep.subr.bf16.mxu0 %v11593_v49  ;;  %v11620_v49 = vld [vmem:[#allocation8 + $0x204] ss:$16 sps:$4 sm:$0xff]  }
 0x341   : > { %4330 = vmatpush1.bf16.msra.mxu1 %v11588_v51  ;;  %v11623_v51 = vld [vmem:[#allocation8 + $0x20c] ss:$16 sps:$4 sm:$0xff]  }
 0x342   : > { %4716 = vmatpush1.bf16.msra.mxu0 %v11591_v12  ;;  %4331 = vmatprep.subr.bf16.mxu1 %v11596_v29  ;;  %v14627_v12 = vld [vmem:[#allocation35_spill] sm:$0xff] }
 0x343   : > { %4717 = vmatprep.subr.bf16.mxu0 %v11599_v44  ;;  %9375 = vmatmul.mubr.msk.bf16.gmra.mrb[112].mxu1 %vm3123_vm2, %v13467_v54  ;;  %v11618_v29 = vld [vmem:[#allocation8 + $0x200] ss:$16 sps:$4 sm:$0xff]   ;;  %v11621_v44 = vld [vmem:[#allocation8 + $0x208] ss:$16 sps:$4 sm:$0xff]  }
 0x344   : > { %9391 = vmatmul.mubr.msk.bf16.gmra.mrb[96].mxu0 %vm3123_vm2, %v13467_v54  ;;  %3467 = vmatprep.mubr.bf16.mxu1 %v14626_v18 }
 0x345   : > { %3853 = vmatprep.mubr.bf16.mxu0 %v14626_v18  ;;  %4332 = vmatpush1.bf16.msra.mxu1 %v11594_v28  ;;  %v11626_v28 = vld [vmem:[#allocation8 + $0x224] ss:$16 sps:$4 sm:$0xff]  }
 0x346   : > { %4718 = vmatpush1.bf16.msra.mxu0 %v11597_v36  ;;  %4333 = vmatprep.subr.bf16.mxu1 %v11602_v62  ;;  %v11629_v36 = vld [vmem:[#allocation8 + $0x22c] ss:$16 sps:$4 sm:$0xff]  }
 0x347   : > { %4719 = vmatprep.subr.bf16.mxu0 %v11605_v11  ;;  %v14628_v62 = vld [vmem:[#allocation34_spill] sm:$0xff]  ;;  %v14629_v11 = vld [vmem:[#allocation36_spill] sm:$0xff] }
 0x349   : > { %4334 = vmatpush1.bf16.msra.mxu1 %v11600_v4  ;;  %v11624_v4 = vld [vmem:[#allocation8 + $0x220] ss:$16 sps:$4 sm:$0xff]  }
 0x34a   : > { %4720 = vmatpush1.bf16.msra.mxu0 %v11603_v33  ;;  %4335 = vmatprep.subr.bf16.mxu1 %v11608_v43  ;;  %v11627_v33 = vld [vmem:[#allocation8 + $0x228] ss:$16 sps:$4 sm:$0xff]   ;;  %v11632_v43 = vld [vmem:[#allocation8 + $0x484] ss:$16 sps:$4 sm:$0xff]  }
 0x34b   : > { %4721 = vmatprep.subr.bf16.mxu0 %v11611_v57  ;;  %9376 = vmatmul.mubr.msk.bf16.gmra.mrb[116].mxu1 %vm3123_vm2, %v13493_v0  ;;  %v11635_v57 = vld [vmem:[#allocation8 + $0x48c] ss:$16 sps:$4 sm:$0xff]  }
 0x34c   : > { %9392 = vmatmul.mubr.msk.bf16.gmra.mrb[100].mxu0 %vm3123_vm2, %v13493_v0  ;;  %3477 = vmatprep.mubr.bf16.mxu1 %v14626_v18 }
 0x34d   : > { %3863 = vmatprep.mubr.bf16.mxu0 %v14626_v18  ;;  %4336 = vmatpush1.bf16.msra.mxu1 %v11606_v42  ;;  %v14631_v42 = vld [vmem:[#allocation39_spill] sm:$0xff] }
 0x34e   : > { %4722 = vmatpush1.bf16.msra.mxu0 %v11609_v22  ;;  %4337 = vmatprep.subr.bf16.mxu1 %v11614_v38  ;;  %v14632_v22 = vld [vmem:[#allocation21_spill] sm:$0xff]  ;;  %v14633_v38 = vld [vmem:[#allocation20_spill] sm:$0xff] }
 0x34f   : > { %4723 = vmatprep.subr.bf16.mxu0 %v11617_v41  ;;  %v14634_v41 = vld [vmem:[#allocation23_spill] sm:$0xff] }
 0x351   : > { %4338 = vmatpush1.bf16.msra.mxu1 %v11612_v19  ;;  %v14635_v19 = vld [vmem:[#allocation22_spill] sm:$0xff] }
 0x352   : > { %4724 = vmatpush1.bf16.msra.mxu0 %v11615_v46  ;;  %4500 = vmatprep.subr.bf16.mxu1 %v11620_v49  ;;  %v11630_v46 = vld [vmem:[#allocation8 + $0x480] ss:$16 sps:$4 sm:$0xff]   ;;  %v11633_v49 = vld [vmem:[#allocation8 + $0x488] ss:$16 sps:$4 sm:$0xff]  }
 0x353   : > { %4886 = vmatprep.subr.bf16.mxu0 %v11623_v51  ;;  %9377 = vmatmul.mubr.msk.bf16.gmra.mrb[120].mxu1 %vm3123_vm2, %v13491_v58  ;;  %v11638_v51 = vld [vmem:[#allocation8 + $0x4a4] ss:$16 sps:$4 sm:$0xff]  }
 0x354   : > { %9393 = vmatmul.mubr.msk.bf16.gmra.mrb[104].mxu0 %vm3123_vm2, %v13491_v58  ;;  %3487 = vmatprep.mubr.bf16.mxu1 %v14626_v18 }
 0x355   : > { %3873 = vmatprep.mubr.bf16.mxu0 %v14626_v18 }
 0x35b   : > { %9378 = vmatmul.mubr.msk.bf16.gmra.mrb[124].mxu1 %vm3123_vm2, %v13517_v10 }
 0x35c   : > { %9394 = vmatmul.mubr.msk.bf16.gmra.mrb[108].mxu0 %vm3123_vm2, %v13517_v10  ;;  %3497 = vmatprep.mubr.bf16.mxu1 %v14626_v18 }
 0x35d   : > { %3883 = vmatprep.mubr.bf16.mxu0 %v14626_v18 }
 0x363   : > { %9379 = vmatmul.mubr.msk.bf16.gmra.mrb[128].mxu1 %vm3123_vm2, %v13515_v3 }
 0x364   : > { %9395 = vmatmul.mubr.msk.bf16.gmra.mrb[112].mxu0 %vm3123_vm2, %v13515_v3  ;;  %3507 = vmatprep.mubr.bf16.mxu1 %v14626_v18 }
 0x365   : > { %3893 = vmatprep.mubr.bf16.mxu0 %v14626_v18 }
 0x36b   : > { %9380 = vmatmul.mubr.msk.bf16.gmra.mrb[132].mxu1 %vm3123_vm2, %v13541_v35 }
 0x36c   : > { %9396 = vmatmul.mubr.msk.bf16.gmra.mrb[116].mxu0 %vm3123_vm2, %v13541_v35  ;;  %3517 = vmatprep.mubr.bf16.mxu1 %v14626_v18 }
 0x36d   : > { %3903 = vmatprep.mubr.bf16.mxu0 %v14626_v18 }
 0x373   : > { %9381 = vmatmul.mubr.msk.bf16.gmra.mrb[136].mxu1 %vm3123_vm2, %v13539_v20 }
 0x374   : > { %9397 = vmatmul.mubr.msk.bf16.gmra.mrb[120].mxu0 %vm3123_vm2, %v13539_v20  ;;  %3527 = vmatprep.mubr.bf16.mxu1 %v14626_v18 }
 0x375   : > { %3913 = vmatprep.mubr.bf16.mxu0 %v14626_v18 }
 0x37b   : > { %9382 = vmatmul.mubr.msk.bf16.gmra.mrb[140].mxu1 %vm3123_vm2, %v13565_v40 }
 0x37c   : > { %9398 = vmatmul.mubr.msk.bf16.gmra.mrb[124].mxu0 %vm3123_vm2, %v13565_v40  ;;  %3537 = vmatprep.mubr.bf16.mxu1 %v14626_v18 }
 0x37d   : > { %3923 = vmatprep.mubr.bf16.mxu0 %v14626_v18 }
 0x383   : > { %9383 = vmatmul.mubr.msk.bf16.gmra.mrb[144].mxu1 %vm3123_vm2, %v13563_v63 }
 0x384   : > { %9399 = vmatmul.mubr.msk.bf16.gmra.mrb[128].mxu0 %vm3123_vm2, %v13563_v63  ;;  %3547 = vmatprep.mubr.bf16.mxu1 %v14626_v18 }
 0x385   : > { %3933 = vmatprep.mubr.bf16.mxu0 %v14626_v18 }
 0x38b   : > { %9384 = vmatmul.mubr.msk.bf16.gmra.mrb[148].mxu1 %vm3123_vm2, %v13589_v5 }
 0x38c   : > { %9400 = vmatmul.mubr.msk.bf16.gmra.mrb[132].mxu0 %vm3123_vm2, %v13589_v5  ;;  %4339 = vmatprep.mubr.bf16.mxu1 %v14627_v12 }
 0x38d   : > { %4725 = vmatprep.mubr.bf16.mxu0 %v14627_v12  ;;  %v11641_v12 = vld [vmem:[#allocation8 + $0x4ac] ss:$16 sps:$4 sm:$0xff]  }
 0x393   : > { %4340 = vmatmul.mubr.bf16.vlgmr.msra.gmra.mrb[88].mxu1 %v14628_v62 }
 0x394   : > { %4726 = vmatmul.mubr.bf16.vlgmr.msra.gmra.mrb[72].mxu0 %v14628_v62  ;;  %4349 = vmatprep.mubr.bf16.mxu1 %v14629_v11  ;;  %v11647_v62 = vld [vmem:[#allocation8 + $0x4cc] ss:$16 sps:$4 sm:$0xff]  }
 0x395   : > { %4501 = vmatpush1.bf16.msra.mxu1 %v11618_v29  ;;  %4735 = vmatprep.mubr.bf16.mxu0 %v14629_v11  ;;  %v14636_v29 = vld [vmem:[#allocation38_spill] sm:$0xff]  ;;  %v11642_v11 = vld [vmem:[#allocation8 + $0x4c0] ss:$16 sps:$4 sm:$0xff]  }
 0x396   : > { %4887 = vmatpush1.bf16.msra.mxu0 %v11621_v44  ;;  %4502 = vmatprep.subr.bf16.mxu1 %v11626_v28  ;;  %v11636_v44 = vld [vmem:[#allocation8 + $0x4a0] ss:$16 sps:$4 sm:$0xff]   ;;  %v11639_v28 = vld [vmem:[#allocation8 + $0x4a8] ss:$16 sps:$4 sm:$0xff]  }
 0x397   : > { %4888 = vmatprep.subr.bf16.mxu0 %v11629_v36  ;;  %v11644_v36 = vld [vmem:[#allocation8 + $0x4c4] ss:$16 sps:$4 sm:$0xff]  }
 0x399   : > { %4503 = vmatpush1.bf16.msra.mxu1 %v11624_v4  ;;  %v11645_v4 = vld [vmem:[#allocation8 + $0x4c8] ss:$16 sps:$4 sm:$0xff]  }
 0x39a   : > { %4889 = vmatpush1.bf16.msra.mxu0 %v11627_v33  ;;  %5515 = vmatprep.subr.bf16.mxu1 %v11632_v43  ;;  %v11650_v33 = vld [vmem:[#allocation8 + $0x4e4] ss:$16 sps:$4 sm:$0xff]   ;;  %v11653_v43 = vld [vmem:[#allocation8 + $0x4ec] ss:$16 sps:$4 sm:$0xff]  }
 0x39b   : > { %5901 = vmatprep.subr.bf16.mxu0 %v11635_v57  ;;  %4350 = vmatmul.mubr.bf16.gmra.mrb[92].mxu1 %v13285_v13  ;;  %v11648_v57 = vld [vmem:[#allocation8 + $0x4e0] ss:$16 sps:$4 sm:$0xff]  }
 0x39c   : > { %4736 = vmatmul.mubr.bf16.gmra.mrb[76].mxu0 %v13285_v13  ;;  %4359 = vmatprep.mubr.bf16.mxu1 %v13299_v52  ;;  %v14630_v13 = vld [vmem:[#allocation37_spill] sm:$0xff] }
 0x39d   : > { %4745 = vmatprep.mubr.bf16.mxu0 %v13299_v52 }
 0x3a3   : > { %4360 = vmatmul.mubr.bf16.gmra.mrb[96].mxu1 %v13297_v9 }
 0x3a4   : > { %4746 = vmatmul.mubr.bf16.gmra.mrb[80].mxu0 %v13297_v9  ;;  %4369 = vmatprep.mubr.bf16.mxu1 %v13311_v60 }
 0x3a5   : > { %4755 = vmatprep.mubr.bf16.mxu0 %v13311_v60 }
 0x3ab   : > { %4370 = vmatmul.mubr.bf16.gmra.mrb[100].mxu1 %v13309_v17 }
 0x3ac   : > { %4756 = vmatmul.mubr.bf16.gmra.mrb[84].mxu0 %v13309_v17  ;;  %4379 = vmatprep.mubr.bf16.mxu1 %v13323_v59 }
 0x3ad   : > { %4765 = vmatprep.mubr.bf16.mxu0 %v13323_v59 }
 0x3b3   : > { %4380 = vmatmul.mubr.bf16.gmra.mrb[104].mxu1 %v14630_v13 }
 0x3b4   : > { %4766 = vmatmul.mubr.bf16.gmra.mrb[88].mxu0 %v14630_v13  ;;  %4389 = vmatprep.mubr.bf16.mxu1 %v13340_v32 }
 0x3b5   : > { %4775 = vmatprep.mubr.bf16.mxu0 %v13340_v32 }
 0x3bb   : > { %4390 = vmatmul.mubr.bf16.gmra.mrb[108].mxu1 %v13337_v27 }
 0x3bc   : > { %4776 = vmatmul.mubr.bf16.gmra.mrb[92].mxu0 %v13337_v27  ;;  %4399 = vmatprep.mubr.bf16.mxu1 %v13357_v23 }
 0x3bd   : > { %4785 = vmatprep.mubr.bf16.mxu0 %v13357_v23 }
 0x3c3   : > { %4400 = vmatmul.mubr.bf16.gmra.mrb[112].mxu1 %v13353_v37 }
 0x3c4   : > { %4786 = vmatmul.mubr.bf16.gmra.mrb[96].mxu0 %v13353_v37  ;;  %4409 = vmatprep.mubr.bf16.mxu1 %v13379_v15 }
 0x3c5   : > { %4795 = vmatprep.mubr.bf16.mxu0 %v13379_v15 }
 0x3cb   : > { %4410 = vmatmul.mubr.bf16.gmra.mrb[116].mxu1 %v13375_v24 }
 0x3cc   : > { %4796 = vmatmul.mubr.bf16.gmra.mrb[100].mxu0 %v13375_v24  ;;  %4419 = vmatprep.mubr.bf16.mxu1 %v13403_v48 }
 0x3cd   : > { %4805 = vmatprep.mubr.bf16.mxu0 %v13403_v48 }
 0x3d3   : > { %4420 = vmatmul.mubr.bf16.gmra.mrb[120].mxu1 %v13399_v2 }
 0x3d4   : > { %4806 = vmatmul.mubr.bf16.gmra.mrb[104].mxu0 %v13399_v2  ;;  %4429 = vmatprep.mubr.bf16.mxu1 %v13427_v50 }
 0x3d5   : > { %4815 = vmatprep.mubr.bf16.mxu0 %v13427_v50 }
 0x3db   : > { %4430 = vmatmul.mubr.bf16.gmra.mrb[124].mxu1 %v13423_v8 }
 0x3dc   : > { %4816 = vmatmul.mubr.bf16.gmra.mrb[108].mxu0 %v13423_v8  ;;  %4439 = vmatprep.mubr.bf16.mxu1 %v13451_v61 }
 0x3dd   : > { %4825 = vmatprep.mubr.bf16.mxu0 %v13451_v61 }
 0x3e3   : > { %4440 = vmatmul.mubr.bf16.gmra.mrb[128].mxu1 %v13447_v21 }
 0x3e4   : > { %4826 = vmatmul.mubr.bf16.gmra.mrb[112].mxu0 %v13447_v21  ;;  %4449 = vmatprep.mubr.bf16.mxu1 %v13475_v7 }
 0x3e5   : > { %4835 = vmatprep.mubr.bf16.mxu0 %v13475_v7 }
 0x3eb   : > { %4450 = vmatmul.mubr.bf16.gmra.mrb[132].mxu1 %v13471_v25 }
 0x3ec   : > { %4836 = vmatmul.mubr.bf16.gmra.mrb[116].mxu0 %v13471_v25  ;;  %4459 = vmatprep.mubr.bf16.mxu1 %v13499_v16 }
 0x3ed   : > { %4845 = vmatprep.mubr.bf16.mxu0 %v13499_v16 }
 0x3f3   : > { %4460 = vmatmul.mubr.bf16.gmra.mrb[136].mxu1 %v13495_v39 }
 0x3f4   : > { %4846 = vmatmul.mubr.bf16.gmra.mrb[120].mxu0 %v13495_v39  ;;  %4469 = vmatprep.mubr.bf16.mxu1 %v13523_v31 }
 0x3f5   : > { %4855 = vmatprep.mubr.bf16.mxu0 %v13523_v31 }
 0x3fb   : > { %4470 = vmatmul.mubr.bf16.gmra.mrb[140].mxu1 %v14631_v42 }
 0x3fc   : > { %4856 = vmatmul.mubr.bf16.gmra.mrb[124].mxu0 %v14631_v42  ;;  %4479 = vmatprep.mubr.bf16.mxu1 %v14632_v22 }
 0x3fd   : > { %4865 = vmatprep.mubr.bf16.mxu0 %v14632_v22 }
 0x403   : > { %4480 = vmatmul.mubr.bf16.gmra.mrb[144].mxu1 %v14633_v38 }
 0x404   : > { %4866 = vmatmul.mubr.bf16.gmra.mrb[128].mxu0 %v14633_v38  ;;  %4489 = vmatprep.mubr.bf16.mxu1 %v14634_v41 }
 0x405   : > { %4875 = vmatprep.mubr.bf16.mxu0 %v14634_v41 }
 0x40b   : > { %4490 = vmatmul.mubr.bf16.gmra.mrb[148].mxu1 %v14635_v19 }
 0x40c   : > { %4876 = vmatmul.mubr.bf16.gmra.mrb[132].mxu0 %v14635_v19  ;;  %4532 = vmatprep.mubr.bf16.mxu1 %v14626_v18 }
 0x40d   : > { %4918 = vmatprep.mubr.bf16.mxu0 %v14626_v18 }
 0x413   : > { %9473 = vmatmul.mubr.msk.bf16.vlgmr.msra.gmra.mrb[88].mxu1 %vm3123_vm2, %v14636_v29 }
 0x414   : > { %9489 = vmatmul.mubr.msk.bf16.vlgmr.msra.gmra.mrb[72].mxu0 %vm3123_vm2, %v14636_v29  ;;  %5516 = vmatpush1.bf16.msra.mxu1 %v11630_v46  ;;  %v11651_v46 = vld [vmem:[#allocation8 + $0x4e8] ss:$16 sps:$4 sm:$0xff]  }
 0x415   : > { %5902 = vmatpush1.bf16.msra.mxu0 %v11633_v49  ;;  %4542 = vmatprep.mubr.bf16.mxu1 %v14626_v18  ;;  %v11656_v49 = vld [vmem:[#allocation8 + $0x504] ss:$16 sps:$4 sm:$0xff]   ;;  %v11657_v29 = vld [vmem:[#allocation8 + $0x508] ss:$16 sps:$4 sm:$0xff]  }
 0x416   : > { %4928 = vmatprep.mubr.bf16.mxu0 %v14626_v18  ;;  %5517 = vmatprep.subr.bf16.mxu1 %v11638_v51  ;;  %v11659_v51 = vld [vmem:[#allocation8 + $0x50c] ss:$16 sps:$4 sm:$0xff]  }
 0x417   : > { %5903 = vmatprep.subr.bf16.mxu0 %v11641_v12  ;;  %v11654_v12 = vld [vmem:[#allocation8 + $0x500] ss:$16 sps:$4 sm:$0xff]  }
 0x418   : > { %5518 = vmatpush1.bf16.msra.mxu1 %v11636_v44  ;;  %v11662_v44 = vld [vmem:[#allocation8 + $0x524] ss:$16 sps:$4 sm:$0xff]  }
 0x419   : > { %5904 = vmatpush1.bf16.msra.mxu0 %v11639_v28  ;;  %5519 = vmatprep.subr.bf16.mxu1 %v11644_v36  ;;  %v11660_v28 = vld [vmem:[#allocation8 + $0x520] ss:$16 sps:$4 sm:$0xff]   ;;  %v11663_v36 = vld [vmem:[#allocation8 + $0x528] ss:$16 sps:$4 sm:$0xff]  }
 0x41a   : > { %5905 = vmatprep.subr.bf16.mxu0 %v11647_v62  ;;  %v11668_v62 = vld [vmem:[#allocation8 + $0x544] ss:$16 sps:$4 sm:$0xff]  }
 0x41b   : > { %9474 = vmatmul.mubr.msk.bf16.gmra.mrb[92].mxu1 %vm3123_vm2, %v13395_v34 }
 0x41c   : > { %9490 = vmatmul.mubr.msk.bf16.gmra.mrb[76].mxu0 %vm3123_vm2, %v13395_v34  ;;  %4552 = vmatprep.mubr.bf16.mxu1 %v14626_v18  ;;  %v11665_v34 = vld [vmem:[#allocation8 + $0x52c] ss:$16 sps:$4 sm:$0xff]  }
 0x41d   : > { %4938 = vmatprep.mubr.bf16.mxu0 %v14626_v18  ;;  %5520 = vmatpush1.bf16.msra.mxu1 %v11642_v11  ;;  %v11671_v11 = vld [vmem:[#allocation8 + $0x54c] ss:$16 sps:$4 sm:$0xff]  }
 0x41e   : > { %5906 = vmatpush1.bf16.msra.mxu0 %v11645_v4  ;;  %5521 = vmatprep.subr.bf16.mxu1 %v11650_v33  ;;  %v11666_v4 = vld [vmem:[#allocation8 + $0x540] ss:$16 sps:$4 sm:$0xff]   ;;  %v11669_v33 = vld [vmem:[#allocation8 + $0x548] ss:$16 sps:$4 sm:$0xff]  }
 0x41f   : > { %5907 = vmatprep.subr.bf16.mxu0 %v11653_v43  ;;  %v11674_v43 = vld [vmem:[#allocation8 + $0x564] ss:$16 sps:$4 sm:$0xff]  }
 0x421   : > { %5522 = vmatpush1.bf16.msra.mxu1 %v11648_v57  ;;  %v11677_v57 = vld [vmem:[#allocation8 + $0x56c] ss:$16 sps:$4 sm:$0xff]  }
 0x422   : > { %5908 = vmatpush1.bf16.msra.mxu0 %v11651_v46  ;;  %5523 = vmatprep.subr.bf16.mxu1 %v11656_v49  ;;  %v11672_v46 = vld [vmem:[#allocation8 + $0x560] ss:$16 sps:$4 sm:$0xff]   ;;  %v11675_v49 = vld [vmem:[#allocation8 + $0x568] ss:$16 sps:$4 sm:$0xff]  }
 0x423   : > { %5909 = vmatprep.subr.bf16.mxu0 %v11659_v51  ;;  %9475 = vmatmul.mubr.msk.bf16.gmra.mrb[96].mxu1 %vm3123_vm2, %v13421_v14  ;;  %v11680_v51 = vld [vmem:[#allocation8 + $0x584] ss:$16 sps:$4 sm:$0xff]  }
 0x424   : > { %9491 = vmatmul.mubr.msk.bf16.gmra.mrb[80].mxu0 %vm3123_vm2, %v13421_v14  ;;  %4562 = vmatprep.mubr.bf16.mxu1 %v14626_v18 }
 0x425   : > { %4948 = vmatprep.mubr.bf16.mxu0 %v14626_v18  ;;  %5524 = vmatpush1.bf16.msra.mxu1 %v11654_v12  ;;  %v11683_v12 = vld [vmem:[#allocation8 + $0x58c] ss:$16 sps:$4 sm:$0xff]  }
 0x426   : > { %5910 = vmatpush1.bf16.msra.mxu0 %v11657_v29  ;;  %5525 = vmatprep.subr.bf16.mxu1 %v11662_v44  ;;  %v11678_v29 = vld [vmem:[#allocation8 + $0x580] ss:$16 sps:$4 sm:$0xff]   ;;  %v11681_v44 = vld [vmem:[#allocation8 + $0x588] ss:$16 sps:$4 sm:$0xff]  }
 0x427   : > { %5911 = vmatprep.subr.bf16.mxu0 %v11665_v34  ;;  %v11686_v34 = vld [vmem:[#allocation8 + $0x5a4] ss:$16 sps:$4 sm:$0xff]  }
 0x429   : > { %5526 = vmatpush1.bf16.msra.mxu1 %v11660_v28  ;;  %v11689_v28 = vld [vmem:[#allocation8 + $0x5ac] ss:$16 sps:$4 sm:$0xff]  }
 0x42a   : > { %5912 = vmatpush1.bf16.msra.mxu0 %v11663_v36  ;;  %5527 = vmatprep.subr.bf16.mxu1 %v11668_v62  ;;  %v11684_v36 = vld [vmem:[#allocation8 + $0x5a0] ss:$16 sps:$4 sm:$0xff]   ;;  %v11687_v62 = vld [vmem:[#allocation8 + $0x5a8] ss:$16 sps:$4 sm:$0xff]  }
 0x42b   : > { %5913 = vmatprep.subr.bf16.mxu0 %v11671_v11  ;;  %9476 = vmatmul.mubr.msk.bf16.gmra.mrb[100].mxu1 %vm3123_vm2, %v13419_v26  ;;  %v11692_v11 = vld [vmem:[#allocation8 + $0x5c4] ss:$16 sps:$4 sm:$0xff]  }
 0x42c   : > { %9492 = vmatmul.mubr.msk.bf16.gmra.mrb[84].mxu0 %vm3123_vm2, %v13419_v26  ;;  %4572 = vmatprep.mubr.bf16.mxu1 %v14626_v18 }
 0x42d   : > { %4958 = vmatprep.mubr.bf16.mxu0 %v14626_v18  ;;  %5528 = vmatpush1.bf16.msra.mxu1 %v11666_v4  ;;  %v11695_v4 = vld [vmem:[#allocation8 + $0x5cc] ss:$16 sps:$4 sm:$0xff]  }
 0x42e   : > { %5914 = vmatpush1.bf16.msra.mxu0 %v11669_v33  ;;  %5529 = vmatprep.subr.bf16.mxu1 %v11674_v43  ;;  %v11690_v33 = vld [vmem:[#allocation8 + $0x5c0] ss:$16 sps:$4 sm:$0xff]   ;;  %v11693_v43 = vld [vmem:[#allocation8 + $0x5c8] ss:$16 sps:$4 sm:$0xff]  }
 0x42f   : > { %5915 = vmatprep.subr.bf16.mxu0 %v11677_v57  ;;  %v11698_v57 = vld [vmem:[#allocation8 + $0x5e4] ss:$16 sps:$4 sm:$0xff]  }
 0x431   : > { %5530 = vmatpush1.bf16.msra.mxu1 %v11672_v46  ;;  %v11701_v46 = vld [vmem:[#allocation8 + $0x5ec] ss:$16 sps:$4 sm:$0xff]  }
 0x432   : > { %5916 = vmatpush1.bf16.msra.mxu0 %v11675_v49  ;;  %5531 = vmatprep.subr.bf16.mxu1 %v11680_v51  ;;  %v11696_v49 = vld [vmem:[#allocation8 + $0x5e0] ss:$16 sps:$4 sm:$0xff]   ;;  %v11699_v51 = vld [vmem:[#allocation8 + $0x5e8] ss:$16 sps:$4 sm:$0xff]  }
 0x433   : > { %5917 = vmatprep.subr.bf16.mxu0 %v11683_v12  ;;  %9477 = vmatmul.mubr.msk.bf16.gmra.mrb[104].mxu1 %vm3123_vm2, %v13445_v53  ;;  %v11704_v12 = vld [vmem:[#allocation8 + $0x604] ss:$16 sps:$4 sm:$0xff]  }
 0x434   : > { %9493 = vmatmul.mubr.msk.bf16.gmra.mrb[88].mxu0 %vm3123_vm2, %v13445_v53  ;;  %4582 = vmatprep.mubr.bf16.mxu1 %v14626_v18 }
 0x435   : > { %4968 = vmatprep.mubr.bf16.mxu0 %v14626_v18  ;;  %5532 = vmatpush1.bf16.msra.mxu1 %v11678_v29  ;;  %v11707_v29 = vld [vmem:[#allocation8 + $0x60c] ss:$16 sps:$4 sm:$0xff]  }
 0x436   : > { %5918 = vmatpush1.bf16.msra.mxu0 %v11681_v44  ;;  %5533 = vmatprep.subr.bf16.mxu1 %v11686_v34  ;;  %v11702_v44 = vld [vmem:[#allocation8 + $0x600] ss:$16 sps:$4 sm:$0xff]   ;;  %v11705_v34 = vld [vmem:[#allocation8 + $0x608] ss:$16 sps:$4 sm:$0xff]  }
 0x437   : > { %5919 = vmatprep.subr.bf16.mxu0 %v11689_v28  ;;  %v11710_v28 = vld [vmem:[#allocation8 + $0x624] ss:$16 sps:$4 sm:$0xff]  }
 0x439   : > { %5534 = vmatpush1.bf16.msra.mxu1 %v11684_v36  ;;  %v11713_v36 = vld [vmem:[#allocation8 + $0x62c] ss:$16 sps:$4 sm:$0xff]  }
 0x43a   : > { %5920 = vmatpush1.bf16.msra.mxu0 %v11687_v62  ;;  %5535 = vmatprep.subr.bf16.mxu1 %v11692_v11  ;;  %v11708_v62 = vld [vmem:[#allocation8 + $0x620] ss:$16 sps:$4 sm:$0xff]   ;;  %v11711_v11 = vld [vmem:[#allocation8 + $0x628] ss:$16 sps:$4 sm:$0xff]  }
 0x43b   : > { %5921 = vmatprep.subr.bf16.mxu0 %v11695_v4  ;;  %9478 = vmatmul.mubr.msk.bf16.gmra.mrb[108].mxu1 %vm3123_vm2, %v13443_v45  ;;  %v11716_v4 = vld [vmem:[#allocation8 + $0x644] ss:$16 sps:$4 sm:$0xff]  }
 0x43c   : > { %9494 = vmatmul.mubr.msk.bf16.gmra.mrb[92].mxu0 %vm3123_vm2, %v13443_v45  ;;  %4592 = vmatprep.mubr.bf16.mxu1 %v14626_v18 }
 0x43d   : > { %4978 = vmatprep.mubr.bf16.mxu0 %v14626_v18  ;;  %5536 = vmatpush1.bf16.msra.mxu1 %v11690_v33  ;;  %v11719_v33 = vld [vmem:[#allocation8 + $0x64c] ss:$16 sps:$4 sm:$0xff]  }
 0x43e   : > { %5922 = vmatpush1.bf16.msra.mxu0 %v11693_v43  ;;  %5537 = vmatprep.subr.bf16.mxu1 %v11698_v57  ;;  %v11714_v43 = vld [vmem:[#allocation8 + $0x640] ss:$16 sps:$4 sm:$0xff]   ;;  %v11717_v57 = vld [vmem:[#allocation8 + $0x648] ss:$16 sps:$4 sm:$0xff]  }
 0x43f   : > { %5923 = vmatprep.subr.bf16.mxu0 %v11701_v46  ;;  %v11722_v46 = vld [vmem:[#allocation8 + $0x664] ss:$16 sps:$4 sm:$0xff]  }
 0x441   : > { %5538 = vmatpush1.bf16.msra.mxu1 %v11696_v49  ;;  %v11725_v49 = vld [vmem:[#allocation8 + $0x66c] ss:$16 sps:$4 sm:$0xff]  }
 0x442   : > { %5924 = vmatpush1.bf16.msra.mxu0 %v11699_v51  ;;  %5539 = vmatprep.subr.bf16.mxu1 %v11704_v12  ;;  %v11720_v51 = vld [vmem:[#allocation8 + $0x660] ss:$16 sps:$4 sm:$0xff]   ;;  %v11723_v12 = vld [vmem:[#allocation8 + $0x668] ss:$16 sps:$4 sm:$0xff]  }
 0x443   : > { %5925 = vmatprep.subr.bf16.mxu0 %v11707_v29  ;;  %9479 = vmatmul.mubr.msk.bf16.gmra.mrb[112].mxu1 %vm3123_vm2, %v13469_v56  ;;  %v11728_v29 = vld [vmem:[#allocation8 + $0x684] ss:$16 sps:$4 sm:$0xff]  }
 0x444   : > { %9495 = vmatmul.mubr.msk.bf16.gmra.mrb[96].mxu0 %vm3123_vm2, %v13469_v56  ;;  %4602 = vmatprep.mubr.bf16.mxu1 %v14626_v18 }
 0x445   : > { %4988 = vmatprep.mubr.bf16.mxu0 %v14626_v18  ;;  %5540 = vmatpush1.bf16.msra.mxu1 %v11702_v44  ;;  %v11731_v44 = vld [vmem:[#allocation8 + $0x68c] ss:$16 sps:$4 sm:$0xff]  }
 0x446   : > { %5926 = vmatpush1.bf16.msra.mxu0 %v11705_v34  ;;  %5541 = vmatprep.subr.bf16.mxu1 %v11710_v28  ;;  %v11726_v34 = vld [vmem:[#allocation8 + $0x680] ss:$16 sps:$4 sm:$0xff]   ;;  %v11729_v28 = vld [vmem:[#allocation8 + $0x688] ss:$16 sps:$4 sm:$0xff]  }
 0x447   : > { %5927 = vmatprep.subr.bf16.mxu0 %v11713_v36  ;;  %v11734_v36 = vld [vmem:[#allocation8 + $0x6a4] ss:$16 sps:$4 sm:$0xff]  }
 0x449   : > { %5542 = vmatpush1.bf16.msra.mxu1 %v11708_v62  ;;  %v11737_v62 = vld [vmem:[#allocation8 + $0x6ac] ss:$16 sps:$4 sm:$0xff]  }
 0x44a   : > { %5928 = vmatpush1.bf16.msra.mxu0 %v11711_v11  ;;  %5543 = vmatprep.subr.bf16.mxu1 %v11716_v4  ;;  %v11732_v11 = vld [vmem:[#allocation8 + $0x6a0] ss:$16 sps:$4 sm:$0xff]   ;;  %v11735_v4 = vld [vmem:[#allocation8 + $0x6a8] ss:$16 sps:$4 sm:$0xff]  }
 0x44b   : > { %5929 = vmatprep.subr.bf16.mxu0 %v11719_v33  ;;  %9480 = vmatmul.mubr.msk.bf16.gmra.mrb[116].mxu1 %vm3123_vm2, %v13467_v54 }
 0x44c   : > { %9496 = vmatmul.mubr.msk.bf16.gmra.mrb[100].mxu0 %vm3123_vm2, %v13467_v54  ;;  %4612 = vmatprep.mubr.bf16.mxu1 %v14626_v18 }
 0x44d   : > { %4998 = vmatprep.mubr.bf16.mxu0 %v14626_v18  ;;  %5544 = vmatpush1.bf16.msra.mxu1 %v11714_v43 }
 0x44e   : > { %5930 = vmatpush1.bf16.msra.mxu0 %v11717_v57  ;;  %5545 = vmatprep.subr.bf16.mxu1 %v11722_v46 }
 0x44f   : > { %5931 = vmatprep.subr.bf16.mxu0 %v11725_v49 }
 0x451   : > { %5546 = vmatpush1.bf16.msra.mxu1 %v11720_v51 }
 0x452   : > { %5932 = vmatpush1.bf16.msra.mxu0 %v11723_v12  ;;  %5708 = vmatprep.subr.bf16.mxu1 %v11728_v29 }
 0x453   : > { %6094 = vmatprep.subr.bf16.mxu0 %v11731_v44  ;;  %9481 = vmatmul.mubr.msk.bf16.gmra.mrb[120].mxu1 %vm3123_vm2, %v13493_v0 }
 0x454   : > { %9497 = vmatmul.mubr.msk.bf16.gmra.mrb[104].mxu0 %vm3123_vm2, %v13493_v0  ;;  %4622 = vmatprep.mubr.bf16.mxu1 %v14626_v18 }
 0x455   : > { %5008 = vmatprep.mubr.bf16.mxu0 %v14626_v18 }
 0x45b   : > { %9482 = vmatmul.mubr.msk.bf16.gmra.mrb[124].mxu1 %vm3123_vm2, %v13491_v58 }
 0x45c   : > { %9498 = vmatmul.mubr.msk.bf16.gmra.mrb[108].mxu0 %vm3123_vm2, %v13491_v58  ;;  %4632 = vmatprep.mubr.bf16.mxu1 %v14626_v18 }
 0x45d   : > { %5018 = vmatprep.mubr.bf16.mxu0 %v14626_v18 }
 0x463   : > { %9483 = vmatmul.mubr.msk.bf16.gmra.mrb[128].mxu1 %vm3123_vm2, %v13517_v10 }
 0x464   : > { %9499 = vmatmul.mubr.msk.bf16.gmra.mrb[112].mxu0 %vm3123_vm2, %v13517_v10  ;;  %4642 = vmatprep.mubr.bf16.mxu1 %v14626_v18 }
 0x465   : > { %5028 = vmatprep.mubr.bf16.mxu0 %v14626_v18 }
 0x46b   : > { %9484 = vmatmul.mubr.msk.bf16.gmra.mrb[132].mxu1 %vm3123_vm2, %v13515_v3 }
 0x46c   : > { %9500 = vmatmul.mubr.msk.bf16.gmra.mrb[116].mxu0 %vm3123_vm2, %v13515_v3  ;;  %4652 = vmatprep.mubr.bf16.mxu1 %v14626_v18 }
 0x46d   : > { %5038 = vmatprep.mubr.bf16.mxu0 %v14626_v18 }
 0x473   : > { %9485 = vmatmul.mubr.msk.bf16.gmra.mrb[136].mxu1 %vm3123_vm2, %v13541_v35 }
 0x474   : > { %9501 = vmatmul.mubr.msk.bf16.gmra.mrb[120].mxu0 %vm3123_vm2, %v13541_v35  ;;  %4662 = vmatprep.mubr.bf16.mxu1 %v14626_v18 }
 0x475   : > { %5048 = vmatprep.mubr.bf16.mxu0 %v14626_v18 }
 0x47b   : > { %9486 = vmatmul.mubr.msk.bf16.gmra.mrb[140].mxu1 %vm3123_vm2, %v13539_v20 }
 0x47c   : > { %9502 = vmatmul.mubr.msk.bf16.gmra.mrb[124].mxu0 %vm3123_vm2, %v13539_v20  ;;  %4672 = vmatprep.mubr.bf16.mxu1 %v14626_v18 }
 0x47d   : > { %5058 = vmatprep.mubr.bf16.mxu0 %v14626_v18 }
 0x483   : > { %9487 = vmatmul.mubr.msk.bf16.gmra.mrb[144].mxu1 %vm3123_vm2, %v13565_v40 }
 0x484   : > { %9503 = vmatmul.mubr.msk.bf16.gmra.mrb[128].mxu0 %vm3123_vm2, %v13565_v40  ;;  %4682 = vmatprep.mubr.bf16.mxu1 %v14626_v18 }
 0x485   : > { %5068 = vmatprep.mubr.bf16.mxu0 %v14626_v18 }
 0x48b   : > { %9488 = vmatmul.mubr.msk.bf16.gmra.mrb[148].mxu1 %vm3123_vm2, %v13563_v63 }
 0x48c   : > { %9504 = vmatmul.mubr.msk.bf16.gmra.mrb[132].mxu0 %vm3123_vm2, %v13563_v63  ;;  %5547 = vmatprep.mubr.bf16.mxu1 %v13299_v52 }
 0x48d   : > { %5933 = vmatprep.mubr.bf16.mxu0 %v13299_v52  ;;  %v6415_v52 = vld [vmem:[#allocation9] sm:$0xf] }
 0x493   : > { %5548 = vmatmul.mubr.bf16.vlgmr.msra.gmra.mrb[88].mxu1 %v13297_v9 }
 0x494   : > { %5934 = vmatmul.mubr.bf16.vlgmr.msra.gmra.mrb[72].mxu0 %v13297_v9  ;;  %5557 = vmatprep.mubr.bf16.mxu1 %v13311_v60  ;;  %v14637_v9 = vld [vmem:[#allocation33_spill] sm:$0xff] }
 0x495   : > { %5709 = vmatpush1.bf16.msra.mxu1 %v11726_v34  ;;  %5943 = vmatprep.mubr.bf16.mxu0 %v13311_v60  ;;  %v14638_v60 = vsub.s32 0, %v14637_v9 }
 0x496   : > { %6095 = vmatpush1.bf16.msra.mxu0 %v11729_v28  ;;  %5710 = vmatprep.subr.bf16.mxu1 %v11734_v36 }
 0x497   : > { %6096 = vmatprep.subr.bf16.mxu0 %v11737_v62 }
 0x499   : > { %5711 = vmatpush1.bf16.msra.mxu1 %v11732_v11 }
 0x49a   : > { %6097 = vmatpush1.bf16.msra.mxu0 %v11735_v4 }
 0x49b   : > { %5558 = vmatmul.mubr.bf16.gmra.mrb[92].mxu1 %v13309_v17 }
 0x49c   : > { %5944 = vmatmul.mubr.bf16.gmra.mrb[76].mxu0 %v13309_v17  ;;  %5567 = vmatprep.mubr.bf16.mxu1 %v13323_v59  ;;  %v6431_v17 = vsub.s32 3, %v14637_v9 }
 0x49d   : > { %5953 = vmatprep.mubr.bf16.mxu0 %v13323_v59  ;;  %v14030_v59 = vrot.slane %v6415_v52, %v14638_v60 }
 0x4a3   : > { %5568 = vmatmul.mubr.bf16.gmra.mrb[96].mxu1 %v14630_v13 }
 0x4a4   : > { %5954 = vmatmul.mubr.bf16.gmra.mrb[80].mxu0 %v14630_v13  ;;  %5577 = vmatprep.mubr.bf16.mxu1 %v13340_v32 }
 0x4a5   : > { %5963 = vmatprep.mubr.bf16.mxu0 %v13340_v32 }
 0x4ab   : > { %5578 = vmatmul.mubr.bf16.gmra.mrb[100].mxu1 %v13337_v27 }
 0x4ac   : > { %5964 = vmatmul.mubr.bf16.gmra.mrb[84].mxu0 %v13337_v27  ;;  %5587 = vmatprep.mubr.bf16.mxu1 %v13357_v23  ;;  %v14639_v27 = vsub.s32 2, %v14637_v9 }
 0x4ad   : > { %5973 = vmatprep.mubr.bf16.mxu0 %v13357_v23 }
 0x4ae   : > { %v14034_v32 = vrot.slane %v6415_v52, %v14639_v27 }
 0x4b3   : > { %5588 = vmatmul.mubr.bf16.gmra.mrb[104].mxu1 %v13353_v37 }
 0x4b4   : > { %5974 = vmatmul.mubr.bf16.gmra.mrb[88].mxu0 %v13353_v37  ;;  %5597 = vmatprep.mubr.bf16.mxu1 %v13379_v15  ;;  %v14640_v37 = vsub.s32 1, %v14637_v9 }
 0x4b5   : > { %5983 = vmatprep.mubr.bf16.mxu0 %v13379_v15 }
 0x4b6   : > { %v14038_v23 = vrot.slane %v6415_v52, %v14640_v37 }
 0x4bb   : > { %5598 = vmatmul.mubr.bf16.gmra.mrb[108].mxu1 %v13375_v24 }
 0x4bc   : > { %5984 = vmatmul.mubr.bf16.gmra.mrb[92].mxu0 %v13375_v24  ;;  %5607 = vmatprep.mubr.bf16.mxu1 %v13403_v48  ;;  %v14040_v24 = vrot.slane %v6415_v52, %v6431_v17 }
 0x4bd   : > { %5993 = vmatprep.mubr.bf16.mxu0 %v13403_v48 }
 0x4c3   : > { %5608 = vmatmul.mubr.bf16.gmra.mrb[112].mxu1 %v13399_v2 }
 0x4c4   : > { %5994 = vmatmul.mubr.bf16.gmra.mrb[96].mxu0 %v13399_v2  ;;  %5617 = vmatprep.mubr.bf16.mxu1 %v13427_v50 }
 0x4c5   : > { %6003 = vmatprep.mubr.bf16.mxu0 %v13427_v50 }
 0x4cb   : > { %5618 = vmatmul.mubr.bf16.gmra.mrb[116].mxu1 %v13423_v8 }
 0x4cc   : > { %6004 = vmatmul.mubr.bf16.gmra.mrb[100].mxu0 %v13423_v8  ;;  %5627 = vmatprep.mubr.bf16.mxu1 %v13451_v61 }
 0x4cd   : > { %6013 = vmatprep.mubr.bf16.mxu0 %v13451_v61 }
 0x4d3   : > { %5628 = vmatmul.mubr.bf16.gmra.mrb[120].mxu1 %v13447_v21 }
 0x4d4   : > { %6014 = vmatmul.mubr.bf16.gmra.mrb[104].mxu0 %v13447_v21  ;;  %5637 = vmatprep.mubr.bf16.mxu1 %v13475_v7 }
 0x4d5   : > { %6023 = vmatprep.mubr.bf16.mxu0 %v13475_v7 }
 0x4db   : > { %5638 = vmatmul.mubr.bf16.gmra.mrb[124].mxu1 %v13471_v25 }
 0x4dc   : > { %6024 = vmatmul.mubr.bf16.gmra.mrb[108].mxu0 %v13471_v25  ;;  %5647 = vmatprep.mubr.bf16.mxu1 %v13499_v16 }
 0x4dd   : > { %6033 = vmatprep.mubr.bf16.mxu0 %v13499_v16 }
 0x4e3   : > { %5648 = vmatmul.mubr.bf16.gmra.mrb[128].mxu1 %v13495_v39 }
 0x4e4   : > { %6034 = vmatmul.mubr.bf16.gmra.mrb[112].mxu0 %v13495_v39  ;;  %5657 = vmatprep.mubr.bf16.mxu1 %v13523_v31 }
 0x4e5   : > { %6043 = vmatprep.mubr.bf16.mxu0 %v13523_v31 }
 0x4eb   : > { %5658 = vmatmul.mubr.bf16.gmra.mrb[132].mxu1 %v14631_v42 }
 0x4ec   : > { %6044 = vmatmul.mubr.bf16.gmra.mrb[116].mxu0 %v14631_v42  ;;  %5667 = vmatprep.mubr.bf16.mxu1 %v14632_v22 }
 0x4ed   : > { %6053 = vmatprep.mubr.bf16.mxu0 %v14632_v22 }
 0x4f3   : > { %5668 = vmatmul.mubr.bf16.gmra.mrb[136].mxu1 %v14633_v38 }
 0x4f4   : > { %6054 = vmatmul.mubr.bf16.gmra.mrb[120].mxu0 %v14633_v38  ;;  %5677 = vmatprep.mubr.bf16.mxu1 %v14634_v41 }
 0x4f5   : > { %6063 = vmatprep.mubr.bf16.mxu0 %v14634_v41 }
 0x4fb   : > { %5678 = vmatmul.mubr.bf16.gmra.mrb[140].mxu1 %v14635_v19 }
 0x4fc   : > { %6064 = vmatmul.mubr.bf16.gmra.mrb[124].mxu0 %v14635_v19  ;;  %5687 = vmatprep.mubr.bf16.mxu1 %v13594_v30 }
 0x4fd   : > { %6073 = vmatprep.mubr.bf16.mxu0 %v13594_v30 }
 0x503   : > { %5688 = vmatmul.mubr.bf16.gmra.mrb[144].mxu1 %v13591_v6 }
 0x504   : > { %6074 = vmatmul.mubr.bf16.gmra.mrb[128].mxu0 %v13591_v6  ;;  %5697 = vmatprep.mubr.bf16.mxu1 %v13611_v55 }
 0x505   : > { %6083 = vmatprep.mubr.bf16.mxu0 %v13611_v55 }
 0x50b   : > { %5698 = vmatmul.mubr.bf16.gmra.mrb[148].mxu1 %v13609_v1 }
 0x50c   : > { %6084 = vmatmul.mubr.bf16.gmra.mrb[132].mxu0 %v13609_v1  ;;  %5740 = vmatprep.mubr.bf16.mxu1 %v14626_v18 }
 0x50d   : > { %6126 = vmatprep.mubr.bf16.mxu0 %v14626_v18 }
 0x513   : > { %9577 = vmatmul.mubr.msk.bf16.vlgmr.msra.gmra.mrb[88].mxu1 %vm3123_vm2, %v13421_v14 }
 0x514   : > { %9593 = vmatmul.mubr.msk.bf16.vlgmr.msra.gmra.mrb[72].mxu0 %vm3123_vm2, %v13421_v14  ;;  %5750 = vmatprep.mubr.bf16.mxu1 %v14626_v18 }
 0x515   : > { %6136 = vmatprep.mubr.bf16.mxu0 %v14626_v18 }
 0x51b   : > { %9578 = vmatmul.mubr.msk.bf16.gmra.mrb[92].mxu1 %vm3123_vm2, %v13419_v26 }
 0x51c   : > { %9594 = vmatmul.mubr.msk.bf16.gmra.mrb[76].mxu0 %vm3123_vm2, %v13419_v26  ;;  %5760 = vmatprep.mubr.bf16.mxu1 %v14626_v18 }
 0x51d   : > { %6146 = vmatprep.mubr.bf16.mxu0 %v14626_v18 }
 0x523   : > { %9579 = vmatmul.mubr.msk.bf16.gmra.mrb[96].mxu1 %vm3123_vm2, %v13445_v53 }
 0x524   : > { %9595 = vmatmul.mubr.msk.bf16.gmra.mrb[80].mxu0 %vm3123_vm2, %v13445_v53  ;;  %5770 = vmatprep.mubr.bf16.mxu1 %v14626_v18 }
 0x525   : > { %6156 = vmatprep.mubr.bf16.mxu0 %v14626_v18 }
 0x52b   : > { %9580 = vmatmul.mubr.msk.bf16.gmra.mrb[100].mxu1 %vm3123_vm2, %v13443_v45 }
 0x52c   : > { %9596 = vmatmul.mubr.msk.bf16.gmra.mrb[84].mxu0 %vm3123_vm2, %v13443_v45  ;;  %5780 = vmatprep.mubr.bf16.mxu1 %v14626_v18 }
 0x52d   : > { %6166 = vmatprep.mubr.bf16.mxu0 %v14626_v18 }
 0x533   : > { %9581 = vmatmul.mubr.msk.bf16.gmra.mrb[104].mxu1 %vm3123_vm2, %v13469_v56 }
 0x534   : > { %9597 = vmatmul.mubr.msk.bf16.gmra.mrb[88].mxu0 %vm3123_vm2, %v13469_v56  ;;  %5790 = vmatprep.mubr.bf16.mxu1 %v14626_v18 }
 0x535   : > { %6176 = vmatprep.mubr.bf16.mxu0 %v14626_v18 }
 0x53b   : > { %9582 = vmatmul.mubr.msk.bf16.gmra.mrb[108].mxu1 %vm3123_vm2, %v13467_v54 }
 0x53c   : > { %9598 = vmatmul.mubr.msk.bf16.gmra.mrb[92].mxu0 %vm3123_vm2, %v13467_v54  ;;  %5800 = vmatprep.mubr.bf16.mxu1 %v14626_v18 }
 0x53d   : > { %6186 = vmatprep.mubr.bf16.mxu0 %v14626_v18 }
 0x543   : > { %9583 = vmatmul.mubr.msk.bf16.gmra.mrb[112].mxu1 %vm3123_vm2, %v13493_v0 }
 0x544   : > { %9599 = vmatmul.mubr.msk.bf16.gmra.mrb[96].mxu0 %vm3123_vm2, %v13493_v0  ;;  %5810 = vmatprep.mubr.bf16.mxu1 %v14626_v18 }
 0x545   : > { %6196 = vmatprep.mubr.bf16.mxu0 %v14626_v18 }
 0x54b   : > { %9584 = vmatmul.mubr.msk.bf16.gmra.mrb[116].mxu1 %vm3123_vm2, %v13491_v58 }
 0x54c   : > { %9600 = vmatmul.mubr.msk.bf16.gmra.mrb[100].mxu0 %vm3123_vm2, %v13491_v58  ;;  %5820 = vmatprep.mubr.bf16.mxu1 %v14626_v18 }
 0x54d   : > { %6206 = vmatprep.mubr.bf16.mxu0 %v14626_v18 }
 0x553   : > { %9585 = vmatmul.mubr.msk.bf16.gmra.mrb[120].mxu1 %vm3123_vm2, %v13517_v10 }
 0x554   : > { %9601 = vmatmul.mubr.msk.bf16.gmra.mrb[104].mxu0 %vm3123_vm2, %v13517_v10  ;;  %5830 = vmatprep.mubr.bf16.mxu1 %v14626_v18 }
 0x555   : > { %6216 = vmatprep.mubr.bf16.mxu0 %v14626_v18 }
 0x55b   : > { %9586 = vmatmul.mubr.msk.bf16.gmra.mrb[124].mxu1 %vm3123_vm2, %v13515_v3 }
 0x55c   : > { %9602 = vmatmul.mubr.msk.bf16.gmra.mrb[108].mxu0 %vm3123_vm2, %v13515_v3  ;;  %5840 = vmatprep.mubr.bf16.mxu1 %v14626_v18 }
 0x55d   : > { %6226 = vmatprep.mubr.bf16.mxu0 %v14626_v18 }
 0x563   : > { %9587 = vmatmul.mubr.msk.bf16.gmra.mrb[128].mxu1 %vm3123_vm2, %v13541_v35 }
 0x564   : > { %9603 = vmatmul.mubr.msk.bf16.gmra.mrb[112].mxu0 %vm3123_vm2, %v13541_v35  ;;  %5850 = vmatprep.mubr.bf16.mxu1 %v14626_v18 }
 0x565   : > { %6236 = vmatprep.mubr.bf16.mxu0 %v14626_v18 }
 0x56b   : > { %9588 = vmatmul.mubr.msk.bf16.gmra.mrb[132].mxu1 %vm3123_vm2, %v13539_v20 }
 0x56c   : > { %9604 = vmatmul.mubr.msk.bf16.gmra.mrb[116].mxu0 %vm3123_vm2, %v13539_v20  ;;  %5860 = vmatprep.mubr.bf16.mxu1 %v14626_v18 }
 0x56d   : > { %6246 = vmatprep.mubr.bf16.mxu0 %v14626_v18 }
 0x573   : > { %9589 = vmatmul.mubr.msk.bf16.gmra.mrb[136].mxu1 %vm3123_vm2, %v13565_v40 }
 0x574   : > { %9605 = vmatmul.mubr.msk.bf16.gmra.mrb[120].mxu0 %vm3123_vm2, %v13565_v40  ;;  %5870 = vmatprep.mubr.bf16.mxu1 %v14626_v18 }
 0x575   : > { %6256 = vmatprep.mubr.bf16.mxu0 %v14626_v18 }
 0x57b   : > { %9590 = vmatmul.mubr.msk.bf16.gmra.mrb[140].mxu1 %vm3123_vm2, %v13563_v63 }
 0x57c   : > { %9606 = vmatmul.mubr.msk.bf16.gmra.mrb[124].mxu0 %vm3123_vm2, %v13563_v63  ;;  %5880 = vmatprep.mubr.bf16.mxu1 %v14626_v18 }
 0x57d   : > { %6266 = vmatprep.mubr.bf16.mxu0 %v14626_v18 }
 0x583   : > { %9591 = vmatmul.mubr.msk.bf16.gmra.mrb[144].mxu1 %vm3123_vm2, %v13589_v5 }
 0x584   : > { %9607 = vmatmul.mubr.msk.bf16.gmra.mrb[128].mxu0 %vm3123_vm2, %v13589_v5  ;;  %5890 = vmatprep.mubr.bf16.mxu1 %v14626_v18 }
 0x585   : > { %6276 = vmatprep.mubr.bf16.mxu0 %v14626_v18 }
 0x58b   : > { %9592 = vmatmul.mubr.msk.bf16.gmra.mrb[148].mxu1 %vm3123_vm2, %v13587_v47 }
 0x58c   : > { %9608 = vmatmul.mubr.msk.bf16.gmra.mrb[132].mxu0 %vm3123_vm2, %v13587_v47 }
 0x5e6   : > { %v5742_v15 = vpop.f32.mrb[88].mxu1 }
 0x5e7   : > { %v6128_v2 = vpop.f32.mrb[72].mxu0  ;;  %v6437_v48 = vadd.f32 %v14030_v59, %v5742_v15  ;;  %v5744_v14 = vpop.f32.mrb[89].mxu1 }
 0x5e8   : > { %v6439_v26 = vadd.f32 %v14034_v32, %v6128_v2  ;;  %v6130_v8 = vpop.f32.mrb[73].mxu0  ;;  %v6438_v50 = vadd.f32 %v14038_v23, %v5744_v14  ;;  %v5746_v53 = vpop.f32.mrb[90].mxu1 }
 0x5e9   : > { %v6440_v45 = vadd.f32 %v14040_v24, %v6130_v8  ;;  %v6132_v21 = vpop.f32.mrb[74].mxu0  ;;  %v6441_v61 = vadd.f32 %v14030_v59, %v5746_v53  ;;  %v5748_v56 = vpop.f32.mrb[91].mxu1  ;;  %v6565_v0 = vmax.f32 %v6437_v48, 0.0 }
 0x5ea   : > { %v6443_v54 = vadd.f32 %v14034_v32, %v6132_v21  ;;  %v6134_v25 = vpop.f32.mrb[75].mxu0  ;;  %v6442_v7 = vadd.f32 %v14038_v23, %v5748_v56  ;;  %v6567_v39 = vmax.f32 %v6439_v26, 0.0  ;;  %v6566_v10 = vmax.f32 %v6438_v50, 0.0 }
 0x5eb   : > { %v6444_v58 = vadd.f32 %v14040_v24, %v6134_v25  ;;  %v6569_v16 = vmax.f32 %v6441_v61, 0.0  ;;  %v6568_v30 = vmax.f32 %v6440_v45, 0.0 }
 0x5ec   : > { %v6571_v3 = vmax.f32 %v6443_v54, 0.0  ;;  %v6570_v31 = vmax.f32 %v6442_v7, 0.0 }
 0x5ed   : > { %v6572_v20 = vmax.f32 %v6444_v58, 0.0  ;;  %v6693_v35 = vpack.c.bf16 %v6569_v16, %v6565_v0 }
 0x5ee   : > { %v6695_v63 = vpack.c.bf16 %v6571_v3, %v6567_v39  ;;  %v6694_v40 = vpack.c.bf16 %v6570_v31, %v6566_v10  ;;  %v5752_v5 = vpop.f32.mrb[92].mxu1 }
 0x5ef   : > { %v6696_v47 = vpack.c.bf16 %v6572_v20, %v6568_v30  ;;  %v6138_v6 = vpop.f32.mrb[76].mxu0  ;;  %6757 = vst [vmem:[#allocation2] sm:$0xff] %v6693_v35  ;;  %v6445_v18 = vadd.f32 %v14030_v59, %v5752_v5  ;;  %v5754_v55 = vpop.f32.mrb[93].mxu1 }
 0x5f0   : > { %6759 = vst [vmem:[#allocation2 + $0x10] sm:$0xff] %v6695_v63  ;;  %v6447_v1 = vadd.f32 %v14034_v32, %v6138_v6  ;;  %v6140_v13 = vpop.f32.mrb[77].mxu0  ;;  %6758 = vst [vmem:[#allocation2 + $0x8] sm:$0xff] %v6694_v40  ;;  %v6446_v42 = vadd.f32 %v14038_v23, %v5754_v55  ;;  %v5756_v38 = vpop.f32.mrb[94].mxu1 }
 0x5f1   : > { %6760 = vst [vmem:[#allocation2 + $0x18] sm:$0xff] %v6696_v47  ;;  %v6448_v22 = vadd.f32 %v14040_v24, %v6140_v13  ;;  %v6142_v41 = vpop.f32.mrb[78].mxu0  ;;  %v6449_v19 = vadd.f32 %v14030_v59, %v5756_v38  ;;  %v5758_v43 = vpop.f32.mrb[95].mxu1  ;;  %v6573_v51 = vmax.f32 %v6445_v18, 0.0 }
 0x5f2   : > { %v6451_v33 = vadd.f32 %v14034_v32, %v6142_v41  ;;  %v6144_v57 = vpop.f32.mrb[79].mxu0  ;;  %v6450_v46 = vadd.f32 %v14038_v23, %v5758_v43  ;;  %v6575_v12 = vmax.f32 %v6447_v1, 0.0  ;;  %v6574_v34 = vmax.f32 %v6446_v42, 0.0 }
 0x5f3   : > { %v6452_v49 = vadd.f32 %v14040_v24, %v6144_v57  ;;  %v6577_v29 = vmax.f32 %v6449_v19, 0.0  ;;  %v6576_v28 = vmax.f32 %v6448_v22, 0.0 }
 0x5f4   : > { %v6579_v44 = vmax.f32 %v6451_v33, 0.0  ;;  %v6578_v36 = vmax.f32 %v6450_v46, 0.0 }
 0x5f5   : > { %v6580_v62 = vmax.f32 %v6452_v49, 0.0  ;;  %v6697_v11 = vpack.c.bf16 %v6577_v29, %v6573_v51 }
 0x5f6   : > { %v6699_v4 = vpack.c.bf16 %v6579_v44, %v6575_v12  ;;  %v6698_v52 = vpack.c.bf16 %v6578_v36, %v6574_v34  ;;  %v5762_v17 = vpop.f32.mrb[96].mxu1 }
 0x5f7   : > { %v6700_v9 = vpack.c.bf16 %v6580_v62, %v6576_v28  ;;  %v6148_v60 = vpop.f32.mrb[80].mxu0  ;;  %6761 = vst [vmem:[#allocation2 + $0x20] sm:$0xff] %v6697_v11  ;;  %v6453_v27 = vadd.f32 %v14030_v59, %v5762_v17  ;;  %v5764_v15 = vpop.f32.mrb[97].mxu1 }
 0x5f8   : > { %6763 = vst [vmem:[#allocation2 + $0x30] sm:$0xff] %v6699_v4  ;;  %v6455_v37 = vadd.f32 %v14034_v32, %v6148_v60  ;;  %v6150_v2 = vpop.f32.mrb[81].mxu0  ;;  %6762 = vst [vmem:[#allocation2 + $0x28] sm:$0xff] %v6698_v52  ;;  %v6454_v48 = vadd.f32 %v14038_v23, %v5764_v15  ;;  %v5766_v14 = vpop.f32.mrb[98].mxu1 }
 0x5f9   : > { %6764 = vst [vmem:[#allocation2 + $0x38] sm:$0xff] %v6700_v9  ;;  %v6456_v26 = vadd.f32 %v14040_v24, %v6150_v2  ;;  %v6152_v8 = vpop.f32.mrb[82].mxu0  ;;  %v6457_v50 = vadd.f32 %v14030_v59, %v5766_v14  ;;  %v5768_v53 = vpop.f32.mrb[99].mxu1  ;;  %v6581_v56 = vmax.f32 %v6453_v27, 0.0 }
 0x5fa   : > { %v6459_v45 = vadd.f32 %v14034_v32, %v6152_v8  ;;  %v6154_v21 = vpop.f32.mrb[83].mxu0  ;;  %v6458_v61 = vadd.f32 %v14038_v23, %v5768_v53  ;;  %v6583_v25 = vmax.f32 %v6455_v37, 0.0  ;;  %v6582_v0 = vmax.f32 %v6454_v48, 0.0 }
 0x5fb   : > { %v6460_v54 = vadd.f32 %v14040_v24, %v6154_v21  ;;  %v6585_v7 = vmax.f32 %v6457_v50, 0.0  ;;  %v6584_v39 = vmax.f32 %v6456_v26, 0.0 }
 0x5fc   : > { %v6587_v58 = vmax.f32 %v6459_v45, 0.0  ;;  %v6586_v16 = vmax.f32 %v6458_v61, 0.0 }
 0x5fd   : > { %v6588_v3 = vmax.f32 %v6460_v54, 0.0  ;;  %v6701_v10 = vpack.c.bf16 %v6585_v7, %v6581_v56 }
 0x5fe   : > { %v6703_v30 = vpack.c.bf16 %v6587_v58, %v6583_v25  ;;  %v6702_v31 = vpack.c.bf16 %v6586_v16, %v6582_v0  ;;  %v5772_v35 = vpop.f32.mrb[100].mxu1 }
 0x5ff   : > { %v6704_v20 = vpack.c.bf16 %v6588_v3, %v6584_v39  ;;  %v6158_v63 = vpop.f32.mrb[84].mxu0  ;;  %6765 = vst [vmem:[#allocation2 + $0x40] sm:$0xff] %v6701_v10  ;;  %v6461_v40 = vadd.f32 %v14030_v59, %v5772_v35  ;;  %v5774_v5 = vpop.f32.mrb[101].mxu1 }
 0x600   : > { %6767 = vst [vmem:[#allocation2 + $0x50] sm:$0xff] %v6703_v30  ;;  %v6463_v47 = vadd.f32 %v14034_v32, %v6158_v63  ;;  %v6160_v6 = vpop.f32.mrb[85].mxu0  ;;  %6766 = vst [vmem:[#allocation2 + $0x48] sm:$0xff] %v6702_v31  ;;  %v6462_v18 = vadd.f32 %v14038_v23, %v5774_v5  ;;  %v5776_v55 = vpop.f32.mrb[102].mxu1 }
 0x601   : > { %6768 = vst [vmem:[#allocation2 + $0x58] sm:$0xff] %v6704_v20  ;;  %v6464_v1 = vadd.f32 %v14040_v24, %v6160_v6  ;;  %v6162_v13 = vpop.f32.mrb[86].mxu0  ;;  %v6465_v42 = vadd.f32 %v14030_v59, %v5776_v55  ;;  %v5778_v38 = vpop.f32.mrb[103].mxu1  ;;  %v6589_v43 = vmax.f32 %v6461_v40, 0.0 }
 0x602   : > { %v6467_v22 = vadd.f32 %v14034_v32, %v6162_v13  ;;  %v6164_v41 = vpop.f32.mrb[87].mxu0  ;;  %v6466_v19 = vadd.f32 %v14038_v23, %v5778_v38  ;;  %v6591_v57 = vmax.f32 %v6463_v47, 0.0  ;;  %v6590_v51 = vmax.f32 %v6462_v18, 0.0 }
 0x603   : > { %v6468_v33 = vadd.f32 %v14040_v24, %v6164_v41  ;;  %v6593_v46 = vmax.f32 %v6465_v42, 0.0  ;;  %v6592_v12 = vmax.f32 %v6464_v1, 0.0 }
 0x604   : > { %v6595_v49 = vmax.f32 %v6467_v22, 0.0  ;;  %v6594_v29 = vmax.f32 %v6466_v19, 0.0 }
 0x605   : > { %v6596_v44 = vmax.f32 %v6468_v33, 0.0  ;;  %v6705_v34 = vpack.c.bf16 %v6593_v46, %v6589_v43 }
 0x606   : > { %v6707_v28 = vpack.c.bf16 %v6595_v49, %v6591_v57  ;;  %v6706_v36 = vpack.c.bf16 %v6594_v29, %v6590_v51  ;;  %v5782_v11 = vpop.f32.mrb[104].mxu1 }
 0x607   : > { %v6708_v62 = vpack.c.bf16 %v6596_v44, %v6592_v12  ;;  %v6168_v4 = vpop.f32.mrb[88].mxu0  ;;  %6769 = vst [vmem:[#allocation2 + $0x60] sm:$0xff] %v6705_v34  ;;  %v6469_v52 = vadd.f32 %v14030_v59, %v5782_v11  ;;  %v5784_v17 = vpop.f32.mrb[105].mxu1 }
 0x608   : > { %6771 = vst [vmem:[#allocation2 + $0x70] sm:$0xff] %v6707_v28  ;;  %v6471_v9 = vadd.f32 %v14034_v32, %v6168_v4  ;;  %v6170_v60 = vpop.f32.mrb[89].mxu0  ;;  %6770 = vst [vmem:[#allocation2 + $0x68] sm:$0xff] %v6706_v36  ;;  %v6470_v27 = vadd.f32 %v14038_v23, %v5784_v17  ;;  %v5786_v15 = vpop.f32.mrb[106].mxu1 }
 0x609   : > { %6772 = vst [vmem:[#allocation2 + $0x78] sm:$0xff] %v6708_v62  ;;  %v6472_v37 = vadd.f32 %v14040_v24, %v6170_v60  ;;  %v6172_v2 = vpop.f32.mrb[90].mxu0  ;;  %v6473_v48 = vadd.f32 %v14030_v59, %v5786_v15  ;;  %v5788_v14 = vpop.f32.mrb[107].mxu1  ;;  %v6597_v53 = vmax.f32 %v6469_v52, 0.0 }
 0x60a   : > { %v6475_v26 = vadd.f32 %v14034_v32, %v6172_v2  ;;  %v6174_v8 = vpop.f32.mrb[91].mxu0  ;;  %v6474_v50 = vadd.f32 %v14038_v23, %v5788_v14  ;;  %v6599_v21 = vmax.f32 %v6471_v9, 0.0  ;;  %v6598_v56 = vmax.f32 %v6470_v27, 0.0 }
 0x60b   : > { %v6476_v45 = vadd.f32 %v14040_v24, %v6174_v8  ;;  %v6601_v61 = vmax.f32 %v6473_v48, 0.0  ;;  %v6600_v25 = vmax.f32 %v6472_v37, 0.0 }
 0x60c   : > { %v6603_v54 = vmax.f32 %v6475_v26, 0.0  ;;  %v6602_v7 = vmax.f32 %v6474_v50, 0.0 }
 0x60d   : > { %v6604_v58 = vmax.f32 %v6476_v45, 0.0  ;;  %v6709_v0 = vpack.c.bf16 %v6601_v61, %v6597_v53 }
 0x60e   : > { %v6711_v39 = vpack.c.bf16 %v6603_v54, %v6599_v21  ;;  %v6710_v16 = vpack.c.bf16 %v6602_v7, %v6598_v56  ;;  %v5792_v10 = vpop.f32.mrb[108].mxu1 }
 0x60f   : > { %v6712_v3 = vpack.c.bf16 %v6604_v58, %v6600_v25  ;;  %v6178_v30 = vpop.f32.mrb[92].mxu0  ;;  %6773 = vst [vmem:[#allocation2 + $0x80] sm:$0xff] %v6709_v0  ;;  %v6477_v31 = vadd.f32 %v14030_v59, %v5792_v10  ;;  %v5794_v35 = vpop.f32.mrb[109].mxu1 }
 0x610   : > { %6775 = vst [vmem:[#allocation2 + $0x90] sm:$0xff] %v6711_v39  ;;  %v6479_v20 = vadd.f32 %v14034_v32, %v6178_v30  ;;  %v6180_v63 = vpop.f32.mrb[93].mxu0  ;;  %6774 = vst [vmem:[#allocation2 + $0x88] sm:$0xff] %v6710_v16  ;;  %v6478_v40 = vadd.f32 %v14038_v23, %v5794_v35  ;;  %v5796_v5 = vpop.f32.mrb[110].mxu1 }
 0x611   : > { %6776 = vst [vmem:[#allocation2 + $0x98] sm:$0xff] %v6712_v3  ;;  %v6480_v47 = vadd.f32 %v14040_v24, %v6180_v63  ;;  %v6182_v6 = vpop.f32.mrb[94].mxu0  ;;  %v6481_v18 = vadd.f32 %v14030_v59, %v5796_v5  ;;  %v5798_v55 = vpop.f32.mrb[111].mxu1  ;;  %v6605_v38 = vmax.f32 %v6477_v31, 0.0 }
 0x612   : > { %v6483_v1 = vadd.f32 %v14034_v32, %v6182_v6  ;;  %v6184_v13 = vpop.f32.mrb[95].mxu0  ;;  %v6482_v42 = vadd.f32 %v14038_v23, %v5798_v55  ;;  %v6607_v41 = vmax.f32 %v6479_v20, 0.0  ;;  %v6606_v43 = vmax.f32 %v6478_v40, 0.0 }
 0x613   : > { %v6484_v22 = vadd.f32 %v14040_v24, %v6184_v13  ;;  %v6609_v19 = vmax.f32 %v6481_v18, 0.0  ;;  %v6608_v57 = vmax.f32 %v6480_v47, 0.0 }
 0x614   : > { %v6611_v33 = vmax.f32 %v6483_v1, 0.0  ;;  %v6610_v46 = vmax.f32 %v6482_v42, 0.0 }
 0x615   : > { %v6612_v49 = vmax.f32 %v6484_v22, 0.0  ;;  %v6713_v51 = vpack.c.bf16 %v6609_v19, %v6605_v38 }
 0x616   : > { %v6715_v12 = vpack.c.bf16 %v6611_v33, %v6607_v41  ;;  %v6714_v29 = vpack.c.bf16 %v6610_v46, %v6606_v43  ;;  %v5802_v34 = vpop.f32.mrb[112].mxu1 }
 0x617   : > { %v6716_v44 = vpack.c.bf16 %v6612_v49, %v6608_v57  ;;  %v6188_v28 = vpop.f32.mrb[96].mxu0  ;;  %6777 = vst [vmem:[#allocation2 + $0xa0] sm:$0xff] %v6713_v51  ;;  %v6485_v36 = vadd.f32 %v14030_v59, %v5802_v34  ;;  %v5804_v11 = vpop.f32.mrb[113].mxu1 }
 0x618   : > { %6779 = vst [vmem:[#allocation2 + $0xb0] sm:$0xff] %v6715_v12  ;;  %v6487_v62 = vadd.f32 %v14034_v32, %v6188_v28  ;;  %v6190_v4 = vpop.f32.mrb[97].mxu0  ;;  %6778 = vst [vmem:[#allocation2 + $0xa8] sm:$0xff] %v6714_v29  ;;  %v6486_v52 = vadd.f32 %v14038_v23, %v5804_v11  ;;  %v5806_v17 = vpop.f32.mrb[114].mxu1 }
 0x619   : > { %6780 = vst [vmem:[#allocation2 + $0xb8] sm:$0xff] %v6716_v44  ;;  %v6488_v9 = vadd.f32 %v14040_v24, %v6190_v4  ;;  %v6192_v60 = vpop.f32.mrb[98].mxu0  ;;  %v6489_v27 = vadd.f32 %v14030_v59, %v5806_v17  ;;  %v5808_v15 = vpop.f32.mrb[115].mxu1  ;;  %v6613_v14 = vmax.f32 %v6485_v36, 0.0 }
 0x61a   : > { %v6491_v37 = vadd.f32 %v14034_v32, %v6192_v60  ;;  %v6194_v2 = vpop.f32.mrb[99].mxu0  ;;  %v6490_v48 = vadd.f32 %v14038_v23, %v5808_v15  ;;  %v6615_v8 = vmax.f32 %v6487_v62, 0.0  ;;  %v6614_v53 = vmax.f32 %v6486_v52, 0.0 }
 0x61b   : > { %v6492_v26 = vadd.f32 %v14040_v24, %v6194_v2  ;;  %v6617_v50 = vmax.f32 %v6489_v27, 0.0  ;;  %v6616_v21 = vmax.f32 %v6488_v9, 0.0 }
 0x61c   : > { %v6619_v45 = vmax.f32 %v6491_v37, 0.0  ;;  %v6618_v61 = vmax.f32 %v6490_v48, 0.0 }
 0x61d   : > { %v6620_v54 = vmax.f32 %v6492_v26, 0.0  ;;  %v6717_v56 = vpack.c.bf16 %v6617_v50, %v6613_v14 }
 0x61e   : > { %v6719_v25 = vpack.c.bf16 %v6619_v45, %v6615_v8  ;;  %v6718_v7 = vpack.c.bf16 %v6618_v61, %v6614_v53  ;;  %v5812_v0 = vpop.f32.mrb[116].mxu1 }
 0x61f   : > { %v6720_v58 = vpack.c.bf16 %v6620_v54, %v6616_v21  ;;  %v6198_v39 = vpop.f32.mrb[100].mxu0  ;;  %6781 = vst [vmem:[#allocation2 + $0xc0] sm:$0xff] %v6717_v56  ;;  %v6493_v16 = vadd.f32 %v14030_v59, %v5812_v0  ;;  %v5814_v10 = vpop.f32.mrb[117].mxu1 }
 0x620   : > { %6783 = vst [vmem:[#allocation2 + $0xd0] sm:$0xff] %v6719_v25  ;;  %v6495_v3 = vadd.f32 %v14034_v32, %v6198_v39  ;;  %v6200_v30 = vpop.f32.mrb[101].mxu0  ;;  %6782 = vst [vmem:[#allocation2 + $0xc8] sm:$0xff] %v6718_v7  ;;  %v6494_v31 = vadd.f32 %v14038_v23, %v5814_v10  ;;  %v5816_v35 = vpop.f32.mrb[118].mxu1 }
 0x621   : > { %6784 = vst [vmem:[#allocation2 + $0xd8] sm:$0xff] %v6720_v58  ;;  %v6496_v20 = vadd.f32 %v14040_v24, %v6200_v30  ;;  %v6202_v63 = vpop.f32.mrb[102].mxu0  ;;  %v6497_v40 = vadd.f32 %v14030_v59, %v5816_v35  ;;  %v5818_v5 = vpop.f32.mrb[119].mxu1  ;;  %v6621_v55 = vmax.f32 %v6493_v16, 0.0 }
 0x622   : > { %v6499_v47 = vadd.f32 %v14034_v32, %v6202_v63  ;;  %v6204_v6 = vpop.f32.mrb[103].mxu0  ;;  %v6498_v18 = vadd.f32 %v14038_v23, %v5818_v5  ;;  %v6623_v13 = vmax.f32 %v6495_v3, 0.0  ;;  %v6622_v38 = vmax.f32 %v6494_v31, 0.0 }
 0x623   : > { %v6500_v1 = vadd.f32 %v14040_v24, %v6204_v6  ;;  %v6625_v42 = vmax.f32 %v6497_v40, 0.0  ;;  %v6624_v41 = vmax.f32 %v6496_v20, 0.0 }
 0x624   : > { %v6627_v22 = vmax.f32 %v6499_v47, 0.0  ;;  %v6626_v19 = vmax.f32 %v6498_v18, 0.0 }
 0x625   : > { %v6628_v33 = vmax.f32 %v6500_v1, 0.0  ;;  %v6721_v43 = vpack.c.bf16 %v6625_v42, %v6621_v55 }
 0x626   : > { %v6723_v57 = vpack.c.bf16 %v6627_v22, %v6623_v13  ;;  %v6722_v46 = vpack.c.bf16 %v6626_v19, %v6622_v38  ;;  %v5822_v51 = vpop.f32.mrb[120].mxu1 }
 0x627   : > { %v6724_v49 = vpack.c.bf16 %v6628_v33, %v6624_v41  ;;  %v6208_v12 = vpop.f32.mrb[104].mxu0  ;;  %6785 = vst [vmem:[#allocation2 + $0xe0] sm:$0xff] %v6721_v43  ;;  %v6501_v29 = vadd.f32 %v14030_v59, %v5822_v51  ;;  %v5824_v34 = vpop.f32.mrb[121].mxu1 }
 0x628   : > { %6787 = vst [vmem:[#allocation2 + $0xf0] sm:$0xff] %v6723_v57  ;;  %v6503_v44 = vadd.f32 %v14034_v32, %v6208_v12  ;;  %v6210_v28 = vpop.f32.mrb[105].mxu0  ;;  %6786 = vst [vmem:[#allocation2 + $0xe8] sm:$0xff] %v6722_v46  ;;  %v6502_v36 = vadd.f32 %v14038_v23, %v5824_v34  ;;  %v5826_v11 = vpop.f32.mrb[122].mxu1 }
 0x629   : > { %6788 = vst [vmem:[#allocation2 + $0xf8] sm:$0xff] %v6724_v49  ;;  %v6504_v62 = vadd.f32 %v14040_v24, %v6210_v28  ;;  %v6212_v4 = vpop.f32.mrb[106].mxu0  ;;  %v6505_v52 = vadd.f32 %v14030_v59, %v5826_v11  ;;  %v5828_v17 = vpop.f32.mrb[123].mxu1  ;;  %v6629_v15 = vmax.f32 %v6501_v29, 0.0 }
 0x62a   : > { %v6507_v9 = vadd.f32 %v14034_v32, %v6212_v4  ;;  %v6214_v60 = vpop.f32.mrb[107].mxu0  ;;  %v6506_v27 = vadd.f32 %v14038_v23, %v5828_v17  ;;  %v6631_v2 = vmax.f32 %v6503_v44, 0.0  ;;  %v6630_v14 = vmax.f32 %v6502_v36, 0.0 }
 0x62b   : > { %v6508_v37 = vadd.f32 %v14040_v24, %v6214_v60  ;;  %v6633_v48 = vmax.f32 %v6505_v52, 0.0  ;;  %v6632_v8 = vmax.f32 %v6504_v62, 0.0 }
 0x62c   : > { %v6635_v26 = vmax.f32 %v6507_v9, 0.0  ;;  %v6634_v50 = vmax.f32 %v6506_v27, 0.0 }
 0x62d   : > { %v6636_v45 = vmax.f32 %v6508_v37, 0.0  ;;  %v6725_v53 = vpack.c.bf16 %v6633_v48, %v6629_v15 }
 0x62e   : > { %v6727_v21 = vpack.c.bf16 %v6635_v26, %v6631_v2  ;;  %v6726_v61 = vpack.c.bf16 %v6634_v50, %v6630_v14  ;;  %v5832_v56 = vpop.f32.mrb[124].mxu1 }
 0x62f   : > { %v6728_v54 = vpack.c.bf16 %v6636_v45, %v6632_v8  ;;  %v6218_v25 = vpop.f32.mrb[108].mxu0  ;;  %6789 = vst [vmem:[#allocation2 + $0x100] sm:$0xff] %v6725_v53  ;;  %v6509_v7 = vadd.f32 %v14030_v59, %v5832_v56  ;;  %v5834_v0 = vpop.f32.mrb[125].mxu1 }
 0x630   : > { %6791 = vst [vmem:[#allocation2 + $0x110] sm:$0xff] %v6727_v21  ;;  %v6511_v58 = vadd.f32 %v14034_v32, %v6218_v25  ;;  %v6220_v39 = vpop.f32.mrb[109].mxu0  ;;  %6790 = vst [vmem:[#allocation2 + $0x108] sm:$0xff] %v6726_v61  ;;  %v6510_v16 = vadd.f32 %v14038_v23, %v5834_v0  ;;  %v5836_v10 = vpop.f32.mrb[126].mxu1 }
 0x631   : > { %6792 = vst [vmem:[#allocation2 + $0x118] sm:$0xff] %v6728_v54  ;;  %v6512_v3 = vadd.f32 %v14040_v24, %v6220_v39  ;;  %v6222_v30 = vpop.f32.mrb[110].mxu0  ;;  %v6513_v31 = vadd.f32 %v14030_v59, %v5836_v10  ;;  %v5838_v35 = vpop.f32.mrb[127].mxu1  ;;  %v6637_v5 = vmax.f32 %v6509_v7, 0.0 }
 0x632   : > { %v6515_v20 = vadd.f32 %v14034_v32, %v6222_v30  ;;  %v6224_v63 = vpop.f32.mrb[111].mxu0  ;;  %v6514_v40 = vadd.f32 %v14038_v23, %v5838_v35  ;;  %v6639_v6 = vmax.f32 %v6511_v58, 0.0  ;;  %v6638_v55 = vmax.f32 %v6510_v16, 0.0 }
 0x633   : > { %v6516_v47 = vadd.f32 %v14040_v24, %v6224_v63  ;;  %v6641_v18 = vmax.f32 %v6513_v31, 0.0  ;;  %v6640_v13 = vmax.f32 %v6512_v3, 0.0 }
 0x634   : > { %v6643_v1 = vmax.f32 %v6515_v20, 0.0  ;;  %v6642_v42 = vmax.f32 %v6514_v40, 0.0 }
 0x635   : > { %v6644_v22 = vmax.f32 %v6516_v47, 0.0  ;;  %v6729_v38 = vpack.c.bf16 %v6641_v18, %v6637_v5 }
 0x636   : > { %v6731_v41 = vpack.c.bf16 %v6643_v1, %v6639_v6  ;;  %v6730_v19 = vpack.c.bf16 %v6642_v42, %v6638_v55  ;;  %v5842_v43 = vpop.f32.mrb[128].mxu1 }
 0x637   : > { %v6732_v33 = vpack.c.bf16 %v6644_v22, %v6640_v13  ;;  %v6228_v57 = vpop.f32.mrb[112].mxu0  ;;  %6793 = vst [vmem:[#allocation2 + $0x120] sm:$0xff] %v6729_v38  ;;  %v6517_v46 = vadd.f32 %v14030_v59, %v5842_v43  ;;  %v5844_v51 = vpop.f32.mrb[129].mxu1 }
 0x638   : > { %6795 = vst [vmem:[#allocation2 + $0x130] sm:$0xff] %v6731_v41  ;;  %v6519_v49 = vadd.f32 %v14034_v32, %v6228_v57  ;;  %v6230_v12 = vpop.f32.mrb[113].mxu0  ;;  %6794 = vst [vmem:[#allocation2 + $0x128] sm:$0xff] %v6730_v19  ;;  %v6518_v29 = vadd.f32 %v14038_v23, %v5844_v51  ;;  %v5846_v34 = vpop.f32.mrb[130].mxu1 }
 0x639   : > { %6796 = vst [vmem:[#allocation2 + $0x138] sm:$0xff] %v6732_v33  ;;  %v6520_v44 = vadd.f32 %v14040_v24, %v6230_v12  ;;  %v6232_v28 = vpop.f32.mrb[114].mxu0  ;;  %v6521_v36 = vadd.f32 %v14030_v59, %v5846_v34  ;;  %v5848_v11 = vpop.f32.mrb[131].mxu1  ;;  %v6645_v17 = vmax.f32 %v6517_v46, 0.0 }
 0x63a   : > { %v6523_v62 = vadd.f32 %v14034_v32, %v6232_v28  ;;  %v6234_v4 = vpop.f32.mrb[115].mxu0  ;;  %v6522_v52 = vadd.f32 %v14038_v23, %v5848_v11  ;;  %v6647_v60 = vmax.f32 %v6519_v49, 0.0  ;;  %v6646_v15 = vmax.f32 %v6518_v29, 0.0 }
 0x63b   : > { %v6524_v9 = vadd.f32 %v14040_v24, %v6234_v4  ;;  %v6649_v27 = vmax.f32 %v6521_v36, 0.0  ;;  %v6648_v2 = vmax.f32 %v6520_v44, 0.0 }
 0x63c   : > { %v6651_v37 = vmax.f32 %v6523_v62, 0.0  ;;  %v6650_v48 = vmax.f32 %v6522_v52, 0.0 }
 0x63d   : > { %v6652_v26 = vmax.f32 %v6524_v9, 0.0  ;;  %v6733_v14 = vpack.c.bf16 %v6649_v27, %v6645_v17 }
 0x63e   : > { %v6735_v8 = vpack.c.bf16 %v6651_v37, %v6647_v60  ;;  %v6734_v50 = vpack.c.bf16 %v6650_v48, %v6646_v15  ;;  %v5852_v53 = vpop.f32.mrb[132].mxu1 }
 0x63f   : > { %v6736_v45 = vpack.c.bf16 %v6652_v26, %v6648_v2  ;;  %v6238_v21 = vpop.f32.mrb[116].mxu0  ;;  %6797 = vst [vmem:[#allocation2 + $0x140] sm:$0xff] %v6733_v14  ;;  %v6525_v61 = vadd.f32 %v14030_v59, %v5852_v53  ;;  %v5854_v56 = vpop.f32.mrb[133].mxu1 }
 0x640   : > { %6799 = vst [vmem:[#allocation2 + $0x150] sm:$0xff] %v6735_v8  ;;  %v6527_v54 = vadd.f32 %v14034_v32, %v6238_v21  ;;  %v6240_v25 = vpop.f32.mrb[117].mxu0  ;;  %6798 = vst [vmem:[#allocation2 + $0x148] sm:$0xff] %v6734_v50  ;;  %v6526_v7 = vadd.f32 %v14038_v23, %v5854_v56  ;;  %v5856_v0 = vpop.f32.mrb[134].mxu1 }
 0x641   : > { %6800 = vst [vmem:[#allocation2 + $0x158] sm:$0xff] %v6736_v45  ;;  %v6528_v58 = vadd.f32 %v14040_v24, %v6240_v25  ;;  %v6242_v39 = vpop.f32.mrb[118].mxu0  ;;  %v6529_v16 = vadd.f32 %v14030_v59, %v5856_v0  ;;  %v5858_v10 = vpop.f32.mrb[135].mxu1  ;;  %v6653_v35 = vmax.f32 %v6525_v61, 0.0 }
 0x642   : > { %v6531_v3 = vadd.f32 %v14034_v32, %v6242_v39  ;;  %v6244_v30 = vpop.f32.mrb[119].mxu0  ;;  %v6530_v31 = vadd.f32 %v14038_v23, %v5858_v10  ;;  %v6655_v63 = vmax.f32 %v6527_v54, 0.0  ;;  %v6654_v5 = vmax.f32 %v6526_v7, 0.0 }
 0x643   : > { %v6532_v20 = vadd.f32 %v14040_v24, %v6244_v30  ;;  %v6657_v40 = vmax.f32 %v6529_v16, 0.0  ;;  %v6656_v6 = vmax.f32 %v6528_v58, 0.0 }
 0x644   : > { %v6659_v47 = vmax.f32 %v6531_v3, 0.0  ;;  %v6658_v18 = vmax.f32 %v6530_v31, 0.0 }
 0x645   : > { %v6660_v1 = vmax.f32 %v6532_v20, 0.0  ;;  %v6737_v55 = vpack.c.bf16 %v6657_v40, %v6653_v35 }
 0x646   : > { %v6739_v13 = vpack.c.bf16 %v6659_v47, %v6655_v63  ;;  %v6738_v42 = vpack.c.bf16 %v6658_v18, %v6654_v5  ;;  %v5862_v38 = vpop.f32.mrb[136].mxu1 }
 0x647   : > { %v6740_v22 = vpack.c.bf16 %v6660_v1, %v6656_v6  ;;  %v6248_v41 = vpop.f32.mrb[120].mxu0  ;;  %6801 = vst [vmem:[#allocation2 + $0x160] sm:$0xff] %v6737_v55  ;;  %v6533_v19 = vadd.f32 %v14030_v59, %v5862_v38  ;;  %v5864_v43 = vpop.f32.mrb[137].mxu1 }
 0x648   : > { %6803 = vst [vmem:[#allocation2 + $0x170] sm:$0xff] %v6739_v13  ;;  %v6535_v33 = vadd.f32 %v14034_v32, %v6248_v41  ;;  %v6250_v57 = vpop.f32.mrb[121].mxu0  ;;  %6802 = vst [vmem:[#allocation2 + $0x168] sm:$0xff] %v6738_v42  ;;  %v6534_v46 = vadd.f32 %v14038_v23, %v5864_v43  ;;  %v5866_v51 = vpop.f32.mrb[138].mxu1 }
 0x649   : > { %6804 = vst [vmem:[#allocation2 + $0x178] sm:$0xff] %v6740_v22  ;;  %v6536_v49 = vadd.f32 %v14040_v24, %v6250_v57  ;;  %v6252_v12 = vpop.f32.mrb[122].mxu0  ;;  %v6537_v29 = vadd.f32 %v14030_v59, %v5866_v51  ;;  %v5868_v34 = vpop.f32.mrb[139].mxu1  ;;  %v6661_v11 = vmax.f32 %v6533_v19, 0.0 }
 0x64a   : > { %v6539_v44 = vadd.f32 %v14034_v32, %v6252_v12  ;;  %v6254_v28 = vpop.f32.mrb[123].mxu0  ;;  %v6538_v36 = vadd.f32 %v14038_v23, %v5868_v34  ;;  %v6663_v4 = vmax.f32 %v6535_v33, 0.0  ;;  %v6662_v17 = vmax.f32 %v6534_v46, 0.0 }
 0x64b   : > { %v6540_v62 = vadd.f32 %v14040_v24, %v6254_v28  ;;  %v6665_v52 = vmax.f32 %v6537_v29, 0.0  ;;  %v6664_v60 = vmax.f32 %v6536_v49, 0.0 }
 0x64c   : > { %v6667_v9 = vmax.f32 %v6539_v44, 0.0  ;;  %v6666_v27 = vmax.f32 %v6538_v36, 0.0 }
 0x64d   : > { %v6668_v37 = vmax.f32 %v6540_v62, 0.0  ;;  %v6741_v15 = vpack.c.bf16 %v6665_v52, %v6661_v11 }
 0x64e   : > { %v6743_v2 = vpack.c.bf16 %v6667_v9, %v6663_v4  ;;  %v6742_v48 = vpack.c.bf16 %v6666_v27, %v6662_v17  ;;  %v5872_v14 = vpop.f32.mrb[140].mxu1 }
 0x64f   : > { %v6744_v26 = vpack.c.bf16 %v6668_v37, %v6664_v60  ;;  %v6258_v8 = vpop.f32.mrb[124].mxu0  ;;  %6805 = vst [vmem:[#allocation2 + $0x180] sm:$0xff] %v6741_v15  ;;  %v6541_v50 = vadd.f32 %v14030_v59, %v5872_v14  ;;  %v5874_v53 = vpop.f32.mrb[141].mxu1 }
 0x650   : > { %6807 = vst [vmem:[#allocation2 + $0x190] sm:$0xff] %v6743_v2  ;;  %v6543_v45 = vadd.f32 %v14034_v32, %v6258_v8  ;;  %v6260_v21 = vpop.f32.mrb[125].mxu0  ;;  %6806 = vst [vmem:[#allocation2 + $0x188] sm:$0xff] %v6742_v48  ;;  %v6542_v61 = vadd.f32 %v14038_v23, %v5874_v53  ;;  %v5876_v56 = vpop.f32.mrb[142].mxu1 }
 0x651   : > { %6808 = vst [vmem:[#allocation2 + $0x198] sm:$0xff] %v6744_v26  ;;  %v6544_v54 = vadd.f32 %v14040_v24, %v6260_v21  ;;  %v6262_v25 = vpop.f32.mrb[126].mxu0  ;;  %v6545_v7 = vadd.f32 %v14030_v59, %v5876_v56  ;;  %v5878_v0 = vpop.f32.mrb[143].mxu1  ;;  %v6669_v10 = vmax.f32 %v6541_v50, 0.0 }
 0x652   : > { %v6547_v58 = vadd.f32 %v14034_v32, %v6262_v25  ;;  %v6264_v39 = vpop.f32.mrb[127].mxu0  ;;  %v6546_v16 = vadd.f32 %v14038_v23, %v5878_v0  ;;  %v6671_v30 = vmax.f32 %v6543_v45, 0.0  ;;  %v6670_v35 = vmax.f32 %v6542_v61, 0.0 }
 0x653   : > { %v6548_v3 = vadd.f32 %v14040_v24, %v6264_v39  ;;  %v6673_v31 = vmax.f32 %v6545_v7, 0.0  ;;  %v6672_v63 = vmax.f32 %v6544_v54, 0.0 }
 0x654   : > { %v6675_v20 = vmax.f32 %v6547_v58, 0.0  ;;  %v6674_v40 = vmax.f32 %v6546_v16, 0.0 }
 0x655   : > { %v6676_v47 = vmax.f32 %v6548_v3, 0.0  ;;  %v6745_v5 = vpack.c.bf16 %v6673_v31, %v6669_v10 }
 0x656   : > { %v6747_v6 = vpack.c.bf16 %v6675_v20, %v6671_v30  ;;  %v6746_v18 = vpack.c.bf16 %v6674_v40, %v6670_v35  ;;  %v5882_v55 = vpop.f32.mrb[144].mxu1 }
 0x657   : > { %v6748_v1 = vpack.c.bf16 %v6676_v47, %v6672_v63  ;;  %v6268_v13 = vpop.f32.mrb[128].mxu0  ;;  %6809 = vst [vmem:[#allocation2 + $0x1a0] sm:$0xff] %v6745_v5  ;;  %v6549_v42 = vadd.f32 %v14030_v59, %v5882_v55  ;;  %v5884_v38 = vpop.f32.mrb[145].mxu1 }
 0x658   : > { %6811 = vst [vmem:[#allocation2 + $0x1b0] sm:$0xff] %v6747_v6  ;;  %v6551_v22 = vadd.f32 %v14034_v32, %v6268_v13  ;;  %v6270_v41 = vpop.f32.mrb[129].mxu0  ;;  %6810 = vst [vmem:[#allocation2 + $0x1a8] sm:$0xff] %v6746_v18  ;;  %v6550_v19 = vadd.f32 %v14038_v23, %v5884_v38  ;;  %v5886_v43 = vpop.f32.mrb[146].mxu1 }
 0x659   : > { %6812 = vst [vmem:[#allocation2 + $0x1b8] sm:$0xff] %v6748_v1  ;;  %v6552_v33 = vadd.f32 %v14040_v24, %v6270_v41  ;;  %v6272_v57 = vpop.f32.mrb[130].mxu0  ;;  %v6553_v46 = vadd.f32 %v14030_v59, %v5886_v43  ;;  %v5888_v51 = vpop.f32.mrb[147].mxu1  ;;  %v6677_v34 = vmax.f32 %v6549_v42, 0.0 }
 0x65a   : > { %v6555_v49 = vadd.f32 %v14034_v32, %v6272_v57  ;;  %v6274_v12 = vpop.f32.mrb[131].mxu0  ;;  %v6554_v29 = vadd.f32 %v14038_v23, %v5888_v51  ;;  %v6679_v28 = vmax.f32 %v6551_v22, 0.0  ;;  %v6678_v11 = vmax.f32 %v6550_v19, 0.0 }
 0x65b   : > { %v6556_v44 = vadd.f32 %v14040_v24, %v6274_v12  ;;  %v6681_v36 = vmax.f32 %v6553_v46, 0.0  ;;  %v6680_v4 = vmax.f32 %v6552_v33, 0.0 }
 0x65c   : > { %v6683_v62 = vmax.f32 %v6555_v49, 0.0  ;;  %v6682_v52 = vmax.f32 %v6554_v29, 0.0 }
 0x65d   : > { %v6684_v9 = vmax.f32 %v6556_v44, 0.0  ;;  %v6749_v17 = vpack.c.bf16 %v6681_v36, %v6677_v34 }
 0x65e   : > { %v6751_v60 = vpack.c.bf16 %v6683_v62, %v6679_v28  ;;  %v6750_v27 = vpack.c.bf16 %v6682_v52, %v6678_v11  ;;  %v5892_v15 = vpop.f32.mrb[148].mxu1 }
 0x65f   : > { %v6752_v37 = vpack.c.bf16 %v6684_v9, %v6680_v4  ;;  %v6278_v2 = vpop.f32.mrb[132].mxu0  ;;  %6813 = vst [vmem:[#allocation2 + $0x1c0] sm:$0xff] %v6749_v17  ;;  %v6557_v48 = vadd.f32 %v14030_v59, %v5892_v15  ;;  %v5894_v14 = vpop.f32.mrb[149].mxu1 }
 0x660   : > { %6815 = vst [vmem:[#allocation2 + $0x1d0] sm:$0xff] %v6751_v60  ;;  %v6559_v26 = vadd.f32 %v14034_v32, %v6278_v2  ;;  %v6280_v8 = vpop.f32.mrb[133].mxu0  ;;  %6814 = vst [vmem:[#allocation2 + $0x1c8] sm:$0xff] %v6750_v27  ;;  %v6558_v50 = vadd.f32 %v14038_v23, %v5894_v14  ;;  %v5896_v53 = vpop.f32.mrb[150].mxu1 }
 0x661   : > { %6816 = vst [vmem:[#allocation2 + $0x1d8] sm:$0xff] %v6752_v37  ;;  %v6560_v45 = vadd.f32 %v14040_v24, %v6280_v8  ;;  %v6282_v21 = vpop.f32.mrb[134].mxu0  ;;  %v6561_v61 = vadd.f32 %v14030_v59, %v5896_v53  ;;  %v5898_v56 = vpop.f32.mrb[151].mxu1  ;;  %v6685_v0 = vmax.f32 %v6557_v48, 0.0 }
 0x662   : > { %v6563_v54 = vadd.f32 %v14034_v32, %v6282_v21  ;;  %v6284_v25 = vpop.f32.mrb[135].mxu0  ;;  %v6562_v7 = vadd.f32 %v14038_v23, %v5898_v56  ;;  %v6687_v39 = vmax.f32 %v6559_v26, 0.0  ;;  %v6686_v10 = vmax.f32 %v6558_v50, 0.0 }
 0x663   : > { %v6564_v58 = vadd.f32 %v14040_v24, %v6284_v25  ;;  %v6689_v16 = vmax.f32 %v6561_v61, 0.0  ;;  %v6688_v30 = vmax.f32 %v6560_v45, 0.0 }
 0x664   : > { %v6691_v3 = vmax.f32 %v6563_v54, 0.0  ;;  %v6690_v31 = vmax.f32 %v6562_v7, 0.0 }
 0x665   : > { %v6692_v20 = vmax.f32 %v6564_v58, 0.0  ;;  %v6753_v35 = vpack.c.bf16 %v6689_v16, %v6685_v0 }
 0x666   : > { %v6755_v63 = vpack.c.bf16 %v6691_v3, %v6687_v39  ;;  %v6754_v40 = vpack.c.bf16 %v6690_v31, %v6686_v10 }
 0x667   : > { %v6756_v59 = vpack.c.bf16 %v6692_v20, %v6688_v30  ;;  %6817 = vst [vmem:[#allocation2 + $0x1e0] sm:$0xff] %v6753_v35 }
 0x668   : > { %6819 = vst [vmem:[#allocation2 + $0x1f0] sm:$0xff] %v6755_v63  ;;  %6818 = vst [vmem:[#allocation2 + $0x1e8] sm:$0xff] %v6754_v40 }
 0x669   : > { %6820 = vst [vmem:[#allocation2 + $0x1f8] sm:$0xff] %v6756_v59 }
 0x66a PF: > { %v11739_v32 = vld [vmem:[%s12703_s22 + $0x204] ss:$8 sps:$4 sm:$0xff]   ;;  %v11743_v24 = vld [vmem:[%s12703_s22 + $0x200] ss:$8 sps:$4 sm:$0xff]   ;;  %v11745_v5 = vld [vmem:[%s12703_s22 + $0x214] ss:$8 sps:$4 sm:$0xff]  }
 0x66b   : > { %v11741_v23 = vld [vmem:[%s12703_s22 + $0x404] ss:$8 sps:$4 sm:$0xff]   ;;  %7292 = vmatprep.subr.bf16.mxu1 %v11739_v32  ;;  %v11744_v47 = vld [vmem:[%s12703_s22 + $0x400] ss:$8 sps:$4 sm:$0xff]   ;;  %v11747_v6 = vld [vmem:[%s12703_s22 + $0x414] ss:$8 sps:$4 sm:$0xff]  }
 0x66c   : > { %8180 = vmatprep.subr.bf16.mxu0 %v11741_v23  ;;  %7293 = vmatpush1.bf16.msra.mxu1 %v11743_v24  ;;  %v11749_v18 = vld [vmem:[%s12703_s22 + $0x210] ss:$8 sps:$4 sm:$0xff]   ;;  %v11751_v55 = vld [vmem:[%s12703_s22 + $0x224] ss:$8 sps:$4 sm:$0xff]   ;;  %v11755_v42 = vld [vmem:[%s12703_s22 + $0x220] ss:$8 sps:$4 sm:$0xff]  }
 0x66d   : > { %8181 = vmatpush1.bf16.msra.mxu0 %v11744_v47  ;;  %7294 = vmatprep.subr.bf16.mxu1 %v11745_v5  ;;  %v11750_v1 = vld [vmem:[%s12703_s22 + $0x410] ss:$8 sps:$4 sm:$0xff]   ;;  %v11753_v13 = vld [vmem:[%s12703_s22 + $0x424] ss:$8 sps:$4 sm:$0xff]   ;;  %v11756_v22 = vld [vmem:[%s12703_s22 + $0x420] ss:$8 sps:$4 sm:$0xff]  }
 0x66e   : > { %8182 = vmatprep.subr.bf16.mxu0 %v11747_v6  ;;  %v11757_v38 = vld [vmem:[%s12703_s22 + $0x234] ss:$8 sps:$4 sm:$0xff]   ;;  %v11761_v19 = vld [vmem:[%s12703_s22 + $0x230] ss:$8 sps:$4 sm:$0xff]   ;;  %v11763_v43 = vld [vmem:[%s12703_s22 + $0x244] ss:$8 sps:$4 sm:$0xff]  }
 0x66f   : > { %v11759_v41 = vld [vmem:[%s12703_s22 + $0x434] ss:$8 sps:$4 sm:$0xff]   ;;  %v11762_v33 = vld [vmem:[%s12703_s22 + $0x430] ss:$8 sps:$4 sm:$0xff]   ;;  %v11765_v57 = vld [vmem:[%s12703_s22 + $0x444] ss:$8 sps:$4 sm:$0xff]  }
 0x670   : > { %7295 = vmatpush1.bf16.msra.mxu1 %v11749_v18  ;;  %v11767_v46 = vld [vmem:[%s12703_s22 + $0x240] ss:$8 sps:$4 sm:$0xff]   ;;  %v11769_v51 = vld [vmem:[%s12703_s22 + $0x254] ss:$8 sps:$4 sm:$0xff]   ;;  %v11773_v29 = vld [vmem:[%s12703_s22 + $0x250] ss:$8 sps:$4 sm:$0xff]  }
 0x671   : > { %8183 = vmatpush1.bf16.msra.mxu0 %v11750_v1  ;;  %7296 = vmatprep.subr.bf16.mxu1 %v11751_v55  ;;  %v11768_v49 = vld [vmem:[%s12703_s22 + $0x440] ss:$8 sps:$4 sm:$0xff]   ;;  %v11771_v12 = vld [vmem:[%s12703_s22 + $0x454] ss:$8 sps:$4 sm:$0xff]   ;;  %v11774_v44 = vld [vmem:[%s12703_s22 + $0x450] ss:$8 sps:$4 sm:$0xff]  }
 0x672   : > { %8184 = vmatprep.subr.bf16.mxu0 %v11753_v13  ;;  %v11775_v34 = vld [vmem:[%s12703_s22 + $0x264] ss:$8 sps:$4 sm:$0xff]   ;;  %v11779_v36 = vld [vmem:[%s12703_s22 + $0x260] ss:$8 sps:$4 sm:$0xff]   ;;  %v11781_v11 = vld [vmem:[%s12703_s22 + $0x274] ss:$8 sps:$4 sm:$0xff]  }
 0x673   : > { %v11777_v28 = vld [vmem:[%s12703_s22 + $0x464] ss:$8 sps:$4 sm:$0xff]   ;;  %v11780_v62 = vld [vmem:[%s12703_s22 + $0x460] ss:$8 sps:$4 sm:$0xff]   ;;  %v11783_v4 = vld [vmem:[%s12703_s22 + $0x474] ss:$8 sps:$4 sm:$0xff]  }
 0x674   : > { %7297 = vmatpush1.bf16.msra.mxu1 %v11755_v42  ;;  %v11785_v52 = vld [vmem:[%s12703_s22 + $0x270] ss:$8 sps:$4 sm:$0xff]   ;;  %s14202_s24 = sshll.u32 %s12478_s15, 6  ;;  %v11787_v17 = vld [vmem:[%s12703_s22 + $0x284] ss:$8 sps:$4 sm:$0xff]   ;;  %p14641_p11 = scmp.ne.s32.totalorder %s12478_s15, 0 }
 0x675   : > { %8185 = vmatpush1.bf16.msra.mxu0 %v11756_v22  ;;  %7298 = vmatprep.subr.bf16.mxu1 %v11757_v38  ;;  %v11786_v9 = vld [vmem:[%s12703_s22 + $0x470] ss:$8 sps:$4 sm:$0xff]   ;;  %v11789_v60 = vld [vmem:[%s12703_s22 + $0x484] ss:$8 sps:$4 sm:$0xff]   ;;  %s10096_s26 = sadd.s32 16, %s14202_s24  ;;  %s10099_s19 = sadd.s32 32, %s14202_s24 }
 0x676   : > { %8186 = vmatprep.subr.bf16.mxu0 %v11759_v41  ;;  %v11791_v27 = vld [vmem:[%s12703_s22 + $0x280] ss:$8 sps:$4 sm:$0xff]   ;;  %v11793_v15 = vld [vmem:[%s12703_s22 + $0x294] ss:$8 sps:$4 sm:$0xff]   ;;  %s6898_s29 = sshra.s32 %s10096_s26, 4  ;;  %s7786_s14 = sshra.s32 %s10099_s19, 4 }
 0x677   : > { %v11792_v37 = vld [vmem:[%s12703_s22 + $0x480] ss:$8 sps:$4 sm:$0xff]   ;;  %v11795_v2 = vld [vmem:[%s12703_s22 + $0x494] ss:$8 sps:$4 sm:$0xff]   ;;  %v11797_v48 = vld [vmem:[%s12703_s22 + $0x290] ss:$8 sps:$4 sm:$0xff]  }
 0x678   : > { %7299 = vmatpush1.bf16.msra.mxu1 %v11761_v19  ;;  %v11798_v26 = vld [vmem:[%s12703_s22 + $0x490] ss:$8 sps:$4 sm:$0xff]   ;;  %v11799_v14 = vld [vmem:[%s12703_s22 + $0x2a4] ss:$8 sps:$4 sm:$0xff]   ;;  %s10097_s18 = sshll.u32 %s6898_s29, 5  ;;  %s10100_s21 = sshll.u32 %s7786_s14, 5 }
 0x679   : > { %8187 = vmatpush1.bf16.msra.mxu0 %v11762_v33  ;;  %7300 = vmatprep.subr.bf16.mxu1 %v11763_v43  ;;  %v11801_v8 = vld [vmem:[%s12703_s22 + $0x4a4] ss:$8 sps:$4 sm:$0xff]   ;;  %v11803_v50 = vld [vmem:[%s12703_s22 + $0x2a0] ss:$8 sps:$4 sm:$0xff]   ;;  %v11805_v53 = vld [vmem:[%s12703_s22 + $0x2b4] ss:$8 sps:$4 sm:$0xff]  }
 0x67a   : > { %8188 = vmatprep.subr.bf16.mxu0 %v11765_v57  ;;  %v11804_v45 = vld [vmem:[%s12703_s22 + $0x4a0] ss:$8 sps:$4 sm:$0xff]   ;;  %v11807_v21 = vld [vmem:[%s12703_s22 + $0x4b4] ss:$8 sps:$4 sm:$0xff]   ;;  %s14221_s1 = scalar_lea.vmem [#allocation2], %s10097_s18  ;;  %s14226_s17 = scalar_lea.vmem [#allocation2], %s10100_s21 }
 0x67b   : > { %v6904_v61 = vld [vmem:[%s14221_s1 + $0x8] sm:$0xff]  ;;  %v11809_v54 = vld [vmem:[%s12703_s22 + $0x2b0] ss:$8 sps:$4 sm:$0xff]   ;;  %v11817_v16 = vld [vmem:[%s12703_s22 + $0x2d4] ss:$8 sps:$4 sm:$0xff]   ;;  %s10102_s2 = sadd.s32 48, %s14202_s24 }
 0x67c   : > { %7301 = vmatpush1.bf16.msra.mxu1 %v11767_v46  ;;  %7324 = vmatprep.mubr.bf16.mxu1 %v6904_v61  ;;  %v11810_v56 = vld [vmem:[%s12703_s22 + $0x4b0] ss:$8 sps:$4 sm:$0xff]   ;;  %v7792_v25 = vld [vmem:[%s14226_s17 + $0x8] sm:$0xff]  ;;  %v11819_v3 = vld [vmem:[%s12703_s22 + $0x4d4] ss:$8 sps:$4 sm:$0xff]   ;;  %s6822_s16 = sshra.s32 %s14202_s24, 4 }
 0x67d   : > { %8189 = vmatpush1.bf16.msra.mxu0 %v11768_v49  ;;  %7302 = vmatprep.subr.bf16.mxu1 %v11769_v51  ;;  %v11811_v7 = vld [vmem:[%s12703_s22 + $0x2c4] ss:$8 sps:$4 sm:$0xff]   ;;  %v11815_v0 = vld [vmem:[%s12703_s22 + $0x2c0] ss:$8 sps:$4 sm:$0xff]   ;;  %v11821_v10 = vld [vmem:[%s12703_s22 + $0x2d0] ss:$8 sps:$4 sm:$0xff]  }
 0x67e   : > { %8190 = vmatprep.subr.bf16.mxu0 %v11771_v12  ;;  %v11813_v58 = vld [vmem:[%s12703_s22 + $0x4c4] ss:$8 sps:$4 sm:$0xff]   ;;  %8212 = vmatprep.mubr.bf16.mxu0 %v7792_v25  ;;  %v11816_v39 = vld [vmem:[%s12703_s22 + $0x4c0] ss:$8 sps:$4 sm:$0xff]   ;;  %v11822_v30 = vld [vmem:[%s12703_s22 + $0x4d0] ss:$8 sps:$4 sm:$0xff]  }
 0x67f   : > { %v11823_v31 = vld [vmem:[%s12703_s22 + $0x2e4] ss:$8 sps:$4 sm:$0xff]   ;;  %v11827_v35 = vld [vmem:[%s12703_s22 + $0x2e0] ss:$8 sps:$4 sm:$0xff]   ;;  %v11829_v40 = vld [vmem:[%s12703_s22 + $0x2f4] ss:$8 sps:$4 sm:$0xff]  }
 0x680   : > { %7303 = vmatpush1.bf16.msra.mxu1 %v11773_v29  ;;  %v11825_v20 = vld [vmem:[%s12703_s22 + $0x4e4] ss:$8 sps:$4 sm:$0xff]   ;;  %v11828_v63 = vld [vmem:[%s12703_s22 + $0x4e0] ss:$8 sps:$4 sm:$0xff]   ;;  %v11831_v59 = vld [vmem:[%s12703_s22 + $0x4f4] ss:$8 sps:$4 sm:$0xff]  }
 0x681   : > { %8191 = vmatpush1.bf16.msra.mxu0 %v11774_v44  ;;  %7304 = vmatprep.subr.bf16.mxu1 %v11775_v34  ;;  %v11833_v32 = vld [vmem:[%s12703_s22 + $0x2f0] ss:$8 sps:$4 sm:$0xff]   ;;  %v11837_v24 = vld [vmem:[%s12703_s22 + $0x304] ss:$8 sps:$4 sm:$0xff]   ;;  %v11835_v5 = vld [vmem:[%s12703_s22 + $0x300] ss:$8 sps:$4 sm:$0xff]  }
 0x682   : > { %8192 = vmatprep.subr.bf16.mxu0 %v11777_v28  ;;  %v11834_v23 = vld [vmem:[%s12703_s22 + $0x4f0] ss:$8 sps:$4 sm:$0xff]   ;;  %v11840_v47 = vld [vmem:[%s12703_s22 + $0x504] ss:$8 sps:$4 sm:$0xff]   ;;  %v11838_v6 = vld [vmem:[%s12703_s22 + $0x500] ss:$8 sps:$4 sm:$0xff]  }
 0x683   : > { %v6903_v18 = vld [vmem:[%s14221_s1] sm:$0xff]  ;;  %v11849_v38 = vld [vmem:[%s12703_s22 + $0x324] ss:$8 sps:$4 sm:$0xff]   ;;  %v11847_v19 = vld [vmem:[%s12703_s22 + $0x320] ss:$8 sps:$4 sm:$0xff]   ;;  %s8272_s9 = sshra.s32 %s10102_s2, 4 }
 0x684   : > { %7305 = vmatpush1.bf16.msra.mxu1 %v11779_v36  ;;  %v7791_v1 = vld [vmem:[%s14226_s17] sm:$0xff]  ;;  %v11852_v41 = vld [vmem:[%s12703_s22 + $0x524] ss:$8 sps:$4 sm:$0xff]   ;;  %v11850_v33 = vld [vmem:[%s12703_s22 + $0x520] ss:$8 sps:$4 sm:$0xff]   ;;  %s10094_s30 = sshll.u32 %s6822_s16, 5 }
 0x685   : > { %8193 = vmatpush1.bf16.msra.mxu0 %v11780_v62  ;;  %7306 = vmatprep.subr.bf16.mxu1 %v11781_v11  ;;  %v11843_v55 = vld [vmem:[%s12703_s22 + $0x314] ss:$8 sps:$4 sm:$0xff]   ;;  %v11841_v42 = vld [vmem:[%s12703_s22 + $0x310] ss:$8 sps:$4 sm:$0xff]   ;;  %v11861_v51 = vld [vmem:[%s12703_s22 + $0x344] ss:$8 sps:$4 sm:$0xff]  }
 0x686   : > { %8194 = vmatprep.subr.bf16.mxu0 %v11783_v4  ;;  %v11846_v13 = vld [vmem:[%s12703_s22 + $0x514] ss:$8 sps:$4 sm:$0xff]   ;;  %v11844_v22 = vld [vmem:[%s12703_s22 + $0x510] ss:$8 sps:$4 sm:$0xff]   ;;  %v11864_v12 = vld [vmem:[%s12703_s22 + $0x544] ss:$8 sps:$4 sm:$0xff]  }
 0x687   : > { %v11855_v43 = vld [vmem:[%s12703_s22 + $0x334] ss:$8 sps:$4 sm:$0xff]   ;;  %v11853_v46 = vld [vmem:[%s12703_s22 + $0x330] ss:$8 sps:$4 sm:$0xff]   ;;  %v11859_v29 = vld [vmem:[%s12703_s22 + $0x340] ss:$8 sps:$4 sm:$0xff]  }
 0x688   : > { %7307 = vmatpush1.bf16.msra.mxu1 %v11785_v52  ;;  %v11858_v57 = vld [vmem:[%s12703_s22 + $0x534] ss:$8 sps:$4 sm:$0xff]   ;;  %v11856_v49 = vld [vmem:[%s12703_s22 + $0x530] ss:$8 sps:$4 sm:$0xff]   ;;  %v11862_v44 = vld [vmem:[%s12703_s22 + $0x540] ss:$8 sps:$4 sm:$0xff]  }
 0x689   : > { %8195 = vmatpush1.bf16.msra.mxu0 %v11786_v9  ;;  %7308 = vmatprep.subr.bf16.mxu1 %v11787_v17  ;;  %v11867_v34 = vld [vmem:[%s12703_s22 + $0x354] ss:$8 sps:$4 sm:$0xff]   ;;  %v11865_v36 = vld [vmem:[%s12703_s22 + $0x350] ss:$8 sps:$4 sm:$0xff]   ;;  %v11873_v11 = vld [vmem:[%s12703_s22 + $0x364] ss:$8 sps:$4 sm:$0xff]  }
 0x68a   : > { %8196 = vmatprep.subr.bf16.mxu0 %v11789_v60  ;;  %v11870_v28 = vld [vmem:[%s12703_s22 + $0x554] ss:$8 sps:$4 sm:$0xff]   ;;  %v11868_v62 = vld [vmem:[%s12703_s22 + $0x550] ss:$8 sps:$4 sm:$0xff]   ;;  %v11876_v4 = vld [vmem:[%s12703_s22 + $0x564] ss:$8 sps:$4 sm:$0xff]  }
 0x68b   : > { %v6906_v52 = vld [vmem:[%s14221_s1 + $0x18] sm:$0xff]  ;;  %v11871_v9 = vld [vmem:[%s12703_s22 + $0x360] ss:$8 sps:$4 sm:$0xff]   ;;  %v11897_v61 = vld [vmem:[%s12703_s22 + $0x3a4] ss:$8 sps:$4 sm:$0xff]   ;;  %s10103_s20 = sshll.u32 %s8272_s9, 5 }
 0x68c   : > { %7309 = vmatpush1.bf16.msra.mxu1 %v11791_v27  ;;  %v11874_v17 = vld [vmem:[%s12703_s22 + $0x560] ss:$8 sps:$4 sm:$0xff]   ;;  %v7794_v60 = vld [vmem:[%s14226_s17 + $0x18] sm:$0xff]  ;;  %s14324_s13 = scalar_lea.vmem [#allocation2], %s10094_s30  ;;  %s14328_s12 = scalar_lea.vmem [#allocation2], %s10103_s20 }
 0x68d   : > { %8197 = vmatpush1.bf16.msra.mxu0 %v11792_v37  ;;  %7310 = vmatprep.subr.bf16.mxu1 %v11793_v15  ;;  %v11879_v27 = vld [vmem:[%s12703_s22 + $0x374] ss:$8 sps:$4 sm:$0xff]   ;;  %v11877_v15 = vld [vmem:[%s12703_s22 + $0x370] ss:$8 sps:$4 sm:$0xff]   ;;  %v11898_v25 = vld [vmem:[%s12703_s22 + $0x5a0] ss:$8 sps:$4 sm:$0xff]  }
 0x68e   : > { %8198 = vmatprep.subr.bf16.mxu0 %v11795_v2  ;;  %v11882_v37 = vld [vmem:[%s12703_s22 + $0x574] ss:$8 sps:$4 sm:$0xff]   ;;  %v11880_v2 = vld [vmem:[%s12703_s22 + $0x570] ss:$8 sps:$4 sm:$0xff]  }
 0x690   : > { %7311 = vmatpush1.bf16.msra.mxu1 %v11797_v48  ;;  %v11885_v48 = vld [vmem:[%s12703_s22 + $0x384] ss:$8 sps:$4 sm:$0xff]  }
 0x691   : > { %8199 = vmatpush1.bf16.msra.mxu0 %v11798_v26  ;;  %7312 = vmatprep.subr.bf16.mxu1 %v11799_v14  ;;  %v11888_v26 = vld [vmem:[%s12703_s22 + $0x584] ss:$8 sps:$4 sm:$0xff]   ;;  %v11883_v14 = vld [vmem:[%s12703_s22 + $0x380] ss:$8 sps:$4 sm:$0xff]  }
 0x692   : > { %8200 = vmatprep.subr.bf16.mxu0 %v11801_v8  ;;  %v11886_v8 = vld [vmem:[%s12703_s22 + $0x580] ss:$8 sps:$4 sm:$0xff]  }
 0x694   : > { %7313 = vmatpush1.bf16.msra.mxu1 %v11803_v50  ;;  %v11891_v50 = vld [vmem:[%s12703_s22 + $0x394] ss:$8 sps:$4 sm:$0xff]  }
 0x695   : > { %8201 = vmatpush1.bf16.msra.mxu0 %v11804_v45  ;;  %7314 = vmatprep.subr.bf16.mxu1 %v11805_v53  ;;  %v11894_v45 = vld [vmem:[%s12703_s22 + $0x594] ss:$8 sps:$4 sm:$0xff]   ;;  %v11889_v53 = vld [vmem:[%s12703_s22 + $0x390] ss:$8 sps:$4 sm:$0xff]  }
 0x696   : > { %8202 = vmatprep.subr.bf16.mxu0 %v11807_v21  ;;  %v11892_v21 = vld [vmem:[%s12703_s22 + $0x590] ss:$8 sps:$4 sm:$0xff]  }
 0x698   : > { %7315 = vmatpush1.bf16.msra.mxu1 %v11809_v54  ;;  %v11900_v54 = vld [vmem:[%s12703_s22 + $0x5a4] ss:$8 sps:$4 sm:$0xff]  }
 0x699   : > { %8203 = vmatpush1.bf16.msra.mxu0 %v11810_v56  ;;  %7316 = vmatprep.subr.bf16.mxu1 %v11811_v7  ;;  %v11895_v56 = vld [vmem:[%s12703_s22 + $0x3a0] ss:$8 sps:$4 sm:$0xff]   ;;  %v11903_v7 = vld [vmem:[%s12703_s22 + $0x3b4] ss:$8 sps:$4 sm:$0xff]  }
 0x69a   : > { %8204 = vmatprep.subr.bf16.mxu0 %v11813_v58  ;;  %v11906_v58 = vld [vmem:[%s12703_s22 + $0x5b4] ss:$8 sps:$4 sm:$0xff]  }
 0x69c   : > { %7317 = vmatpush1.bf16.msra.mxu1 %v11815_v0  ;;  %v11901_v0 = vld [vmem:[%s12703_s22 + $0x3b0] ss:$8 sps:$4 sm:$0xff]  }
 0x69d   : > { %8205 = vmatpush1.bf16.msra.mxu0 %v11816_v39  ;;  %7318 = vmatprep.subr.bf16.mxu1 %v11817_v16  ;;  %v11904_v39 = vld [vmem:[%s12703_s22 + $0x5b0] ss:$8 sps:$4 sm:$0xff]   ;;  %v11909_v16 = vld [vmem:[%s12703_s22 + $0x3c4] ss:$8 sps:$4 sm:$0xff]  }
 0x69e   : > { %8206 = vmatprep.subr.bf16.mxu0 %v11819_v3  ;;  %v11912_v3 = vld [vmem:[%s12703_s22 + $0x5c4] ss:$8 sps:$4 sm:$0xff]  }
 0x6a0   : > { %7319 = vmatpush1.bf16.msra.mxu1 %v11821_v10  ;;  %v11907_v10 = vld [vmem:[%s12703_s22 + $0x3c0] ss:$8 sps:$4 sm:$0xff]  }
 0x6a1   : > { %8207 = vmatpush1.bf16.msra.mxu0 %v11822_v30  ;;  %7320 = vmatprep.subr.bf16.mxu1 %v11823_v31  ;;  %v11910_v30 = vld [vmem:[%s12703_s22 + $0x5c0] ss:$8 sps:$4 sm:$0xff]   ;;  %v11915_v31 = vld [vmem:[%s12703_s22 + $0x3d4] ss:$8 sps:$4 sm:$0xff]  }
 0x6a2   : > { %8208 = vmatprep.subr.bf16.mxu0 %v11825_v20  ;;  %v11918_v20 = vld [vmem:[%s12703_s22 + $0x5d4] ss:$8 sps:$4 sm:$0xff]  }
 0x6a4   : > { %7321 = vmatpush1.bf16.msra.mxu1 %v11827_v35  ;;  %v11913_v35 = vld [vmem:[%s12703_s22 + $0x3d0] ss:$8 sps:$4 sm:$0xff]  }
 0x6a5   : > { %8209 = vmatpush1.bf16.msra.mxu0 %v11828_v63  ;;  %7322 = vmatprep.subr.bf16.mxu1 %v11829_v40  ;;  %v11916_v63 = vld [vmem:[%s12703_s22 + $0x5d0] ss:$8 sps:$4 sm:$0xff]   ;;  %v11921_v40 = vld [vmem:[%s12703_s22 + $0x3e4] ss:$8 sps:$4 sm:$0xff]  }
 0x6a6   : > { %8210 = vmatprep.subr.bf16.mxu0 %v11831_v59  ;;  %v11924_v59 = vld [vmem:[%s12703_s22 + $0x5e4] ss:$8 sps:$4 sm:$0xff]  }
 0x6a8   : > { %7323 = vmatpush1.bf16.msra.mxu1 %v11833_v32  ;;  %v11919_v32 = vld [vmem:[%s12703_s22 + $0x3e0] ss:$8 sps:$4 sm:$0xff]  }
 0x6a9   : > { %8211 = vmatpush1.bf16.msra.mxu0 %v11834_v23  ;;  %7335 = vmatprep.subr.bf16.mxu1 %v11837_v24  ;;  %v11922_v23 = vld [vmem:[%s12703_s22 + $0x5e0] ss:$8 sps:$4 sm:$0xff]   ;;  %v11927_v24 = vld [vmem:[%s12703_s22 + $0x3f4] ss:$8 sps:$4 sm:$0xff]  }
 0x6aa   : > { %8223 = vmatprep.subr.bf16.mxu0 %v11840_v47  ;;  %v11930_v47 = vld [vmem:[%s12703_s22 + $0x5f4] ss:$8 sps:$4 sm:$0xff]  }
 0x6ab   : > { %7325 = vmatmul.mubr.bf16.vlgmr.msra.gmra.mrb[0].mxu1 %v6903_v18  ;;  %v11933_v18 = vld [vmem:[%s12703_s22 + $0x4] ss:$8 sps:$4 sm:$0xff]  }
 0x6ac   : > { %8213 = vmatmul.mubr.bf16.vlgmr.msra.gmra.mrb[0].mxu0 %v7791_v1  ;;  %7336 = vmatpush1.bf16.msra.mxu1 %v11835_v5  ;;  %v11925_v5 = vld [vmem:[%s12703_s22 + $0x3f0] ss:$8 sps:$4 sm:$0xff]   ;;  %v11936_v1 = vld [vmem:[%s12703_s22 + $0x604] ss:$8 sps:$4 sm:$0xff]  }
 0x6ad   : > { %8224 = vmatpush1.bf16.msra.mxu0 %v11838_v6  ;;  %7337 = vmatprep.subr.bf16.mxu1 %v11843_v55  ;;  %v11928_v6 = vld [vmem:[%s12703_s22 + $0x5f0] ss:$8 sps:$4 sm:$0xff]   ;;  %v11931_v55 = vld [vmem:[%s12703_s22] ss:$8 sps:$4 sm:$0xff]  }
 0x6ae   : > { %8225 = vmatprep.subr.bf16.mxu0 %v11846_v13  ;;  %7367 = vmatprep.mubr.bf16.mxu1 %v6906_v52  ;;  %v11934_v13 = vld [vmem:[%s12703_s22 + $0x600] ss:$8 sps:$4 sm:$0xff]   ;;  %v11963_v52 = vld [vmem:[%s12703_s22 + $0x54] ss:$8 sps:$4 sm:$0xff]  }
 0x6af   : > { %8255 = vmatprep.mubr.bf16.mxu0 %v7794_v60  ;;  %v11964_v60 = vld [vmem:[%s12703_s22 + $0x650] ss:$8 sps:$4 sm:$0xff]  }
 0x6b0   : > { %7338 = vmatpush1.bf16.msra.mxu1 %v11841_v42  ;;  %v6905_v42 = vld [vmem:[%s14221_s1 + $0x10] sm:$0xff] }
 0x6b1   : > { %8226 = vmatpush1.bf16.msra.mxu0 %v11844_v22  ;;  %7339 = vmatprep.subr.bf16.mxu1 %v11849_v38  ;;  %v7793_v22 = vld [vmem:[%s14226_s17 + $0x10] sm:$0xff]  ;;  %v11939_v38 = vld [vmem:[%s12703_s22 + $0x14] ss:$8 sps:$4 sm:$0xff]  }
 0x6b2   : > { %8227 = vmatprep.subr.bf16.mxu0 %v11852_v41  ;;  %v11942_v41 = vld [vmem:[%s12703_s22 + $0x614] ss:$8 sps:$4 sm:$0xff]  }
 0x6b4   : > { %7340 = vmatpush1.bf16.msra.mxu1 %v11847_v19  ;;  %v11937_v19 = vld [vmem:[%s12703_s22 + $0x10] ss:$8 sps:$4 sm:$0xff]  }
 0x6b5   : > { %8228 = vmatpush1.bf16.msra.mxu0 %v11850_v33  ;;  %7341 = vmatprep.subr.bf16.mxu1 %v11855_v43  ;;  %v6828_v33 = vld [vmem:[%s14324_s13 + $0x8] sm:$0xff]  ;;  %v11940_v43 = vld [vmem:[%s12703_s22 + $0x610] ss:$8 sps:$4 sm:$0xff]  }
 0x6b6   : > { %8229 = vmatprep.subr.bf16.mxu0 %v11858_v57  ;;  %v8278_v57 = vld [vmem:[%s14328_s12 + $0x8] sm:$0xff] }
 0x6b8   : > { %7342 = vmatpush1.bf16.msra.mxu1 %v11853_v46  ;;  %v11945_v46 = vld [vmem:[%s12703_s22 + $0x24] ss:$8 sps:$4 sm:$0xff]  }
 0x6b9   : > { %8230 = vmatpush1.bf16.msra.mxu0 %v11856_v49  ;;  %7343 = vmatprep.subr.bf16.mxu1 %v11861_v51  ;;  %v11948_v49 = vld [vmem:[%s12703_s22 + $0x624] ss:$8 sps:$4 sm:$0xff]   ;;  %v11943_v51 = vld [vmem:[%s12703_s22 + $0x20] ss:$8 sps:$4 sm:$0xff]  }
 0x6ba   : > { %8231 = vmatprep.subr.bf16.mxu0 %v11864_v12  ;;  %v11946_v12 = vld [vmem:[%s12703_s22 + $0x620] ss:$8 sps:$4 sm:$0xff]  }
 0x6bc   : > { %7344 = vmatpush1.bf16.msra.mxu1 %v11859_v29  ;;  %v11951_v29 = vld [vmem:[%s12703_s22 + $0x34] ss:$8 sps:$4 sm:$0xff]  }
 0x6bd   : > { %8232 = vmatpush1.bf16.msra.mxu0 %v11862_v44  ;;  %7345 = vmatprep.subr.bf16.mxu1 %v11867_v34  ;;  %v11954_v44 = vld [vmem:[%s12703_s22 + $0x634] ss:$8 sps:$4 sm:$0xff]   ;;  %v11949_v34 = vld [vmem:[%s12703_s22 + $0x30] ss:$8 sps:$4 sm:$0xff]  }
 0x6be   : > { %8233 = vmatprep.subr.bf16.mxu0 %v11870_v28  ;;  %v11952_v28 = vld [vmem:[%s12703_s22 + $0x630] ss:$8 sps:$4 sm:$0xff]  }
 0x6c0   : > { %7346 = vmatpush1.bf16.msra.mxu1 %v11865_v36  ;;  %v11957_v36 = vld [vmem:[%s12703_s22 + $0x44] ss:$8 sps:$4 sm:$0xff]  }
 0x6c1   : > { %8234 = vmatpush1.bf16.msra.mxu0 %v11868_v62  ;;  %7347 = vmatprep.subr.bf16.mxu1 %v11873_v11  ;;  %v11960_v62 = vld [vmem:[%s12703_s22 + $0x644] ss:$8 sps:$4 sm:$0xff]   ;;  %v11955_v11 = vld [vmem:[%s12703_s22 + $0x40] ss:$8 sps:$4 sm:$0xff]  }
 0x6c2   : > { %8235 = vmatprep.subr.bf16.mxu0 %v11876_v4  ;;  %v11958_v4 = vld [vmem:[%s12703_s22 + $0x640] ss:$8 sps:$4 sm:$0xff]  }
 0x6c4   : > { %7348 = vmatpush1.bf16.msra.mxu1 %v11871_v9  ;;  %v11966_v9 = vld [vmem:[%s12703_s22 + $0x654] ss:$8 sps:$4 sm:$0xff]  }
 0x6c5   : > { %8236 = vmatpush1.bf16.msra.mxu0 %v11874_v17  ;;  %7349 = vmatprep.subr.bf16.mxu1 %v11879_v27  ;;  %v11961_v17 = vld [vmem:[%s12703_s22 + $0x50] ss:$8 sps:$4 sm:$0xff]   ;;  %v11969_v27 = vld [vmem:[%s12703_s22 + $0x64] ss:$8 sps:$4 sm:$0xff]  }
 0x6c6   : > { %8237 = vmatprep.subr.bf16.mxu0 %v11882_v37  ;;  %v11972_v37 = vld [vmem:[%s12703_s22 + $0x664] ss:$8 sps:$4 sm:$0xff]  }
 0x6c8   : > { %7350 = vmatpush1.bf16.msra.mxu1 %v11877_v15  ;;  %v11967_v15 = vld [vmem:[%s12703_s22 + $0x60] ss:$8 sps:$4 sm:$0xff]  }
 0x6c9   : > { %8238 = vmatpush1.bf16.msra.mxu0 %v11880_v2  ;;  %7351 = vmatprep.subr.bf16.mxu1 %v11885_v48  ;;  %v11970_v2 = vld [vmem:[%s12703_s22 + $0x660] ss:$8 sps:$4 sm:$0xff]   ;;  %v11975_v48 = vld [vmem:[%s12703_s22 + $0x74] ss:$8 sps:$4 sm:$0xff]  }
 0x6ca   : > { %8239 = vmatprep.subr.bf16.mxu0 %v11888_v26  ;;  %v11978_v26 = vld [vmem:[%s12703_s22 + $0x674] ss:$8 sps:$4 sm:$0xff]  }
 0x6cc   : > { %7352 = vmatpush1.bf16.msra.mxu1 %v11883_v14  ;;  %v11973_v14 = vld [vmem:[%s12703_s22 + $0x70] ss:$8 sps:$4 sm:$0xff]  }
 0x6cd   : > { %8240 = vmatpush1.bf16.msra.mxu0 %v11886_v8  ;;  %7353 = vmatprep.subr.bf16.mxu1 %v11891_v50  ;;  %v11976_v8 = vld [vmem:[%s12703_s22 + $0x670] ss:$8 sps:$4 sm:$0xff]   ;;  %v11981_v50 = vld [vmem:[%s12703_s22 + $0x84] ss:$8 sps:$4 sm:$0xff]  }
 0x6ce   : > { %8241 = vmatprep.subr.bf16.mxu0 %v11894_v45  ;;  %v11984_v45 = vld [vmem:[%s12703_s22 + $0x684] ss:$8 sps:$4 sm:$0xff]  }
 0x6d0   : > { %7354 = vmatpush1.bf16.msra.mxu1 %v11889_v53  ;;  %v11979_v53 = vld [vmem:[%s12703_s22 + $0x80] ss:$8 sps:$4 sm:$0xff]  }
 0x6d1   : > { %8242 = vmatpush1.bf16.msra.mxu0 %v11892_v21  ;;  %7355 = vmatprep.subr.bf16.mxu1 %v11897_v61  ;;  %v11982_v21 = vld [vmem:[%s12703_s22 + $0x680] ss:$8 sps:$4 sm:$0xff]   ;;  %v11987_v61 = vld [vmem:[%s12703_s22 + $0x94] ss:$8 sps:$4 sm:$0xff]  }
 0x6d2   : > { %8243 = vmatprep.subr.bf16.mxu0 %v11900_v54  ;;  %v11990_v54 = vld [vmem:[%s12703_s22 + $0x694] ss:$8 sps:$4 sm:$0xff]  }
 0x6d4   : > { %7356 = vmatpush1.bf16.msra.mxu1 %v11895_v56  ;;  %v11985_v56 = vld [vmem:[%s12703_s22 + $0x90] ss:$8 sps:$4 sm:$0xff]  }
 0x6d5   : > { %8244 = vmatpush1.bf16.msra.mxu0 %v11898_v25  ;;  %7357 = vmatprep.subr.bf16.mxu1 %v11903_v7  ;;  %v11988_v25 = vld [vmem:[%s12703_s22 + $0x690] ss:$8 sps:$4 sm:$0xff]   ;;  %v11993_v7 = vld [vmem:[%s12703_s22 + $0xa4] ss:$8 sps:$4 sm:$0xff]  }
 0x6d6   : > { %8245 = vmatprep.subr.bf16.mxu0 %v11906_v58  ;;  %v11996_v58 = vld [vmem:[%s12703_s22 + $0x6a4] ss:$8 sps:$4 sm:$0xff]  }
 0x6d8   : > { %7358 = vmatpush1.bf16.msra.mxu1 %v11901_v0  ;;  %v11991_v0 = vld [vmem:[%s12703_s22 + $0xa0] ss:$8 sps:$4 sm:$0xff]  }
 0x6d9   : > { %8246 = vmatpush1.bf16.msra.mxu0 %v11904_v39  ;;  %7359 = vmatprep.subr.bf16.mxu1 %v11909_v16  ;;  %v11994_v39 = vld [vmem:[%s12703_s22 + $0x6a0] ss:$8 sps:$4 sm:$0xff]   ;;  %v11999_v16 = vld [vmem:[%s12703_s22 + $0xb4] ss:$8 sps:$4 sm:$0xff]  }
 0x6da   : > { %8247 = vmatprep.subr.bf16.mxu0 %v11912_v3  ;;  %v12002_v3 = vld [vmem:[%s12703_s22 + $0x6b4] ss:$8 sps:$4 sm:$0xff]  }
 0x6dc   : > { %7360 = vmatpush1.bf16.msra.mxu1 %v11907_v10  ;;  %v11997_v10 = vld [vmem:[%s12703_s22 + $0xb0] ss:$8 sps:$4 sm:$0xff]  }
 0x6dd   : > { %8248 = vmatpush1.bf16.msra.mxu0 %v11910_v30  ;;  %7361 = vmatprep.subr.bf16.mxu1 %v11915_v31  ;;  %v12000_v30 = vld [vmem:[%s12703_s22 + $0x6b0] ss:$8 sps:$4 sm:$0xff]   ;;  %v12005_v31 = vld [vmem:[%s12703_s22 + $0xc4] ss:$8 sps:$4 sm:$0xff]  }
 0x6de   : > { %8249 = vmatprep.subr.bf16.mxu0 %v11918_v20  ;;  %v12008_v20 = vld [vmem:[%s12703_s22 + $0x6c4] ss:$8 sps:$4 sm:$0xff]  }
 0x6e0   : > { %7362 = vmatpush1.bf16.msra.mxu1 %v11913_v35  ;;  %v12003_v35 = vld [vmem:[%s12703_s22 + $0xc0] ss:$8 sps:$4 sm:$0xff]  }
 0x6e1   : > { %8250 = vmatpush1.bf16.msra.mxu0 %v11916_v63  ;;  %7363 = vmatprep.subr.bf16.mxu1 %v11921_v40  ;;  %v12006_v63 = vld [vmem:[%s12703_s22 + $0x6c0] ss:$8 sps:$4 sm:$0xff]   ;;  %v12011_v40 = vld [vmem:[%s12703_s22 + $0xd4] ss:$8 sps:$4 sm:$0xff]  }
 0x6e2   : > { %8251 = vmatprep.subr.bf16.mxu0 %v11924_v59  ;;  %v12014_v59 = vld [vmem:[%s12703_s22 + $0x6d4] ss:$8 sps:$4 sm:$0xff]  }
 0x6e4   : > { %7364 = vmatpush1.bf16.msra.mxu1 %v11919_v32  ;;  %v12009_v32 = vld [vmem:[%s12703_s22 + $0xd0] ss:$8 sps:$4 sm:$0xff]  }
 0x6e5   : > { %8252 = vmatpush1.bf16.msra.mxu0 %v11922_v23  ;;  %7365 = vmatprep.subr.bf16.mxu1 %v11927_v24  ;;  %v12012_v23 = vld [vmem:[%s12703_s22 + $0x6d0] ss:$8 sps:$4 sm:$0xff]   ;;  %v12017_v24 = vld [vmem:[%s12703_s22 + $0xe4] ss:$8 sps:$4 sm:$0xff]  }
 0x6e6   : > { %8253 = vmatprep.subr.bf16.mxu0 %v11930_v47  ;;  %v12020_v47 = vld [vmem:[%s12703_s22 + $0x6e4] ss:$8 sps:$4 sm:$0xff]  }
 0x6e8   : > { %7366 = vmatpush1.bf16.msra.mxu1 %v11925_v5  ;;  %v12015_v5 = vld [vmem:[%s12703_s22 + $0xe0] ss:$8 sps:$4 sm:$0xff]  }
 0x6e9   : > { %8254 = vmatpush1.bf16.msra.mxu0 %v11928_v6  ;;  %7698 = vmatprep.subr.bf16.mxu1 %v11933_v18  ;;  %v12018_v6 = vld [vmem:[%s12703_s22 + $0x6e0] ss:$8 sps:$4 sm:$0xff]   ;;  %v12023_v18 = vld [vmem:[%s12703_s22 + $0xf4] ss:$8 sps:$4 sm:$0xff]  }
 0x6ea   : > { %8666 = vmatprep.subr.bf16.mxu0 %v11936_v1  ;;  %v12026_v1 = vld [vmem:[%s12703_s22 + $0x6f4] ss:$8 sps:$4 sm:$0xff]  }
 0x6eb   : > { %7368 = vmatmul.mubr.bf16.vlgmr.msra.gmra.mrb[0].mxu1 %v6905_v42  ;;  %v12029_v42 = vld [vmem:[%s12703_s22 + $0x104] ss:$8 sps:$4 sm:$0xff]  }
 0x6ec   : > { %8256 = vmatmul.mubr.bf16.vlgmr.msra.gmra.mrb[0].mxu0 %v7793_v22  ;;  %7699 = vmatpush1.bf16.msra.mxu1 %v11931_v55  ;;  %v12021_v55 = vld [vmem:[%s12703_s22 + $0xf0] ss:$8 sps:$4 sm:$0xff]   ;;  %v12032_v22 = vld [vmem:[%s12703_s22 + $0x704] ss:$8 sps:$4 sm:$0xff]  }
 0x6ed   : > { %8667 = vmatpush1.bf16.msra.mxu0 %v11934_v13  ;;  %7700 = vmatprep.subr.bf16.mxu1 %v11939_v38  ;;  %v12024_v13 = vld [vmem:[%s12703_s22 + $0x6f0] ss:$8 sps:$4 sm:$0xff]   ;;  %v12027_v38 = vld [vmem:[%s12703_s22 + $0x100] ss:$8 sps:$4 sm:$0xff]  }
 0x6ee   : > { %8668 = vmatprep.subr.bf16.mxu0 %v11942_v41  ;;  %7730 = vmatprep.mubr.bf16.mxu1 %v6828_v33  ;;  %v12030_v41 = vld [vmem:[%s12703_s22 + $0x700] ss:$8 sps:$4 sm:$0xff]   ;;  %v8277_v33 = vld [vmem:[%s14328_s12] sm:$0xff] }
 0x6ef   : > { %8698 = vmatprep.mubr.bf16.mxu0 %v8278_v57  ;;  %v12038_v57 = vld [vmem:[%s12703_s22 + $0x714] ss:$8 sps:$4 sm:$0xff]  }
 0x6f0   : > { %7701 = vmatpush1.bf16.msra.mxu1 %v11937_v19  ;;  %v6827_v19 = vld [vmem:[%s14324_s13] sm:$0xff] }
 0x6f1   : > { %8669 = vmatpush1.bf16.msra.mxu0 %v11940_v43  ;;  %7702 = vmatprep.subr.bf16.mxu1 %v11945_v46  ;;  %v12035_v43 = vld [vmem:[%s12703_s22 + $0x114] ss:$8 sps:$4 sm:$0xff]  }
 0x6f2   : > { %8670 = vmatprep.subr.bf16.mxu0 %v11948_v49  ;;  %v6830_v46 = vld [vmem:[%s14324_s13 + $0x18] sm:$0xff] }
 0x6f3   : > { %v8280_v49 = vld [vmem:[%s14328_s12 + $0x18] sm:$0xff] }
 0x6f4   : > { %7703 = vmatpush1.bf16.msra.mxu1 %v11943_v51  ;;  %v12033_v51 = vld [vmem:[%s12703_s22 + $0x110] ss:$8 sps:$4 sm:$0xff]  }
 0x6f5   : > { %8671 = vmatpush1.bf16.msra.mxu0 %v11946_v12  ;;  %7704 = vmatprep.subr.bf16.mxu1 %v11951_v29  ;;  %v12036_v12 = vld [vmem:[%s12703_s22 + $0x710] ss:$8 sps:$4 sm:$0xff]   ;;  %v12041_v29 = vld [vmem:[%s12703_s22 + $0x124] ss:$8 sps:$4 sm:$0xff]  }
 0x6f6   : > { %8672 = vmatprep.subr.bf16.mxu0 %v11954_v44  ;;  %v12044_v44 = vld [vmem:[%s12703_s22 + $0x724] ss:$8 sps:$4 sm:$0xff]  }
 0x6f8   : > { %7705 = vmatpush1.bf16.msra.mxu1 %v11949_v34  ;;  %v12039_v34 = vld [vmem:[%s12703_s22 + $0x120] ss:$8 sps:$4 sm:$0xff]  }
 0x6f9   : > { %8673 = vmatpush1.bf16.msra.mxu0 %v11952_v28  ;;  %7706 = vmatprep.subr.bf16.mxu1 %v11957_v36  ;;  %v12042_v28 = vld [vmem:[%s12703_s22 + $0x720] ss:$8 sps:$4 sm:$0xff]   ;;  %v12047_v36 = vld [vmem:[%s12703_s22 + $0x134] ss:$8 sps:$4 sm:$0xff]  }
 0x6fa   : > { %8674 = vmatprep.subr.bf16.mxu0 %v11960_v62  ;;  %v12050_v62 = vld [vmem:[%s12703_s22 + $0x734] ss:$8 sps:$4 sm:$0xff]  }
 0x6fc   : > { %7707 = vmatpush1.bf16.msra.mxu1 %v11955_v11  ;;  %v12045_v11 = vld [vmem:[%s12703_s22 + $0x130] ss:$8 sps:$4 sm:$0xff]  }
 0x6fd   : > { %8675 = vmatpush1.bf16.msra.mxu0 %v11958_v4  ;;  %7708 = vmatprep.subr.bf16.mxu1 %v11963_v52  ;;  %v12048_v4 = vld [vmem:[%s12703_s22 + $0x730] ss:$8 sps:$4 sm:$0xff]   ;;  %v12053_v52 = vld [vmem:[%s12703_s22 + $0x144] ss:$8 sps:$4 sm:$0xff]  }
 0x6fe   : > { %8676 = vmatprep.subr.bf16.mxu0 %v11966_v9  ;;  %v12056_v9 = vld [vmem:[%s12703_s22 + $0x744] ss:$8 sps:$4 sm:$0xff]  }
 0x700   : > { %7709 = vmatpush1.bf16.msra.mxu1 %v11961_v17  ;;  %v12051_v17 = vld [vmem:[%s12703_s22 + $0x140] ss:$8 sps:$4 sm:$0xff]  }
 0x701   : > { %8677 = vmatpush1.bf16.msra.mxu0 %v11964_v60  ;;  %7710 = vmatprep.subr.bf16.mxu1 %v11969_v27  ;;  %v12054_v60 = vld [vmem:[%s12703_s22 + $0x740] ss:$8 sps:$4 sm:$0xff]   ;;  %v12059_v27 = vld [vmem:[%s12703_s22 + $0x154] ss:$8 sps:$4 sm:$0xff]  }
 0x702   : > { %8678 = vmatprep.subr.bf16.mxu0 %v11972_v37  ;;  %v12062_v37 = vld [vmem:[%s12703_s22 + $0x754] ss:$8 sps:$4 sm:$0xff]  }
 0x704   : > { %7711 = vmatpush1.bf16.msra.mxu1 %v11967_v15  ;;  %v12057_v15 = vld [vmem:[%s12703_s22 + $0x150] ss:$8 sps:$4 sm:$0xff]  }
 0x705   : > { %8679 = vmatpush1.bf16.msra.mxu0 %v11970_v2  ;;  %7712 = vmatprep.subr.bf16.mxu1 %v11975_v48  ;;  %v12060_v2 = vld [vmem:[%s12703_s22 + $0x750] ss:$8 sps:$4 sm:$0xff]   ;;  %v12065_v48 = vld [vmem:[%s12703_s22 + $0x164] ss:$8 sps:$4 sm:$0xff]  }
 0x706   : > { %8680 = vmatprep.subr.bf16.mxu0 %v11978_v26  ;;  %v12068_v26 = vld [vmem:[%s12703_s22 + $0x764] ss:$8 sps:$4 sm:$0xff]  }
 0x708   : > { %7713 = vmatpush1.bf16.msra.mxu1 %v11973_v14  ;;  %v12063_v14 = vld [vmem:[%s12703_s22 + $0x160] ss:$8 sps:$4 sm:$0xff]  }
 0x709   : > { %8681 = vmatpush1.bf16.msra.mxu0 %v11976_v8  ;;  %7714 = vmatprep.subr.bf16.mxu1 %v11981_v50  ;;  %v12066_v8 = vld [vmem:[%s12703_s22 + $0x760] ss:$8 sps:$4 sm:$0xff]   ;;  %v12071_v50 = vld [vmem:[%s12703_s22 + $0x174] ss:$8 sps:$4 sm:$0xff]  }
 0x70a   : > { %8682 = vmatprep.subr.bf16.mxu0 %v11984_v45  ;;  %v12074_v45 = vld [vmem:[%s12703_s22 + $0x774] ss:$8 sps:$4 sm:$0xff]  }
 0x70c   : > { %7715 = vmatpush1.bf16.msra.mxu1 %v11979_v53  ;;  %v12069_v53 = vld [vmem:[%s12703_s22 + $0x170] ss:$8 sps:$4 sm:$0xff]  }
 0x70d   : > { %8683 = vmatpush1.bf16.msra.mxu0 %v11982_v21  ;;  %7716 = vmatprep.subr.bf16.mxu1 %v11987_v61  ;;  %v12072_v21 = vld [vmem:[%s12703_s22 + $0x770] ss:$8 sps:$4 sm:$0xff]   ;;  %v12077_v61 = vld [vmem:[%s12703_s22 + $0x184] ss:$8 sps:$4 sm:$0xff]  }
 0x70e   : > { %8684 = vmatprep.subr.bf16.mxu0 %v11990_v54  ;;  %v12080_v54 = vld [vmem:[%s12703_s22 + $0x784] ss:$8 sps:$4 sm:$0xff]  }
 0x710   : > { %7717 = vmatpush1.bf16.msra.mxu1 %v11985_v56  ;;  %v12075_v56 = vld [vmem:[%s12703_s22 + $0x180] ss:$8 sps:$4 sm:$0xff]  }
 0x711   : > { %8685 = vmatpush1.bf16.msra.mxu0 %v11988_v25  ;;  %7718 = vmatprep.subr.bf16.mxu1 %v11993_v7  ;;  %v12078_v25 = vld [vmem:[%s12703_s22 + $0x780] ss:$8 sps:$4 sm:$0xff]   ;;  %v12083_v7 = vld [vmem:[%s12703_s22 + $0x194] ss:$8 sps:$4 sm:$0xff]  }
 0x712   : > { %8686 = vmatprep.subr.bf16.mxu0 %v11996_v58  ;;  %v12086_v58 = vld [vmem:[%s12703_s22 + $0x794] ss:$8 sps:$4 sm:$0xff]  }
 0x714   : > { %7719 = vmatpush1.bf16.msra.mxu1 %v11991_v0  ;;  %v12081_v0 = vld [vmem:[%s12703_s22 + $0x190] ss:$8 sps:$4 sm:$0xff]  }
 0x715   : > { %8687 = vmatpush1.bf16.msra.mxu0 %v11994_v39  ;;  %7720 = vmatprep.subr.bf16.mxu1 %v11999_v16  ;;  %v12084_v39 = vld [vmem:[%s12703_s22 + $0x790] ss:$8 sps:$4 sm:$0xff]   ;;  %v12089_v16 = vld [vmem:[%s12703_s22 + $0x1a4] ss:$8 sps:$4 sm:$0xff]  }
 0x716   : > { %8688 = vmatprep.subr.bf16.mxu0 %v12002_v3  ;;  %v12092_v3 = vld [vmem:[%s12703_s22 + $0x7a4] ss:$8 sps:$4 sm:$0xff]  }
 0x718   : > { %7721 = vmatpush1.bf16.msra.mxu1 %v11997_v10  ;;  %v12087_v10 = vld [vmem:[%s12703_s22 + $0x1a0] ss:$8 sps:$4 sm:$0xff]  }
 0x719   : > { %8689 = vmatpush1.bf16.msra.mxu0 %v12000_v30  ;;  %7722 = vmatprep.subr.bf16.mxu1 %v12005_v31  ;;  %v12090_v30 = vld [vmem:[%s12703_s22 + $0x7a0] ss:$8 sps:$4 sm:$0xff]   ;;  %v12095_v31 = vld [vmem:[%s12703_s22 + $0x1b4] ss:$8 sps:$4 sm:$0xff]  }
 0x71a   : > { %8690 = vmatprep.subr.bf16.mxu0 %v12008_v20  ;;  %v12098_v20 = vld [vmem:[%s12703_s22 + $0x7b4] ss:$8 sps:$4 sm:$0xff]  }
 0x71c   : > { %7723 = vmatpush1.bf16.msra.mxu1 %v12003_v35  ;;  %v12093_v35 = vld [vmem:[%s12703_s22 + $0x1b0] ss:$8 sps:$4 sm:$0xff]  }
 0x71d   : > { %8691 = vmatpush1.bf16.msra.mxu0 %v12006_v63  ;;  %7724 = vmatprep.subr.bf16.mxu1 %v12011_v40  ;;  %v12096_v63 = vld [vmem:[%s12703_s22 + $0x7b0] ss:$8 sps:$4 sm:$0xff]   ;;  %v12101_v40 = vld [vmem:[%s12703_s22 + $0x1c4] ss:$8 sps:$4 sm:$0xff]  }
 0x71e   : > { %8692 = vmatprep.subr.bf16.mxu0 %v12014_v59  ;;  %v12104_v59 = vld [vmem:[%s12703_s22 + $0x7c4] ss:$8 sps:$4 sm:$0xff]  }
 0x720   : > { %7725 = vmatpush1.bf16.msra.mxu1 %v12009_v32  ;;  %v12099_v32 = vld [vmem:[%s12703_s22 + $0x1c0] ss:$8 sps:$4 sm:$0xff]  }
 0x721   : > { %8693 = vmatpush1.bf16.msra.mxu0 %v12012_v23  ;;  %7726 = vmatprep.subr.bf16.mxu1 %v12017_v24  ;;  %v12102_v23 = vld [vmem:[%s12703_s22 + $0x7c0] ss:$8 sps:$4 sm:$0xff]   ;;  %v12107_v24 = vld [vmem:[%s12703_s22 + $0x1d4] ss:$8 sps:$4 sm:$0xff]  }
 0x722   : > { %8694 = vmatprep.subr.bf16.mxu0 %v12020_v47  ;;  %v12110_v47 = vld [vmem:[%s12703_s22 + $0x7d4] ss:$8 sps:$4 sm:$0xff]  }
 0x724   : > { %7727 = vmatpush1.bf16.msra.mxu1 %v12015_v5  ;;  %v12105_v5 = vld [vmem:[%s12703_s22 + $0x1d0] ss:$8 sps:$4 sm:$0xff]  }
 0x725   : > { %8695 = vmatpush1.bf16.msra.mxu0 %v12018_v6  ;;  %7728 = vmatprep.subr.bf16.mxu1 %v12023_v18  ;;  %v12108_v6 = vld [vmem:[%s12703_s22 + $0x7d0] ss:$8 sps:$4 sm:$0xff]   ;;  %v12113_v18 = vld [vmem:[%s12703_s22 + $0x1e4] ss:$8 sps:$4 sm:$0xff]  }
 0x726   : > { %8696 = vmatprep.subr.bf16.mxu0 %v12026_v1  ;;  %v12116_v1 = vld [vmem:[%s12703_s22 + $0x7e4] ss:$8 sps:$4 sm:$0xff]  }
 0x728   : > { %7729 = vmatpush1.bf16.msra.mxu1 %v12021_v55  ;;  %v12111_v55 = vld [vmem:[%s12703_s22 + $0x1e0] ss:$8 sps:$4 sm:$0xff]  }
 0x729   : > { %8697 = vmatpush1.bf16.msra.mxu0 %v12024_v13  ;;  %7741 = vmatprep.subr.bf16.mxu1 %v12029_v42  ;;  %v12114_v13 = vld [vmem:[%s12703_s22 + $0x7e0] ss:$8 sps:$4 sm:$0xff]   ;;  %v12119_v42 = vld [vmem:[%s12703_s22 + $0x1f4] ss:$8 sps:$4 sm:$0xff]  }
 0x72a   : > { %8709 = vmatprep.subr.bf16.mxu0 %v12032_v22  ;;  %v12122_v22 = vld [vmem:[%s12703_s22 + $0x7f4] ss:$8 sps:$4 sm:$0xff]  }
 0x72b   : > { %7731 = vmatmul.mubr.bf16.vlgmr.msra.gmra.mrb[0].mxu1 %v6827_v19  ;;  %v6829_v19 = vld [vmem:[%s14324_s13 + $0x10] sm:$0xff] }
 0x72c   : > { %8699 = vmatmul.mubr.bf16.vlgmr.msra.gmra.mrb[0].mxu0 %v8277_v33  ;;  %7742 = vmatpush1.bf16.msra.mxu1 %v12027_v38  ;;  %v12117_v38 = vld [vmem:[%s12703_s22 + $0x1f0] ss:$8 sps:$4 sm:$0xff]   ;;  %v8279_v33 = vld [vmem:[%s14328_s12 + $0x10] sm:$0xff] }
 0x72d   : > { %8710 = vmatpush1.bf16.msra.mxu0 %v12030_v41  ;;  %7743 = vmatprep.subr.bf16.mxu1 %v12035_v43  ;;  %v12120_v41 = vld [vmem:[%s12703_s22 + $0x7f0] ss:$8 sps:$4 sm:$0xff]  }
 0x72e   : > { %8711 = vmatprep.subr.bf16.mxu0 %v12038_v57  ;;  %7773 = vmatprep.mubr.bf16.mxu1 %v6830_v46 }
 0x72f   : > { %8741 = vmatprep.mubr.bf16.mxu0 %v8280_v49 }
 0x730   : > { %7744 = vmatpush1.bf16.msra.mxu1 %v12033_v51 }
 0x731   : > { %8712 = vmatpush1.bf16.msra.mxu0 %v12036_v12  ;;  %7745 = vmatprep.subr.bf16.mxu1 %v12041_v29 }
 0x732   : > { %8713 = vmatprep.subr.bf16.mxu0 %v12044_v44 }
 0x734   : > { %7746 = vmatpush1.bf16.msra.mxu1 %v12039_v34 }
 0x735   : > { %8714 = vmatpush1.bf16.msra.mxu0 %v12042_v28  ;;  %7747 = vmatprep.subr.bf16.mxu1 %v12047_v36 }
 0x736   : > { %8715 = vmatprep.subr.bf16.mxu0 %v12050_v62 }
 0x738   : > { %7748 = vmatpush1.bf16.msra.mxu1 %v12045_v11 }
 0x739   : > { %8716 = vmatpush1.bf16.msra.mxu0 %v12048_v4  ;;  %7749 = vmatprep.subr.bf16.mxu1 %v12053_v52 }
 0x73a   : > { %8717 = vmatprep.subr.bf16.mxu0 %v12056_v9 }
 0x73c   : > { %7750 = vmatpush1.bf16.msra.mxu1 %v12051_v17 }
 0x73d   : > { %8718 = vmatpush1.bf16.msra.mxu0 %v12054_v60  ;;  %7751 = vmatprep.subr.bf16.mxu1 %v12059_v27 }
 0x73e   : > { %8719 = vmatprep.subr.bf16.mxu0 %v12062_v37 }
 0x740   : > { %7752 = vmatpush1.bf16.msra.mxu1 %v12057_v15 }
 0x741   : > { %8720 = vmatpush1.bf16.msra.mxu0 %v12060_v2  ;;  %7753 = vmatprep.subr.bf16.mxu1 %v12065_v48 }
 0x742   : > { %8721 = vmatprep.subr.bf16.mxu0 %v12068_v26 }
 0x744   : > { %7754 = vmatpush1.bf16.msra.mxu1 %v12063_v14 }
 0x745   : > { %8722 = vmatpush1.bf16.msra.mxu0 %v12066_v8  ;;  %7755 = vmatprep.subr.bf16.mxu1 %v12071_v50 }
 0x746   : > { %8723 = vmatprep.subr.bf16.mxu0 %v12074_v45 }
 0x748   : > { %7756 = vmatpush1.bf16.msra.mxu1 %v12069_v53 }
 0x749   : > { %8724 = vmatpush1.bf16.msra.mxu0 %v12072_v21  ;;  %7757 = vmatprep.subr.bf16.mxu1 %v12077_v61 }
 0x74a   : > { %8725 = vmatprep.subr.bf16.mxu0 %v12080_v54 }
 0x74c   : > { %7758 = vmatpush1.bf16.msra.mxu1 %v12075_v56 }
 0x74d   : > { %8726 = vmatpush1.bf16.msra.mxu0 %v12078_v25  ;;  %7759 = vmatprep.subr.bf16.mxu1 %v12083_v7 }
 0x74e   : > { %8727 = vmatprep.subr.bf16.mxu0 %v12086_v58 }
 0x750   : > { %7760 = vmatpush1.bf16.msra.mxu1 %v12081_v0 }
 0x751   : > { %8728 = vmatpush1.bf16.msra.mxu0 %v12084_v39  ;;  %7761 = vmatprep.subr.bf16.mxu1 %v12089_v16 }
 0x752   : > { %8729 = vmatprep.subr.bf16.mxu0 %v12092_v3 }
 0x754   : > { %7762 = vmatpush1.bf16.msra.mxu1 %v12087_v10 }
 0x755   : > { %8730 = vmatpush1.bf16.msra.mxu0 %v12090_v30  ;;  %7763 = vmatprep.subr.bf16.mxu1 %v12095_v31 }
 0x756   : > { %8731 = vmatprep.subr.bf16.mxu0 %v12098_v20 }
 0x758   : > { %7764 = vmatpush1.bf16.msra.mxu1 %v12093_v35 }
 0x759   : > { %8732 = vmatpush1.bf16.msra.mxu0 %v12096_v63  ;;  %7765 = vmatprep.subr.bf16.mxu1 %v12101_v40 }
 0x75a   : > { %8733 = vmatprep.subr.bf16.mxu0 %v12104_v59 }
 0x75c   : > { %7766 = vmatpush1.bf16.msra.mxu1 %v12099_v32 }
 0x75d   : > { %8734 = vmatpush1.bf16.msra.mxu0 %v12102_v23  ;;  %7767 = vmatprep.subr.bf16.mxu1 %v12107_v24 }
 0x75e   : > { %8735 = vmatprep.subr.bf16.mxu0 %v12110_v47 }
 0x760   : > { %7768 = vmatpush1.bf16.msra.mxu1 %v12105_v5 }
 0x761   : > { %8736 = vmatpush1.bf16.msra.mxu0 %v12108_v6  ;;  %7769 = vmatprep.subr.bf16.mxu1 %v12113_v18 }
 0x762   : > { %8737 = vmatprep.subr.bf16.mxu0 %v12116_v1 }
 0x764   : > { %7770 = vmatpush1.bf16.msra.mxu1 %v12111_v55 }
 0x765   : > { %8738 = vmatpush1.bf16.msra.mxu0 %v12114_v13  ;;  %7771 = vmatprep.subr.bf16.mxu1 %v12119_v42 }
 0x766   : > { %8739 = vmatprep.subr.bf16.mxu0 %v12122_v22 }
 0x768   : > { %7772 = vmatpush1.bf16.msra.mxu1 %v12117_v38 }
 0x769   : > { %8740 = vmatpush1.bf16.msra.mxu0 %v12120_v41 }
 0x76b   : > { %7774 = vmatmul.mubr.bf16.vlgmr.msra.gmra.mrb[0].mxu1 %v6829_v19 }
 0x76c   : > { %8742 = vmatmul.mubr.bf16.vlgmr.msra.gmra.mrb[0].mxu0 %v8279_v33 }
 0x83d   : > { %8758 = sbr.rel (%p14641_p11) target bundleno = 2118 (0x846), region = 92 }
 0x83e   : > { %v7775_v43 = vpop.f32.mrb[0].mxu1 }
 0x83f   : > { %v8743_v57 = vpop.f32.mrb[0].mxu0  ;;  %v7777_v49 = vpop.f32.mrb[1].mxu1 }
 0x840   : > { %v11191_v46 = vadd.f32 %v8743_v57, %v7775_v43  ;;  %v8745_v51 = vpop.f32.mrb[1].mxu0  ;;  %v7779_v29 = vpop.f32.mrb[2].mxu1 }
 0x841   : > { %v11192_v12 = vadd.f32 %v8745_v51, %v7777_v49  ;;  %v8747_v44 = vpop.f32.mrb[2].mxu0  ;;  %v7781_v28 = vpop.f32.mrb[3].mxu1 }
 0x842   : > { %v11193_v34 = vadd.f32 %v8747_v44, %v7779_v29  ;;  %v8749_v36 = vpop.f32.mrb[3].mxu0  ;;  %8759 = vst [vmem:[#allocation3] sm:$0xff] (!%p14641_p11), %v11191_v46 }
 0x843   : > { %v11194_v62 = vadd.f32 %v8749_v36, %v7781_v28  ;;  %8760 = vst [vmem:[#allocation3 + $0x8] sm:$0xff] (!%p14641_p11), %v11192_v12 }
 0x844   : > { %8761 = vst [vmem:[#allocation3 + $0x10] sm:$0xff] %v11193_v34 }
 0x845   : > { %8762 = vst [vmem:[#allocation3 + $0x18] sm:$0xff] %v11194_v62 }
 0x846 PF: > { %p14642_p7 = scmp.eq.s32.totalorder %s12478_s15, 0 }
 0x848   : > { %8766 = sbr.rel (%p14642_p7) target bundleno = 2129 (0x851), region = 96 }
 0x84b   : > { %v8767_v11 = vld [vmem:[#allocation3] sm:$0xff] (!%p14642_p7) }
 0x84c   : > { %v8768_v4 = vld [vmem:[#allocation3 + $0x8] sm:$0xff] (!%p14642_p7)  ;;  %v8771_v9 = vadd.f32 (!%p14642_p7), %v11191_v46, %v8767_v11  ;;  %v8770_v27 = vld [vmem:[#allocation3 + $0x18] sm:$0xff] (!%p14642_p7) }
 0x84d   : > { %v8769_v52 = vld [vmem:[#allocation3 + $0x10] sm:$0xff] (!%p14642_p7)  ;;  %v8772_v17 = vadd.f32 (!%p14642_p7), %v11192_v12, %v8768_v4  ;;  %v8774_v37 = vadd.f32 (!%p14642_p7), %v11194_v62, %v8770_v27 }
 0x84e   : > { %v8773_v60 = vadd.f32 (!%p14642_p7), %v11193_v34, %v8769_v52  ;;  %8775 = vst [vmem:[#allocation3] sm:$0xff] (!%p14642_p7), %v8771_v9 }
 0x84f   : > { %8776 = vst [vmem:[#allocation3 + $0x8] sm:$0xff] %v8772_v17  ;;  %8778 = vst [vmem:[#allocation3 + $0x18] sm:$0xff] %v8774_v37 }
 0x850   : > { %8777 = vst [vmem:[#allocation3 + $0x10] sm:$0xff] %v8773_v60 }
 0x851 PF: > { %p10072_p13 = scmp.ne.s32.totalorder %s12478_s15, 3 }
 0x852   : > { %v12123_v15 = vld [vmem:[%s14536_s7 + $0x40] sm:$0xff] (!%p10072_p13)   ;;  %v12125_v48 = vld [vmem:[%s14536_s7 + $0x48] sm:$0xff] (!%p10072_p13)   ;;  %v12127_v14 = vld [vmem:[%s14536_s7 + $0x50] sm:$0xff] (!%p10072_p13)   ;;  %v8789_v8 = vlaneseq (!%p10072_p13)  ;;  %vm8985_vm3 = vcmask (!%p10072_p13), 31744   ;;  %s14643_s16 = sld [smem:[#allocation42_spill]] (!%p10072_p13) }
 0x853   : > { %8782 = sbr.rel (%p10072_p13) target bundleno = 2383 (0x94f), region = 100  ;;  %v12124_v2 = vld [vmem:[%s14536_s7] sm:$0xff] (!%p10072_p13)   ;;  %10173 = vmatprep.subr.bf16.mxu0 (!%p10072_p13), %v12123_v15  ;;  %v12126_v26 = vld [vmem:[%s14536_s7 + $0x8] sm:$0xff] (!%p10072_p13)   ;;  %v12128_v50 = vld [vmem:[%s14536_s7 + $0x10] sm:$0xff] (!%p10072_p13)  }
 0x854   : > { %10174 = vmatpush3.bf16.msra.mxu0 (!%p10072_p13), %v12124_v2  ;;  %v12129_v45 = vld [vmem:[%s14536_s7 + $0x58] sm:$0xff] (!%p10072_p13)   ;;  %v8790_v53 = vshrl.u32 (!%p10072_p13), %v8789_v8, 7  ;;  %v12131_v61 = vld [vmem:[%s14536_s7 + $0x60] sm:$0xff] (!%p10072_p13)   ;;  %v12133_v7 = vld [vmem:[%s14536_s7 + $0x68] sm:$0xff] (!%p10072_p13)  }
 0x855   : > { %10175 = vmatprep.subr.bf16.mxu0 (!%p10072_p13), %v12125_v48  ;;  %v12130_v21 = vld [vmem:[%s14536_s7 + $0x18] sm:$0xff] (!%p10072_p13)   ;;  %v12132_v56 = vld [vmem:[%s14536_s7 + $0x20] sm:$0xff] (!%p10072_p13)   ;;  %v8787_v39 = vld [vmem:[#allocation12] sm:$0x3] (!%p10072_p13) }
 0x856   : > { %v8795_v54 = vsub.s32 (!%p10072_p13), 1, %v8790_v53  ;;  %v8791_v25 = vsub.s32 (!%p10072_p13), 0, %v8790_v53  ;;  %v12134_v10 = vld [vmem:[%s14536_s7 + $0x28] sm:$0xff] (!%p10072_p13)   ;;  %v12135_v63 = vld [vmem:[%s14536_s7 + $0x70] sm:$0xff] (!%p10072_p13)   ;;  %v12137_v5 = vld [vmem:[%s14536_s7 + $0x78] sm:$0xff] (!%p10072_p13)  }
 0x857   : > { %v8783_v20 = vld [vmem:[#allocation3] sm:$0xff] (!%p10072_p13)  ;;  %v8785_v35 = vld [vmem:[#allocation3 + $0x10] sm:$0xff] (!%p10072_p13)  ;;  %v12138_v1 = vld [vmem:[%s14536_s7 + $0x38] sm:$0xff] (!%p10072_p13)  }
 0x858   : > { %10176 = vmatpush3.bf16.msra.mxu0 (!%p10072_p13), %v12126_v26  ;;  %v8784_v58 = vld [vmem:[#allocation3 + $0x8] sm:$0xff] (!%p10072_p13)  ;;  %v8786_v0 = vld [vmem:[#allocation3 + $0x18] sm:$0xff] (!%p10072_p13)  ;;  %v8796_v16 = vrot.slane (!%p10072_p13), %v8787_v39, %v8795_v54  ;;  %v8792_v3 = vrot.slane (!%p10072_p13), %v8787_v39, %v8791_v25  ;;  %v12136_v24 = vld [vmem:[%s14536_s7 + $0x30] sm:$0xff] (!%p10072_p13)  }
 0x859   : > { %10177 = vmatprep.subr.bf16.mxu0 (!%p10072_p13), %v12127_v14  ;;  %v10073_v42 = vld [vmem:[#allocation13] ss:$0 sm:$0xff] (!%p10072_p13) }
 0x85a   : > { %v8800_v30 = vadd.f32 %v8796_v16, %v8784_v58  ;;  %v8802_v31 = vadd.f32 %v8796_v16, %v8786_v0  ;;  %v8799_v32 = vadd.f32 %v8792_v3, %v8783_v20  ;;  %v8801_v23 = vadd.f32 %v8792_v3, %v8785_v35 }
 0x85c   : > { %10178 = vmatpush3.bf16.msra.mxu0 %v12128_v50  ;;  %v8804_v40 = vmax.f32 %v8800_v30, 0.0  ;;  %v8806_v59 = vmax.f32 %v8802_v31, 0.0  ;;  %v8803_v6 = vmax.f32 %v8799_v32, 0.0  ;;  %v8805_v18 = vmax.f32 %v8801_v23, 0.0 }
 0x85d   : > { %10179 = vmatprep.subr.bf16.mxu0 %v12129_v45 }
 0x85e   : > { %v8808_v47 = vpack.c.bf16 %v8806_v59, %v8804_v40  ;;  %v8807_v55 = vpack.c.bf16 %v8805_v18, %v8803_v6 }
 0x860   : > { %10180 = vmatpush3.bf16.msra.mxu0 %v12130_v21  ;;  %8976 = vmatprep.mubr.bf16.mxu0 %v8808_v47 }
 0x861   : > { %10181 = vmatprep.subr.bf16.mxu0 %v12131_v61 }
 0x864   : > { %10182 = vmatpush3.bf16.msra.mxu0 %v12132_v56 }
 0x865   : > { %10183 = vmatprep.subr.bf16.mxu0 %v12133_v7 }
 0x868   : > { %10184 = vmatpush3.bf16.msra.mxu0 %v12134_v10 }
 0x869   : > { %10185 = vmatprep.subr.bf16.mxu0 %v12135_v63 }
 0x86c   : > { %10186 = vmatpush3.bf16.msra.mxu0 %v12136_v24 }
 0x86d   : > { %10187 = vmatprep.subr.bf16.mxu0 %v12137_v5 }
 0x870   : > { %10188 = vmatpush3.bf16.msra.mxu0 %v12138_v1 }
 0x873   : > { %8977 = vmatmul.mubr.bf16.vlgmr.msra.gmra.mrb[0].mxu0 %v8807_v55 }
 0x946   : > { %v10189_v13 = vpop.f32.mrb[0].mxu0 }
 0x947   : > { %v10190_v22 = vpop.f32.mrb[1].mxu0 }
 0x948   : > { %v10191_v38 = vadd.f32 %v10190_v22, %v10189_v13  ;;  %v10192_v41 = vpop.f32.mrb[2].mxu0 }
 0x949   : > { %v10193_v19 = vpop.f32.mrb[3].mxu0 }
 0x94a   : > { %v8979_v33 = vadd.f32 %v10191_v38, %v10073_v42  ;;  %v10194_v43 = vadd.f32 %v10193_v19, %v10192_v41 }
 0x94c   : > { %8986 = vst.msk [vmem:[%s14643_s16] sm:$0xff] %vm8985_vm3, %v8979_v33  ;;  %v8982_v57 = vadd.f32 %v10194_v43, %v10073_v42 }
 0x94e   : > { %8987 = vst.msk [vmem:[%s14643_s16 + $0x8] sm:$0xff] %vm8985_vm3, %v8982_v57 }
 0x94f PF: > { %p19_p2 = scmp.ge.s32.totalorder %s12625_s27, 6   ;;  %s14644_s30 = smov %s12383_s10 }
 0x950   : > { %s14645_s10 = smov %s12387_s11  ;;  %s14646_s11 = smov %s12637_s25 }
 0x951   : > { %s14647_s12 = smov %s12625_s27  ;;  %21 = sbr.rel (!%p19_p2) target bundleno = 8 (0x8), region = 142 }
 0x958   :  { %8999 = vsyncpa [#allocation5], 1 }
 0x959   :  { %9001 = vsyncpa [#allocation5 + $0x1], 1 }
 0x95a   :  { %9002 = vsyncpa [#allocation7], 1 }
 0x95b   :  { %9003 = vsyncpa [#allocation10], 1 }

</bundles_post_ra>
